<compile_context>
chip_gen: v5e
topology: v5e:2x2
jax: 0.10.0
libtpu: 0.0.40
codegen_flags: <defaults>
</compile_context>

<pallas_src>
import functools

import jax
import jax.numpy as jnp
from jax.experimental import pallas as pl
from jax.experimental.pallas import tpu as pltpu

LANE = 128  # TPU lane width; channel dims are zero-padded to this.


# ----------------------------------------------------------------------------
# Pallas kernels
# ----------------------------------------------------------------------------
def _enc_qdq_kernel(p_ref, w_ref, b_ref, h_ref, *, num_bits, tm):
    """Fused encoder tile: (patches @ W + b, ReLU) then per-(batch,ch) q/dq.

    Grid = (batch, spatial_tiles). The (HW, 128) output block is resident
    across the spatial ("arbitrary") axis; each step writes its TM rows and on
    the last tile the whole per-batch hidden state is quantized + dequantized
    in place (min/max per channel over all spatial positions).
    """
    t = pl.program_id(1)

    h_tile = jnp.dot(p_ref[...], w_ref[...],
                     preferred_element_type=jnp.float32)        # (TM, 128) f32
    h_tile = jnp.maximum(h_tile + b_ref[...], 0.0)              # bias + ReLU
    row = pl.multiple_of(t * tm, 8)
    h_ref[pl.ds(row, tm), :] = h_tile

    @pl.when(t == pl.num_programs(1) - 1)
    def _():
        h = h_ref[...]                                          # (HW, 128) f32
        hmin = jnp.min(h, axis=0, keepdims=True)                # (1, 128)
        hmax = jnp.max(h, axis=0, keepdims=True)
        rng = hmax - hmin
        levels = jnp.float32(2 ** num_bits - 1)
        safe = jnp.where(rng > 0.0, rng, jnp.float32(1.0))      # avoid /0
        q = jnp.round((h - hmin) / safe * levels)               # quantize
        h_ref[...] = hmin + (q / levels) * rng                  # dequantize


def _dec_conv_kernel(u_ref, w_ref, b_ref, o_ref, *, ho, wo):
    """Decoder 3x3 conv (s=1, p=1) + hardtanh + (y+1)*0.5 for one batch elem.

    u_ref is the upsampled hidden state with a 1-pixel zero halo:
    (Ho+2, Wo+2, 128). Taps are formed with static shifted slices in VMEM
    (no im2col in HBM) and accumulated with nine MXU matmuls.
    """
    lane = o_ref.shape[-1]
    acc = jnp.zeros((ho * wo, lane), jnp.float32)
    for di in range(3):
        for dj in range(3):
            tap = u_ref[di:di + ho, dj:dj + wo, :]              # (Ho, Wo, 128)
            acc = acc + jnp.dot(tap.reshape(ho * wo, lane),
                                w_ref[3 * di + dj],
                                preferred_element_type=jnp.float32)
    y = acc + b_ref[...]
    o_ref[...] = (jnp.clip(y, -1.0, 1.0) + 1.0) * 0.5


# ----------------------------------------------------------------------------
# Pallas wrappers
# ----------------------------------------------------------------------------
def _pick_tile_m(m, cap=1024):
    """Spatial tile: whole extent if small, else a multiple of 8 dividing m."""
    if m <= cap:
        return m
    tm = cap - cap % 8
    while tm >= 8:
        if m % tm == 0:
            return tm
        tm -= 8
    return m


def encoder_qdq_pallas(patches, enc_w, enc_b, num_bits):
    """patches: (B, HW, K) bf16; enc_w: (K, 128) bf16; enc_b: (1, 128) f32.

    Returns the dequantized hidden state (B, HW, 128) f32 (padded channels 0).
    """
    B, HW, K = patches.shape
    N = enc_w.shape[1]
    tm = _pick_tile_m(HW)
    return pl.pallas_call(
        functools.partial(_enc_qdq_kernel, num_bits=num_bits, tm=tm),
        out_shape=jax.ShapeDtypeStruct((B, HW, N), jnp.float32),
        grid=(B, HW // tm),
        in_specs=[
            pl.BlockSpec((None, tm, K), lambda b, t: (b, t, 0)),   # patches tile
            pl.BlockSpec((K, N), lambda b, t: (0, 0)),             # weight (resident)
            pl.BlockSpec((1, N), lambda b, t: (0, 0)),             # bias   (resident)
        ],
        out_specs=pl.BlockSpec((None, HW, N), lambda b, t: (b, 0, 0)),  # resident
        compiler_params=pltpu.CompilerParams(
            dimension_semantics=("parallel", "arbitrary")),
    )(patches, enc_w, enc_b)


def decoder_pallas(up_halo, dec_w_taps, dec_b):
    """up_halo: (B, Ho+2, Wo+2, 128) bf16; dec_w_taps: (9, 128, 128) bf16.

    Returns (B, Ho*Wo, 128) f32 in [0, 1] (real channels in the first lanes).
    """
    B, Hp, Wp, L = up_halo.shape
    ho, wo = Hp - 2, Wp - 2
    # TODO(synk): for large Ho/Wo, tile spatially with manual halo DMA instead
    # of one whole-image block per batch element (VMEM-bound on v7x).
    return pl.pallas_call(
        functools.partial(_dec_conv_kernel, ho=ho, wo=wo),
        out_shape=jax.ShapeDtypeStruct((B, ho * wo, L), jnp.float32),
        grid=(B,),
        in_specs=[
            pl.BlockSpec((None, Hp, Wp, L), lambda b: (b, 0, 0, 0)),
            pl.BlockSpec((9, L, L), lambda b: (0, 0, 0)),           # taps (resident)
            pl.BlockSpec((1, L), lambda b: (0, 0)),                 # bias (resident)
        ],
        out_specs=pl.BlockSpec((None, ho * wo, L), lambda b: (b, 0, 0)),
        compiler_params=pltpu.CompilerParams(
            dimension_semantics=("parallel",)),
    )(up_halo, dec_w_taps, dec_b)


# ----------------------------------------------------------------------------
# JAX glue: im2col (encoder only), weight packing, forward pass
# ----------------------------------------------------------------------------
def im2col(x_nhwc, k, stride, pad):
    """(B, H, W, C) -> (B, H_out, W_out, k*k*C), patch feature order (kh, kw, c)."""
    x = jnp.pad(x_nhwc, ((0, 0), (pad, pad), (pad, pad), (0, 0)))
    _, H, W, _ = x.shape
    h_out = (H - k) // stride + 1
    w_out = (W - k) // stride + 1
    cols = []
    for di in range(k):
        for dj in range(k):
            cols.append(x[:, di:di + stride * h_out:stride,
                             dj:dj + stride * w_out:stride, :])
    return jnp.concatenate(cols, axis=-1)


def _pad_last(a, n):
    pad = n - a.shape[-1]
    if pad <= 0:
        return a
    return jnp.pad(a, [(0, 0)] * (a.ndim - 1) + [(0, pad)])


def _prepare_params(params, lane=LANE):
    """Pack conv weights as lane-padded matmul operands (bf16) + padded biases (f32)."""
    enc_w, enc_b = params["enc_w"], params["enc_b"]   # (C_hid, C_in, 3, 3), (C_hid,)
    dec_w, dec_b = params["dec_w"], params["dec_b"]   # (C_in, C_hid, 3, 3), (C_in,)
    c_hid, c_in = enc_w.shape[0], enc_w.shape[1]
    c_out = dec_w.shape[0]

    # encoder: (C_hid, C_in, 3, 3) -> (9*C_in, C_hid), matching im2col (kh, kw, c)
    enc_wm = jnp.transpose(enc_w, (2, 3, 1, 0)).reshape(9 * c_in, c_hid)
    enc_wm = _pad_last(enc_wm, lane).astype(jnp.bfloat16)             # (9*C_in, 128)
    enc_bp = _pad_last(enc_b.reshape(1, c_hid), lane).astype(jnp.float32)

    # decoder: per-tap (C_hid, C_out), zero-padded to (128, 128); tap idx = 3*kh + kw
    dec_taps = jnp.transpose(dec_w, (2, 3, 1, 0)).reshape(9, c_hid, c_out)
    dec_taps = jnp.pad(dec_taps, ((0, 0), (0, lane - c_hid), (0, lane - c_out)))
    dec_taps = dec_taps.astype(jnp.bfloat16)                          # (9, 128, 128)
    dec_bp = _pad_last(dec_b.reshape(1, c_out), lane).astype(jnp.float32)
    return enc_wm, enc_bp, dec_taps, dec_bp


# ----- pure-JAX mirrors of the two kernels (for the correctness check) -------
def _encoder_qdq_ref(patches, enc_w, enc_b, num_bits):
    B, HW, K = patches.shape
    h = jnp.dot(patches.reshape(B * HW, K), enc_w,
                preferred_element_type=jnp.float32)
    h = jnp.maximum(h + enc_b, 0.0).reshape(B, HW, -1)
    hmin = jnp.min(h, axis=1, keepdims=True)
    hmax = jnp.max(h, axis=1, keepdims=True)
    rng = hmax - hmin
    levels = jnp.float32(2 ** num_bits - 1)
    safe = jnp.where(rng > 0.0, rng, jnp.float32(1.0))
    q = jnp.round((h - hmin) / safe * levels)
    return hmin + (q / levels) * rng


def _decoder_ref(up_halo, dec_w_taps, dec_b):
    B, Hp, Wp, L = up_halo.shape
    ho, wo = Hp - 2, Wp - 2
    acc = jnp.zeros((B * ho * wo, L), jnp.float32)
    for di in range(3):
        for dj in range(3):
            tap = up_halo[:, di:di + ho, dj:dj + wo, :].reshape(B * ho * wo, L)
            acc = acc + jnp.dot(tap, dec_w_taps[3 * di + dj],
                                preferred_element_type=jnp.float32)
    y = (jnp.clip(acc + dec_b, -1.0, 1.0) + 1.0) * 0.5
    return y.reshape(B, ho * wo, L)


def compression_autoencoder_forward(x_nchw, params, num_bits=8, use_pallas=True):
    """x: (B, C_in, H, W) NCHW -> (B, C_in, H, W) NCHW in [0, 1]."""
    B, c_in, H, W = x_nchw.shape
    enc_wm, enc_bp, dec_taps, dec_bp = _prepare_params(params)

    x = jnp.transpose(x_nchw, (0, 2, 3, 1)).astype(jnp.bfloat16)      # NHWC, bf16 feed

    # ---- encoder: Conv2d(C_in->C_hid, k=3, s=2, p=1) + ReLU + quant/dequant -
    # TODO(synk): encoder im2col still materializes ~2.25x the input in HBM;
    # it could be folded into the kernel with halo blocks like the decoder.
    patches = im2col(x, k=3, stride=2, pad=1)                         # (B,Hh,Wh,9*C_in)
    _, Hh, Wh, K = patches.shape
    patches = patches.reshape(B, Hh * Wh, K)
    if use_pallas:
        h_dq = encoder_qdq_pallas(patches, enc_wm, enc_bp, num_bits)
    else:
        h_dq = _encoder_qdq_ref(patches, enc_wm, enc_bp, num_bits)
    # h_dq: (B, Hh*Wh, 128) f32; channels >= C_hid are exactly zero.

    # ---- decoder: nearest-upsample x2 + Conv2d(C_hid->C_in, k=3, s=1, p=1) --
    # TODO(synk): fold the nearest 2x upsample + zero halo into the decoder
    # kernel (index_map row//2 or in-VMEM repeat) to skip this HBM round trip.
    hd, wd = 2 * Hh, 2 * Wh
    h_sp = h_dq.reshape(B, Hh, Wh, LANE)
    up = jnp.repeat(jnp.repeat(h_sp, 2, axis=1), 2, axis=2)           # (B, Hd, Wd, 128)
    up_halo = jnp.pad(up, ((0, 0), (1, 1), (1, 1), (0, 0))).astype(jnp.bfloat16)

    if use_pallas:
        y = decoder_pallas(up_halo, dec_taps, dec_bp)                 # (B, Hd*Wd, 128)
    else:
        y = _decoder_ref(up_halo, dec_taps, dec_bp)

    y = y[:, :, :c_in].reshape(B, hd, wd, c_in)                       # drop lane pad
    return jnp.transpose(y, (0, 3, 1, 2))                             # back to NCHW


# ----------------------------------------------------------------------------
if __name__ == "__main__":
    key = jax.random.PRNGKey(0)
    k_x, k_ew, k_eb, k_dw, k_db = jax.random.split(key, 5)

    B, C_in, H, W = 2, 4, 16, 16
    C_hid = 8            # encoder.hidden_state_num_channels
    num_bits = 8

    x = jax.random.normal(k_x, (B, C_in, H, W), dtype=jnp.float32)
    params = {
        # PyTorch conv weight layout: (C_out, C_in, kH, kW)
        "enc_w": 0.1 * jax.random.normal(k_ew, (C_hid, C_in, 3, 3), jnp.float32),
        "enc_b": 0.1 * jax.random.normal(k_eb, (C_hid,), jnp.float32),
        "dec_w": 0.1 * jax.random.normal(k_dw, (C_in, C_hid, 3, 3), jnp.float32),
        "dec_b": 0.1 * jax.random.normal(k_db, (C_in,), jnp.float32),
    }

    fwd = jax.jit(functools.partial(compression_autoencoder_forward,
                                    num_bits=num_bits))
    out = jax.block_until_ready(fwd(x, params))

    ref = jax.block_until_ready(
        compression_autoencoder_forward(x, params, num_bits=num_bits,
                                        use_pallas=False))

    assert out.shape == (B, C_in, H, W)
    assert bool(jnp.all(jnp.isfinite(out)))
    max_err = float(jnp.max(jnp.abs(out - ref)))
    # Both paths use bf16 MXU inputs with f32 accumulation; tolerance leaves
    # room for a possible single quantization-level flip from last-ulp
    # differences in dot accumulation order.
    assert max_err < 5e-3, f"max abs error vs reference: {max_err}"
    print("KERNEL_OK")
</pallas_src>

<mosaic_0001>
module attributes {stable_mosaic.version = 11 : i64} {
  func.func @_enc_qdq_kernel(%arg0: i32, %arg1: i32, %arg2: memref<1x64x36xbf16, #tpu.memory_space<vmem>>, %arg3: memref<36x128xbf16, #tpu.memory_space<vmem>>, %arg4: memref<1x128xf32, #tpu.memory_space<vmem>>, %arg5: memref<1x64x128xf32, #tpu.memory_space<vmem>>) attributes {dimension_semantics = [#tpu.dimension_semantics<parallel>, #tpu.dimension_semantics<arbitrary>], iteration_bounds = array<i64: 2, 1>, scalar_prefetch = 0 : i64, scratch_operands = 0 : i64, tpu.core_type = #tpu.core_type<tc>, window_params = [{transform_indices = @transform_0, window_bounds = array<i64: 1, 64, 36>}, {pipeline_mode = #tpu.pipeline_mode<synchronous>, transform_indices = @transform_1, window_bounds = array<i64: 36, 128>}, {pipeline_mode = #tpu.pipeline_mode<synchronous>, transform_indices = @transform_2, window_bounds = array<i64: 1, 128>}, {transform_indices = @transform_3, window_bounds = array<i64: 1, 64, 128>}]} {
    %c0 = arith.constant 0 : index
    %c0_0 = arith.constant 0 : index
    %c0_1 = arith.constant 0 : index
    %0 = vector.load %arg2[%c0, %c0_0, %c0_1] : memref<1x64x36xbf16, #tpu.memory_space<vmem>>, vector<1x64x36xbf16>
    %1 = vector.shape_cast %0 : vector<1x64x36xbf16> to vector<64x36xbf16>
    %c0_2 = arith.constant 0 : index
    %c0_3 = arith.constant 0 : index
    %2 = vector.load %arg3[%c0_2, %c0_3] : memref<36x128xbf16, #tpu.memory_space<vmem>>, vector<36x128xbf16>
    %cst = arith.constant dense<0.000000e+00> : vector<64x128xf32>
    %3 = tpu.matmul %1, %2, %cst {dimension_numbers = #tpu.dot_dimension_numbers<[1], [0], [0], [1], [0, 0, 1, 1], [], []>} : vector<64x36xbf16>, vector<36x128xbf16>, vector<64x128xf32> -> vector<64x128xf32>
    %c0_4 = arith.constant 0 : index
    %c0_5 = arith.constant 0 : index
    %4 = vector.load %arg4[%c0_4, %c0_5] : memref<1x128xf32, #tpu.memory_space<vmem>>, vector<1x128xf32>
    %5 = vector.broadcast %4 : vector<1x128xf32> to vector<64x128xf32>
    %6 = arith.addf %3, %5 : vector<64x128xf32>
    %cst_6 = arith.constant 0.000000e+00 : f32
    %7 = vector.broadcast %cst_6 : f32 to vector<64x128xf32>
    %8 = arith.maximumf %6, %7 : vector<64x128xf32>
    %c64_i32 = arith.constant 64 : i32
    %9 = arith.muli %arg1, %c64_i32 : i32
    %10 = tpu.assume_multiple %9, 8 : i32
    %c0_7 = arith.constant 0 : index
    %11 = arith.index_cast %10 : i32 to index
    %c0_8 = arith.constant 0 : index
    %12 = vector.load %arg5[%c0_7, %11, %c0_8] : memref<1x64x128xf32, #tpu.memory_space<vmem>>, vector<1x64x128xf32>
    %13 = vector.shape_cast %12 : vector<1x64x128xf32> to vector<64x128xf32>
    %14 = vector.shape_cast %8 : vector<64x128xf32> to vector<1x64x128xf32>
    tpu.vector_store %arg5[%c0_7, %11, %c0_8], %14 {strides = array<i32>} : memref<1x64x128xf32, #tpu.memory_space<vmem>>, vector<1x64x128xf32>,
    %c0_i32 = arith.constant 0 : i32
    %15 = arith.cmpi eq, %arg1, %c0_i32 : i32
    %16 = arith.extui %15 : i1 to i32
    %c0_i32_9 = arith.constant 0 : i32
    %17 = arith.cmpi ne, %16, %c0_i32_9 : i32
    scf.if %17 {
      %c0_10 = arith.constant 0 : index
      %c0_11 = arith.constant 0 : index
      %c0_12 = arith.constant 0 : index
      %18 = vector.load %arg5[%c0_10, %c0_11, %c0_12] : memref<1x64x128xf32, #tpu.memory_space<vmem>>, vector<1x64x128xf32>
      %19 = vector.shape_cast %18 : vector<1x64x128xf32> to vector<64x128xf32>
      %cst_13 = arith.constant dense<0x7F800000> : vector<128xf32>
      %20 = vector.multi_reduction <minimumf>, %19, %cst_13 [0] : vector<64x128xf32> to vector<128xf32>
      %21 = vector.shape_cast %20 : vector<128xf32> to vector<1x128xf32>
      %cst_14 = arith.constant dense<0xFF800000> : vector<128xf32>
      %22 = vector.multi_reduction <maximumf>, %19, %cst_14 [0] : vector<64x128xf32> to vector<128xf32>
      %23 = vector.shape_cast %22 : vector<128xf32> to vector<1x128xf32>
      %24 = arith.subf %23, %21 : vector<1x128xf32>
      %cst_15 = arith.constant 0.000000e+00 : f32
      %25 = vector.broadcast %cst_15 : f32 to vector<1x128xf32>
      %26 = arith.cmpf ogt, %24, %25 : vector<1x128xf32>
      %cst_16 = arith.constant 1.000000e+00 : f32
      %27 = vector.broadcast %cst_16 : f32 to vector<1x128xf32>
      %28 = arith.select %26, %24, %27 : vector<1x128xi1>, vector<1x128xf32>
      %29 = vector.broadcast %21 : vector<1x128xf32> to vector<64x128xf32>
      %30 = arith.subf %19, %29 : vector<64x128xf32>
      %31 = vector.broadcast %28 : vector<1x128xf32> to vector<64x128xf32>
      %32 = arith.divf %30, %31 : vector<64x128xf32>
      %cst_17 = arith.constant 2.550000e+02 : f32
      %33 = vector.broadcast %cst_17 : f32 to vector<64x128xf32>
      %34 = arith.mulf %32, %33 : vector<64x128xf32>
      %35 = math.roundeven %34 : vector<64x128xf32>
      %cst_18 = arith.constant 2.550000e+02 : f32
      %36 = vector.broadcast %cst_18 : f32 to vector<64x128xf32>
      %37 = arith.divf %35, %36 : vector<64x128xf32>
      %38 = vector.broadcast %24 : vector<1x128xf32> to vector<64x128xf32>
      %39 = arith.mulf %37, %38 : vector<64x128xf32>
      %40 = vector.broadcast %21 : vector<1x128xf32> to vector<64x128xf32>
      %41 = arith.addf %40, %39 : vector<64x128xf32>
      %c0_19 = arith.constant 0 : index
      %c0_20 = arith.constant 0 : index
      %c0_21 = arith.constant 0 : index
      %42 = vector.load %arg5[%c0_19, %c0_20, %c0_21] : memref<1x64x128xf32, #tpu.memory_space<vmem>>, vector<1x64x128xf32>
      %43 = vector.shape_cast %42 : vector<1x64x128xf32> to vector<64x128xf32>
      %44 = vector.shape_cast %41 : vector<64x128xf32> to vector<1x64x128xf32>
      tpu.vector_store %arg5[%c0_19, %c0_20, %c0_21], %44 {strides = array<i32>} : memref<1x64x128xf32, #tpu.memory_space<vmem>>, vector<1x64x128xf32>,
    } else {
    }
    return
  }
  func.func @transform_0(%arg0: i32, %arg1: i32) -> (i32, i32, i32) {
    %c0_i32 = arith.constant 0 : i32
    %c0_i32_0 = arith.constant 0 : i32
    return %arg0, %arg1, %c0_i32 : i32, i32, i32
  }
  func.func @transform_1(%arg0: i32, %arg1: i32) -> (i32, i32) {
    %c0_i32 = arith.constant 0 : i32
    %c0_i32_0 = arith.constant 0 : i32
    %c0_i32_1 = arith.constant 0 : i32
    return %c0_i32, %c0_i32_0 : i32, i32
  }
  func.func @transform_2(%arg0: i32, %arg1: i32) -> (i32, i32) {
    %c0_i32 = arith.constant 0 : i32
    %c0_i32_0 = arith.constant 0 : i32
    %c0_i32_1 = arith.constant 0 : i32
    return %c0_i32, %c0_i32_0 : i32, i32
  }
  func.func @transform_3(%arg0: i32, %arg1: i32) -> (i32, i32, i32) {
    %c0_i32 = arith.constant 0 : i32
    %c0_i32_0 = arith.constant 0 : i32
    %c0_i32_1 = arith.constant 0 : i32
    return %arg0, %c0_i32, %c0_i32_0 : i32, i32, i32
  }
}

module attributes {stable_mosaic.version = 11 : i64} {
  func.func @_dec_conv_kernel(%arg0: i32, %arg1: memref<1x18x18x128xbf16, #tpu.memory_space<vmem>>, %arg2: memref<9x128x128xbf16, #tpu.memory_space<vmem>>, %arg3: memref<1x128xf32, #tpu.memory_space<vmem>>, %arg4: memref<1x256x128xf32, #tpu.memory_space<vmem>>) attributes {dimension_semantics = [#tpu.dimension_semantics<parallel>], iteration_bounds = array<i64: 2>, scalar_prefetch = 0 : i64, scratch_operands = 0 : i64, tpu.core_type = #tpu.core_type<tc>, window_params = [{transform_indices = @transform_0, window_bounds = array<i64: 1, 18, 18, 128>}, {pipeline_mode = #tpu.pipeline_mode<synchronous>, transform_indices = @transform_1, window_bounds = array<i64: 9, 128, 128>}, {pipeline_mode = #tpu.pipeline_mode<synchronous>, transform_indices = @transform_2, window_bounds = array<i64: 1, 128>}, {transform_indices = @transform_3, window_bounds = array<i64: 1, 256, 128>}]} {
    %cst = arith.constant 0.000000e+00 : f32
    %0 = vector.broadcast %cst : f32 to vector<256x128xf32>
    %c0 = arith.constant 0 : index
    %c0_0 = arith.constant 0 : index
    %c0_1 = arith.constant 0 : index
    %c0_2 = arith.constant 0 : index
    %1 = vector.load %arg1[%c0, %c0_0, %c0_1, %c0_2] : memref<1x18x18x128xbf16, #tpu.memory_space<vmem>>, vector<1x16x16x128xbf16>
    %2 = vector.shape_cast %1 : vector<1x16x16x128xbf16> to vector<16x16x128xbf16>
    %3 = vector.shape_cast %2 : vector<16x16x128xbf16> to vector<256x128xbf16>
    %c0_3 = arith.constant 0 : index
    %c0_4 = arith.constant 0 : index
    %c0_5 = arith.constant 0 : index
    %4 = vector.load %arg2[%c0_3, %c0_4, %c0_5] : memref<9x128x128xbf16, #tpu.memory_space<vmem>>, vector<1x128x128xbf16>
    %5 = vector.shape_cast %4 : vector<1x128x128xbf16> to vector<128x128xbf16>
    %cst_6 = arith.constant dense<0.000000e+00> : vector<256x128xf32>
    %6 = tpu.matmul %3, %5, %cst_6 {dimension_numbers = #tpu.dot_dimension_numbers<[1], [0], [0], [1], [0, 0, 1, 1], [], []>} : vector<256x128xbf16>, vector<128x128xbf16>, vector<256x128xf32> -> vector<256x128xf32>
    %7 = arith.addf %0, %6 : vector<256x128xf32>
    %c0_7 = arith.constant 0 : index
    %c0_8 = arith.constant 0 : index
    %c1 = arith.constant 1 : index
    %c0_9 = arith.constant 0 : index
    %8 = vector.load %arg1[%c0_7, %c0_8, %c1, %c0_9] : memref<1x18x18x128xbf16, #tpu.memory_space<vmem>>, vector<1x16x16x128xbf16>
    %9 = vector.shape_cast %8 : vector<1x16x16x128xbf16> to vector<16x16x128xbf16>
    %10 = vector.shape_cast %9 : vector<16x16x128xbf16> to vector<256x128xbf16>
    %c1_10 = arith.constant 1 : index
    %c0_11 = arith.constant 0 : index
    %c0_12 = arith.constant 0 : index
    %11 = vector.load %arg2[%c1_10, %c0_11, %c0_12] : memref<9x128x128xbf16, #tpu.memory_space<vmem>>, vector<1x128x128xbf16>
    %12 = vector.shape_cast %11 : vector<1x128x128xbf16> to vector<128x128xbf16>
    %cst_13 = arith.constant dense<0.000000e+00> : vector<256x128xf32>
    %13 = tpu.matmul %10, %12, %cst_13 {dimension_numbers = #tpu.dot_dimension_numbers<[1], [0], [0], [1], [0, 0, 1, 1], [], []>} : vector<256x128xbf16>, vector<128x128xbf16>, vector<256x128xf32> -> vector<256x128xf32>
    %14 = arith.addf %7, %13 : vector<256x128xf32>
    %c0_14 = arith.constant 0 : index
    %c0_15 = arith.constant 0 : index
    %c2 = arith.constant 2 : index
    %c0_16 = arith.constant 0 : index
    %15 = vector.load %arg1[%c0_14, %c0_15, %c2, %c0_16] : memref<1x18x18x128xbf16, #tpu.memory_space<vmem>>, vector<1x16x16x128xbf16>
    %16 = vector.shape_cast %15 : vector<1x16x16x128xbf16> to vector<16x16x128xbf16>
    %17 = vector.shape_cast %16 : vector<16x16x128xbf16> to vector<256x128xbf16>
    %c2_17 = arith.constant 2 : index
    %c0_18 = arith.constant 0 : index
    %c0_19 = arith.constant 0 : index
    %18 = vector.load %arg2[%c2_17, %c0_18, %c0_19] : memref<9x128x128xbf16, #tpu.memory_space<vmem>>, vector<1x128x128xbf16>
    %19 = vector.shape_cast %18 : vector<1x128x128xbf16> to vector<128x128xbf16>
    %cst_20 = arith.constant dense<0.000000e+00> : vector<256x128xf32>
    %20 = tpu.matmul %17, %19, %cst_20 {dimension_numbers = #tpu.dot_dimension_numbers<[1], [0], [0], [1], [0, 0, 1, 1], [], []>} : vector<256x128xbf16>, vector<128x128xbf16>, vector<256x128xf32> -> vector<256x128xf32>
    %21 = arith.addf %14, %20 : vector<256x128xf32>
    %c0_21 = arith.constant 0 : index
    %c1_22 = arith.constant 1 : index
    %c0_23 = arith.constant 0 : index
    %c0_24 = arith.constant 0 : index
    %22 = vector.load %arg1[%c0_21, %c1_22, %c0_23, %c0_24] : memref<1x18x18x128xbf16, #tpu.memory_space<vmem>>, vector<1x16x16x128xbf16>
    %23 = vector.shape_cast %22 : vector<1x16x16x128xbf16> to vector<16x16x128xbf16>
    %24 = vector.shape_cast %23 : vector<16x16x128xbf16> to vector<256x128xbf16>
    %c3 = arith.constant 3 : index
    %c0_25 = arith.constant 0 : index
    %c0_26 = arith.constant 0 : index
    %25 = vector.load %arg2[%c3, %c0_25, %c0_26] : memref<9x128x128xbf16, #tpu.memory_space<vmem>>, vector<1x128x128xbf16>
    %26 = vector.shape_cast %25 : vector<1x128x128xbf16> to vector<128x128xbf16>
    %cst_27 = arith.constant dense<0.000000e+00> : vector<256x128xf32>
    %27 = tpu.matmul %24, %26, %cst_27 {dimension_numbers = #tpu.dot_dimension_numbers<[1], [0], [0], [1], [0, 0, 1, 1], [], []>} : vector<256x128xbf16>, vector<128x128xbf16>, vector<256x128xf32> -> vector<256x128xf32>
    %28 = arith.addf %21, %27 : vector<256x128xf32>
    %c0_28 = arith.constant 0 : index
    %c1_29 = arith.constant 1 : index
    %c1_30 = arith.constant 1 : index
    %c0_31 = arith.constant 0 : index
    %29 = vector.load %arg1[%c0_28, %c1_29, %c1_30, %c0_31] : memref<1x18x18x128xbf16, #tpu.memory_space<vmem>>, vector<1x16x16x128xbf16>
    %30 = vector.shape_cast %29 : vector<1x16x16x128xbf16> to vector<16x16x128xbf16>
    %31 = vector.shape_cast %30 : vector<16x16x128xbf16> to vector<256x128xbf16>
    %c4 = arith.constant 4 : index
    %c0_32 = arith.constant 0 : index
    %c0_33 = arith.constant 0 : index
    %32 = vector.load %arg2[%c4, %c0_32, %c0_33] : memref<9x128x128xbf16, #tpu.memory_space<vmem>>, vector<1x128x128xbf16>
    %33 = vector.shape_cast %32 : vector<1x128x128xbf16> to vector<128x128xbf16>
    %cst_34 = arith.constant dense<0.000000e+00> : vector<256x128xf32>
    %34 = tpu.matmul %31, %33, %cst_34 {dimension_numbers = #tpu.dot_dimension_numbers<[1], [0], [0], [1], [0, 0, 1, 1], [], []>} : vector<256x128xbf16>, vector<128x128xbf16>, vector<256x128xf32> -> vector<256x128xf32>
    %35 = arith.addf %28, %34 : vector<256x128xf32>
    %c0_35 = arith.constant 0 : index
    %c1_36 = arith.constant 1 : index
    %c2_37 = arith.constant 2 : index
    %c0_38 = arith.constant 0 : index
    %36 = vector.load %arg1[%c0_35, %c1_36, %c2_37, %c0_38] : memref<1x18x18x128xbf16, #tpu.memory_space<vmem>>, vector<1x16x16x128xbf16>
    %37 = vector.shape_cast %36 : vector<1x16x16x128xbf16> to vector<16x16x128xbf16>
    %38 = vector.shape_cast %37 : vector<16x16x128xbf16> to vector<256x128xbf16>
    %c5 = arith.constant 5 : index
    %c0_39 = arith.constant 0 : index
    %c0_40 = arith.constant 0 : index
    %39 = vector.load %arg2[%c5, %c0_39, %c0_40] : memref<9x128x128xbf16, #tpu.memory_space<vmem>>, vector<1x128x128xbf16>
    %40 = vector.shape_cast %39 : vector<1x128x128xbf16> to vector<128x128xbf16>
    %cst_41 = arith.constant dense<0.000000e+00> : vector<256x128xf32>
    %41 = tpu.matmul %38, %40, %cst_41 {dimension_numbers = #tpu.dot_dimension_numbers<[1], [0], [0], [1], [0, 0, 1, 1], [], []>} : vector<256x128xbf16>, vector<128x128xbf16>, vector<256x128xf32> -> vector<256x128xf32>
    %42 = arith.addf %35, %41 : vector<256x128xf32>
    %c0_42 = arith.constant 0 : index
    %c2_43 = arith.constant 2 : index
    %c0_44 = arith.constant 0 : index
    %c0_45 = arith.constant 0 : index
    %43 = vector.load %arg1[%c0_42, %c2_43, %c0_44, %c0_45] : memref<1x18x18x128xbf16, #tpu.memory_space<vmem>>, vector<1x16x16x128xbf16>
    %44 = vector.shape_cast %43 : vector<1x16x16x128xbf16> to vector<16x16x128xbf16>
    %45 = vector.shape_cast %44 : vector<16x16x128xbf16> to vector<256x128xbf16>
    %c6 = arith.constant 6 : index
    %c0_46 = arith.constant 0 : index
    %c0_47 = arith.constant 0 : index
    %46 = vector.load %arg2[%c6, %c0_46, %c0_47] : memref<9x128x128xbf16, #tpu.memory_space<vmem>>, vector<1x128x128xbf16>
    %47 = vector.shape_cast %46 : vector<1x128x128xbf16> to vector<128x128xbf16>
    %cst_48 = arith.constant dense<0.000000e+00> : vector<256x128xf32>
    %48 = tpu.matmul %45, %47, %cst_48 {dimension_numbers = #tpu.dot_dimension_numbers<[1], [0], [0], [1], [0, 0, 1, 1], [], []>} : vector<256x128xbf16>, vector<128x128xbf16>, vector<256x128xf32> -> vector<256x128xf32>
    %49 = arith.addf %42, %48 : vector<256x128xf32>
    %c0_49 = arith.constant 0 : index
    %c2_50 = arith.constant 2 : index
    %c1_51 = arith.constant 1 : index
    %c0_52 = arith.constant 0 : index
    %50 = vector.load %arg1[%c0_49, %c2_50, %c1_51, %c0_52] : memref<1x18x18x128xbf16, #tpu.memory_space<vmem>>, vector<1x16x16x128xbf16>
    %51 = vector.shape_cast %50 : vector<1x16x16x128xbf16> to vector<16x16x128xbf16>
    %52 = vector.shape_cast %51 : vector<16x16x128xbf16> to vector<256x128xbf16>
    %c7 = arith.constant 7 : index
    %c0_53 = arith.constant 0 : index
    %c0_54 = arith.constant 0 : index
    %53 = vector.load %arg2[%c7, %c0_53, %c0_54] : memref<9x128x128xbf16, #tpu.memory_space<vmem>>, vector<1x128x128xbf16>
    %54 = vector.shape_cast %53 : vector<1x128x128xbf16> to vector<128x128xbf16>
    %cst_55 = arith.constant dense<0.000000e+00> : vector<256x128xf32>
    %55 = tpu.matmul %52, %54, %cst_55 {dimension_numbers = #tpu.dot_dimension_numbers<[1], [0], [0], [1], [0, 0, 1, 1], [], []>} : vector<256x128xbf16>, vector<128x128xbf16>, vector<256x128xf32> -> vector<256x128xf32>
    %56 = arith.addf %49, %55 : vector<256x128xf32>
    %c0_56 = arith.constant 0 : index
    %c2_57 = arith.constant 2 : index
    %c2_58 = arith.constant 2 : index
    %c0_59 = arith.constant 0 : index
    %57 = vector.load %arg1[%c0_56, %c2_57, %c2_58, %c0_59] : memref<1x18x18x128xbf16, #tpu.memory_space<vmem>>, vector<1x16x16x128xbf16>
    %58 = vector.shape_cast %57 : vector<1x16x16x128xbf16> to vector<16x16x128xbf16>
    %59 = vector.shape_cast %58 : vector<16x16x128xbf16> to vector<256x128xbf16>
    %c8 = arith.constant 8 : index
    %c0_60 = arith.constant 0 : index
    %c0_61 = arith.constant 0 : index
    %60 = vector.load %arg2[%c8, %c0_60, %c0_61] : memref<9x128x128xbf16, #tpu.memory_space<vmem>>, vector<1x128x128xbf16>
    %61 = vector.shape_cast %60 : vector<1x128x128xbf16> to vector<128x128xbf16>
    %cst_62 = arith.constant dense<0.000000e+00> : vector<256x128xf32>
    %62 = tpu.matmul %59, %61, %cst_62 {dimension_numbers = #tpu.dot_dimension_numbers<[1], [0], [0], [1], [0, 0, 1, 1], [], []>} : vector<256x128xbf16>, vector<128x128xbf16>, vector<256x128xf32> -> vector<256x128xf32>
    %63 = arith.addf %56, %62 : vector<256x128xf32>
    %c0_63 = arith.constant 0 : index
    %c0_64 = arith.constant 0 : index
    %64 = vector.load %arg3[%c0_63, %c0_64] : memref<1x128xf32, #tpu.memory_space<vmem>>, vector<1x128xf32>
    %65 = vector.broadcast %64 : vector<1x128xf32> to vector<256x128xf32>
    %66 = arith.addf %63, %65 : vector<256x128xf32>
    %cst_65 = arith.constant -1.000000e+00 : f32
    %cst_66 = arith.constant 1.000000e+00 : f32
    %67 = vector.broadcast %cst_65 : f32 to vector<256x128xf32>
    %68 = arith.maximumf %67, %66 : vector<256x128xf32>
    %69 = vector.broadcast %cst_66 : f32 to vector<256x128xf32>
    %70 = arith.minimumf %69, %68 : vector<256x128xf32>
    %cst_67 = arith.constant 1.000000e+00 : f32
    %71 = vector.broadcast %cst_67 : f32 to vector<256x128xf32>
    %72 = arith.addf %70, %71 : vector<256x128xf32>
    %cst_68 = arith.constant 5.000000e-01 : f32
    %73 = vector.broadcast %cst_68 : f32 to vector<256x128xf32>
    %74 = arith.mulf %72, %73 : vector<256x128xf32>
    %c0_69 = arith.constant 0 : index
    %c0_70 = arith.constant 0 : index
    %c0_71 = arith.constant 0 : index
    %75 = vector.load %arg4[%c0_69, %c0_70, %c0_71] : memref<1x256x128xf32, #tpu.memory_space<vmem>>, vector<1x256x128xf32>
    %76 = vector.shape_cast %75 : vector<1x256x128xf32> to vector<256x128xf32>
    %77 = vector.shape_cast %74 : vector<256x128xf32> to vector<1x256x128xf32>
    tpu.vector_store %arg4[%c0_69, %c0_70, %c0_71], %77 {strides = array<i32>} : memref<1x256x128xf32, #tpu.memory_space<vmem>>, vector<1x256x128xf32>,
    return
  }
  func.func @transform_0(%arg0: i32) -> (i32, i32, i32, i32) {
    %c0_i32 = arith.constant 0 : i32
    %c0_i32_0 = arith.constant 0 : i32
    %c0_i32_1 = arith.constant 0 : i32
    %c0_i32_2 = arith.constant 0 : i32
    return %arg0, %c0_i32, %c0_i32_0, %c0_i32_1 : i32, i32, i32, i32
  }
  func.func @transform_1(%arg0: i32) -> (i32, i32, i32) {
    %c0_i32 = arith.constant 0 : i32
    %c0_i32_0 = arith.constant 0 : i32
    %c0_i32_1 = arith.constant 0 : i32
    %c0_i32_2 = arith.constant 0 : i32
    return %c0_i32, %c0_i32_0, %c0_i32_1 : i32, i32, i32
  }
  func.func @transform_2(%arg0: i32) -> (i32, i32) {
    %c0_i32 = arith.constant 0 : i32
    %c0_i32_0 = arith.constant 0 : i32
    %c0_i32_1 = arith.constant 0 : i32
    return %c0_i32, %c0_i32_0 : i32, i32
  }
  func.func @transform_3(%arg0: i32) -> (i32, i32, i32) {
    %c0_i32 = arith.constant 0 : i32
    %c0_i32_0 = arith.constant 0 : i32
    %c0_i32_1 = arith.constant 0 : i32
    return %arg0, %c0_i32, %c0_i32_0 : i32, i32, i32
  }
}

</mosaic_0001>

<bundles_post_ra>
// kernel: compression_autoencoder_forward.2
= control target key start
LH: loop header
LB: loop body
LE: loop exit
PB: predicated region body
PF: predicated region fallthrough
CT: control target
= control target key end

     0   :  { %s708_s12 = smov 0   ;;  %s710_s13 = smov 0   ;;  %s934_s0 = inlined_call_operand.vmem [shape: bf16[2,64,36], index: 0, kind: input, shape index: {}]   ;;  %s935_s1 = inlined_call_operand.vmem [shape: bf16[36,128], index: 1, kind: input, shape index: {}]   ;;  %s936_s2 = inlined_call_operand.vmem [shape: f32[1,128], index: 2, kind: input, shape index: {}]   ;;  %s937_s3 = inlined_call_operand.vmem [shape: f32[2,64,128], index: 3, kind: output, shape index: {}]  }
   0x1   :  { %s712_s14 = smov 0  }
   0x2 LB: > { %s25_s15 = sadd.s32 1, %s681_s13  ;;  %p517_p0 = scmp.ge.s32.totalorder %s685_s14, 1  ;;  %s685_s14 = sphi %s712_s14, %s13_s14   ;;  %s681_s13 = sphi %s710_s13, %s955_s13   ;;  %s677_s12 = sphi %s708_s12, %s954_s12  }
   0x3   : > { %p27_p1 = scmp.ge.s32.totalorder %s25_s15, 2  ;;  %p156_p2 = scmp.lt.s32.totalorder %s685_s14, 3 }
   0x5   : > { %s957_s15 = smov (%p27_p1, %s25_s15), 0  ;;  %p157_p3 = pnand %p517_p0, %p156_p2 }
   0x6   : > { %p185_p4 = scmp.lt.s32.totalorder (!%p157_p3), %s677_s12, 1 }
   0x7   : > { %160 = sbr.rel (%p157_p3) target bundleno = 245 (0xf5), region = 32 }
   0xc   : > { %v212_v0 = vld [vmem:[%s935_s1 + $0x10] sm:$0x3]  ;;  %vm265_vm0 = vcmask 1041408   ;;  %s959_s12 = smov (!%p185_p4, %s677_s12), 1  ;;  %v559_v4 = vld [vmem:[%s935_s1 + $0x8] sm:$0xff]  ;;  %v558_v5 = vld [vmem:[%s935_s1] sm:$0xff] }
   0xd   : > { %v246_v1 = vunpack.c.l.b16 %v212_v0  ;;  %s552_s20 = sshll.u32 %s959_s12, 5  ;;  %vm252_vm1 = vcmask 293888   ;;  %v658_v12 = vld [vmem:[%s936_s2] ss:$0 sm:$0xff]  ;;  %v687_v61 = vmov 255.0   ;;  %s553_s28 = sshll.u32 %s959_s12, 6 }
   0xe   : > { %s192_s25 = scalar_lea.vmem %s934_s0, %s552_s20  ;;  %659 = vrcp.f32 %v687_v61  ;;  %s198_s4 = scalar_lea.vmem %s937_s3, %s553_s28 }
   0xf   : > { %v249_v2 = vpack.c.b16 %v246_v1, %v246_v1  ;;  %v554_v6 = vld [vmem:[%s192_s25] sm:$0xff]  ;;  %v555_v7 = vld [vmem:[%s192_s25 + $0x8] sm:$0xff]  ;;  %v556_v8 = vld [vmem:[%s192_s25 + $0x10] sm:$0xff] }
  0x10   : > { %v557_v9 = vld [vmem:[%s192_s25 + $0x18] sm:$0xff] }
  0x11   : > { %v267_v3 = vsel %vm265_vm0, %v249_v2, 0 }
  0x12   : > { %274 = vmatpush.bf16.msra.mxu0 %v267_v3  ;;  %560 = vmatpush.bf16.msra.mxu1 %v267_v3 }
  0x13   : > { %561 = vmatpush.bf16.msra.mxu2 %v267_v3  ;;  %562 = vmatpush.bf16.msra.mxu3 %v267_v3 }
  0x14   : > { %v660_v0 = vpop.eup %659 }
  0x15   : > { %v404_v1 = vmul.f32 255.0, %v660_v0  ;;  %vm408_vm5 = vweird.f32 %v660_v0 }
  0x16   : > { %275 = vmatpush.bf16.msra.mxu0 %v559_v4  ;;  %563 = vmatpush.bf16.msra.mxu1 %v559_v4 }
  0x17   : > { %564 = vmatpush.bf16.msra.mxu2 %v559_v4  ;;  %565 = vmatpush.bf16.msra.mxu3 %v559_v4  ;;  %v405_v2 = vsub.f32 1.0, %v404_v1 }
  0x1a   : > { %276 = vmatpush.bf16.msra.mxu0 %v558_v5  ;;  %566 = vmatpush.bf16.msra.mxu1 %v558_v5 }
  0x1b   : > { %567 = vmatpush.bf16.msra.mxu2 %v558_v5  ;;  %568 = vmatpush.bf16.msra.mxu3 %v558_v5  ;;  %v406_v5 = vmul.f32 %v660_v0, %v405_v2 }
  0x1d   : > { %546 = vmatmul.msk.bf16.vlgmr.msra.gmra.mxu0 %vm252_vm1, %v554_v6  ;;  %547 = vmatmul.msk.bf16.vlgmr.msra.gmra.mxu1 %vm252_vm1, %v555_v7 }
  0x1e   : > { %548 = vmatmul.msk.bf16.vlgmr.msra.gmra.mxu2 %vm252_vm1, %v556_v8  ;;  %549 = vmatmul.msk.bf16.vlgmr.msra.gmra.mxu3 %vm252_vm1, %v557_v9 }
  0x9a   : > { %v278_v10 = vpop.f32.mrf.mxu0  ;;  %v283_v11 = vpop.f32.mrf.mxu1 }
  0x9b   : > { %v279_v15 = vadd.f32 %v658_v12, %v278_v10  ;;  %v284_v16 = vadd.f32 %v658_v12, %v283_v11  ;;  %v407_v10 = vadd.f32 %v660_v0, %v406_v5 }
  0x9d   : > { %v744_v23 = vmax.f32 %v279_v15, 0.0  ;;  %v746_v24 = vmax.f32 %v284_v16, 0.0 }
  0xa1   : > { %v288_v13 = vpop.f32.mrf.mxu2  ;;  %v293_v14 = vpop.f32.mrf.mxu3 }
  0xa2   : > { %v289_v17 = vadd.f32 %v658_v12, %v288_v13  ;;  %v294_v18 = vadd.f32 %v658_v12, %v293_v14  ;;  %v280_v19 = vpop.f32.mrf.mxu0  ;;  %v285_v20 = vpop.f32.mrf.mxu1 }
  0xa3   : > { %v281_v21 = vadd.f32 %v658_v12, %v280_v19  ;;  %v286_v22 = vadd.f32 %v658_v12, %v285_v20 }
  0xa4   : > { %v748_v25 = vmax.f32 %v289_v17, 0.0  ;;  %v750_v26 = vmax.f32 %v294_v18, 0.0 }
  0xa5   : > { %v752_v31 = vmax.f32 %v281_v21, 0.0  ;;  %v754_v32 = vmax.f32 %v286_v22, 0.0 }
  0xa6   : > { %v328_v35 = vmin.f32 %v744_v23, %v748_v25  ;;  %v330_v36 = vmin.f32 %v746_v24, %v750_v26  ;;  %v341_v37 = vmax.f32 %v744_v23, %v748_v25  ;;  %v343_v38 = vmax.f32 %v746_v24, %v750_v26 }
  0xa9   : > { %v290_v27 = vpop.f32.mrf.mxu2  ;;  %v295_v28 = vpop.f32.mrf.mxu3 }
  0xaa   : > { %v291_v29 = vadd.f32 %v658_v12, %v290_v27  ;;  %v296_v30 = vadd.f32 %v658_v12, %v295_v28 }
  0xac   : > { %v756_v33 = vmax.f32 %v291_v29, 0.0  ;;  %v758_v34 = vmax.f32 %v296_v30, 0.0 }
  0xae   : > { %v329_v39 = vmin.f32 %v752_v31, %v756_v33  ;;  %v331_v40 = vmin.f32 %v754_v32, %v758_v34  ;;  %v342_v41 = vmax.f32 %v752_v31, %v756_v33  ;;  %v344_v42 = vmax.f32 %v754_v32, %v758_v34 }
  0xb0   : > { %v332_v43 = vmin.f32 %v328_v35, %v329_v39  ;;  %v333_v44 = vmin.f32 %v330_v36, %v331_v40  ;;  %v345_v45 = vmax.f32 %v341_v37, %v342_v41  ;;  %v346_v46 = vmax.f32 %v343_v38, %v344_v42 }
  0xb2   : > { %v334_v47 = vmin.f32 %v332_v43, %v333_v44  ;;  %v347_v48 = vmax.f32 %v345_v45, %v346_v46 }
  0xb4   : > { %v335_v49 = vrot.slane %v334_v47, 4  ;;  %v348_v50 = vrot.slane %v347_v48, 4 }
  0xb6   : > { %v336_v51 = vmin.f32 %v334_v47, %v335_v49  ;;  %v349_v52 = vmax.f32 %v347_v48, %v348_v50 }
  0xb8   : > { %v337_v53 = vrot.slane %v336_v51, 2  ;;  %v350_v54 = vrot.slane %v349_v52, 2 }
  0xba   : > { %v338_v55 = vmin.f32 %v336_v51, %v337_v53  ;;  %v351_v56 = vmax.f32 %v349_v52, %v350_v54 }
  0xbc   : > { %v339_v57 = vrot.slane %v338_v55, 1  ;;  %v352_v58 = vrot.slane %v351_v56, 1 }
  0xbe   : > { %v776_v59 = vmin.f32 %v338_v55, %v339_v57  ;;  %v353_v60 = vmax.f32 %v351_v56, %v352_v58 }
  0xc0   : > { %v779_v62 = vsub.f32 %v353_v60, %v776_v59  ;;  %v357_v11 = vsub.f32 %v744_v23, %v776_v59  ;;  %v358_v13 = vsub.f32 %v752_v31, %v776_v59  ;;  %v359_v14 = vsub.f32 %v746_v24, %v776_v59 }
  0xc1   : > { %v360_v15 = vsub.f32 %v754_v32, %v776_v59  ;;  %v361_v17 = vsub.f32 %v748_v25, %v776_v59  ;;  %v362_v18 = vsub.f32 %v756_v33, %v776_v59  ;;  %v363_v20 = vsub.f32 %v750_v26, %v776_v59 }
  0xc2   : > { %vm355_vm2 = vcmp.gt.f32.partialorder %v779_v62, 0.0  ;;  %v364_v21 = vsub.f32 %v758_v34, %v776_v59  ;;  %v799_v23 = vsel %vm408_vm5, %v660_v0, %v407_v10 }
  0xc3   : > { %v356_v63 = vsel %vm355_vm2, %v779_v62, 1.0 }
  0xc4   : > { %661 = vrcp.f32 %v356_v63  ;;  %v376_v7 = vand.u32 2147483648, %v356_v63  ;;  %v374_v9 = vand.u32 2147483647, %v356_v63  ;;  %vm370_vm4 = vweird.f32 %v356_v63 }
  0xc6   : > { %v377_v16 = vor.u32 1.1754944e-38, %v376_v7  ;;  %vm375_vm7 = vcmp.eq.f32.partialorder %v374_v9, 8.507059e+37 }
  0xca   : > { %v662_v3 = vpop.eup %661 }
  0xcb   : > { %v366_v4 = vmul.f32 %v662_v3, %v356_v63  ;;  %vm371_vm3 = vweird.f32 %v662_v3 }
  0xcc   : > { %vm372_vm6 = vmor %vm370_vm4, %vm371_vm3 }
  0xcd   : > { %v367_v6 = vsub.f32 1.0, %v366_v4 }
  0xcf   : > { %v368_v8 = vmul.f32 %v662_v3, %v367_v6 }
  0xd1   : > { %v369_v12 = vadd.f32 %v662_v3, %v368_v8 }
  0xd3   : > { %v373_v19 = vsel %vm372_vm6, %v662_v3, %v369_v12 }
  0xd4   : > { %v378_v22 = vsel %vm375_vm7, %v377_v16, %v373_v19 }
  0xd5   : > { %v379_v24 = vmul.f32 %v378_v22, %v357_v11  ;;  %v380_v27 = vmul.f32 %v378_v22, %v358_v13  ;;  %v381_v28 = vmul.f32 %v378_v22, %v359_v14  ;;  %v382_v29 = vmul.f32 %v378_v22, %v360_v15 }
  0xd6   : > { %v383_v30 = vmul.f32 %v378_v22, %v361_v17  ;;  %v384_v25 = vmul.f32 %v378_v22, %v362_v18  ;;  %v385_v31 = vmul.f32 %v378_v22, %v363_v20  ;;  %v386_v32 = vmul.f32 %v378_v22, %v364_v21 }
  0xd7   : > { %v801_v33 = vmul.f32 255.0, %v379_v24  ;;  %v803_v35 = vmul.f32 255.0, %v380_v27  ;;  %v805_v36 = vmul.f32 255.0, %v381_v28  ;;  %v807_v26 = vmul.f32 255.0, %v382_v29 }
  0xd8   : > { %v809_v34 = vmul.f32 255.0, %v383_v30  ;;  %v811_v37 = vmul.f32 255.0, %v384_v25  ;;  %v813_v38 = vmul.f32 255.0, %v385_v31  ;;  %v815_v39 = vmul.f32 255.0, %v386_v32 }
  0xd9   : > { %v569_v40 = vand.u32 2147483647, %v801_v33  ;;  %v571_v41 = vcvt.f32.s32 %v801_v33  ;;  %v574_v42 = vand.u32 2147483648, %v801_v33  ;;  %v577_v43 = vand.u32 2147483647, %v803_v35 }
  0xda   : > { %v579_v44 = vcvt.f32.s32 %v803_v35  ;;  %v582_v45 = vand.u32 2147483648, %v803_v35  ;;  %v585_v46 = vand.u32 2147483647, %v805_v36  ;;  %v587_v47 = vcvt.f32.s32 %v805_v36 }
  0xdb   : > { %vm825_vm8 = vcmp.lt.f32.partialorder %v569_v40, 8388608.0  ;;  %v572_v49 = vcvt.s32.f32 %v571_v41  ;;  %vm829_vm9 = vcmp.lt.f32.partialorder %v577_v43, 8388608.0  ;;  %v590_v51 = vand.u32 2147483648, %v805_v36 }
  0xdc   : > { %v580_v52 = vcvt.s32.f32 %v579_v44  ;;  %vm834_vm10 = vcmp.lt.f32.partialorder %v585_v46, 8388608.0  ;;  %v588_v54 = vcvt.s32.f32 %v587_v47  ;;  %v593_v55 = vand.u32 2147483647, %v807_v26 }
  0xdd   : > { %v573_v56 = vand.u32 2147483647, %v572_v49  ;;  %v595_v57 = vcvt.f32.s32 %v807_v26  ;;  %v598_v58 = vand.u32 2147483648, %v807_v26  ;;  %v601_v60 = vand.u32 2147483647, %v809_v34 }
  0xde   : > { %v581_v61 = vand.u32 2147483647, %v580_v52  ;;  %v589_v63 = vand.u32 2147483647, %v588_v54  ;;  %vm842_vm11 = vcmp.lt.f32.partialorder %v593_v55, 8388608.0  ;;  %v603_v1 = vcvt.f32.s32 %v809_v34 }
  0xdf   : > { %v575_v2 = vor.u32 %v574_v42, %v573_v56  ;;  %v596_v3 = vcvt.s32.f32 %v595_v57  ;;  %vm847_vm12 = vcmp.lt.f32.partialorder %v601_v60, 8388608.0  ;;  %v606_v5 = vand.u32 2147483648, %v809_v34 }
  0xe0   : > { %v583_v6 = vor.u32 %v582_v45, %v581_v61  ;;  %v591_v7 = vor.u32 %v590_v51, %v589_v63  ;;  %v604_v8 = vcvt.s32.f32 %v603_v1  ;;  %v609_v9 = vand.u32 2147483647, %v811_v37 }
  0xe1   : > { %v576_v10 = vsel %vm825_vm8, %v575_v2, %v801_v33  ;;  %v597_v11 = vand.u32 2147483647, %v596_v3  ;;  %v611_v12 = vcvt.f32.s32 %v811_v37  ;;  %v614_v13 = vand.u32 2147483648, %v811_v37 }
  0xe2   : > { %v584_v14 = vsel %vm829_vm9, %v583_v6, %v803_v35  ;;  %v592_v15 = vsel %vm834_vm10, %v591_v7, %v805_v36  ;;  %v605_v16 = vand.u32 2147483647, %v604_v8  ;;  %vm864_vm13 = vcmp.lt.f32.partialorder %v609_v9, 8388608.0 }
  0xe3   : > { %v599_v18 = vor.u32 %v598_v58, %v597_v11  ;;  %v612_v19 = vcvt.s32.f32 %v611_v12  ;;  %v617_v20 = vand.u32 2147483647, %v813_v38  ;;  %v619_v21 = vcvt.f32.s32 %v813_v38 }
  0xe4   : > { %v607_v22 = vor.u32 %v606_v5, %v605_v16  ;;  %v622_v24 = vand.u32 2147483648, %v813_v38  ;;  %v625_v27 = vand.u32 2147483647, %v815_v39  ;;  %v627_v28 = vcvt.f32.s32 %v815_v39 }
  0xe5   : > { %v600_v29 = vsel %vm842_vm11, %v599_v18, %v807_v26  ;;  %v613_v30 = vand.u32 2147483647, %v612_v19  ;;  %vm876_vm14 = vcmp.lt.f32.partialorder %v617_v20, 8388608.0  ;;  %v620_v31 = vcvt.s32.f32 %v619_v21 }
  0xe6   : > { %v608_v32 = vsel %vm847_vm12, %v607_v22, %v809_v34  ;;  %vm883_vm15 = vcmp.lt.f32.partialorder %v625_v27, 8388608.0  ;;  %v628_v35 = vcvt.s32.f32 %v627_v28  ;;  %v630_v36 = vand.u32 2147483648, %v815_v39 }
  0xe7   : > { %v615_v40 = vor.u32 %v614_v13, %v613_v30  ;;  %v621_v26 = vand.u32 2147483647, %v620_v31  ;;  %v410_v41 = vmul.f32 %v576_v10, %v799_v23  ;;  %v411_v42 = vmul.f32 %v584_v14, %v799_v23 }
  0xe8   : > { %v629_v43 = vand.u32 2147483647, %v628_v35  ;;  %v412_v44 = vmul.f32 %v592_v15, %v799_v23  ;;  %v413_v45 = vmul.f32 %v600_v29, %v799_v23  ;;  %v414_v34 = vmul.f32 %v608_v32, %v799_v23 }
  0xe9   : > { %v616_v46 = vsel %vm864_vm13, %v615_v40, %v811_v37  ;;  %v623_v47 = vor.u32 %v622_v24, %v621_v26  ;;  %v418_v48 = vmul.f32 %v410_v41, %v779_v62  ;;  %v419_v49 = vmul.f32 %v411_v42, %v779_v62 }
  0xea   : > { %v631_v50 = vor.u32 %v630_v36, %v629_v43  ;;  %v415_v51 = vmul.f32 %v616_v46, %v799_v23  ;;  %v420_v52 = vmul.f32 %v412_v44, %v779_v62  ;;  %v421_v53 = vmul.f32 %v413_v45, %v779_v62 }
  0xeb   : > { %v624_v37 = vsel %vm876_vm14, %v623_v47, %v813_v38  ;;  %v422_v54 = vmul.f32 %v414_v34, %v779_v62  ;;  %v426_v55 = vadd.f32 %v418_v48, %v776_v59  ;;  %v427_v56 = vadd.f32 %v419_v49, %v776_v59 }
  0xec   : > { %v632_v57 = vsel %vm883_vm15, %v631_v50, %v815_v39  ;;  %v416_v58 = vmul.f32 %v624_v37, %v799_v23  ;;  %v423_v60 = vmul.f32 %v415_v51, %v779_v62  ;;  %v428_v61 = vadd.f32 %v420_v52, %v776_v59 }
  0xed   : > { %v417_v63 = vmul.f32 %v632_v57, %v799_v23  ;;  %v429_v38 = vadd.f32 %v421_v53, %v776_v59  ;;  %v430_v0 = vadd.f32 %v422_v54, %v776_v59  ;;  %434 = vst [vmem:[%s198_s4] sm:$0xff] %v426_v55 }
  0xee   : > { %v424_v1 = vmul.f32 %v416_v58, %v779_v62  ;;  %v431_v2 = vadd.f32 %v423_v60, %v776_v59  ;;  %435 = vst [vmem:[%s198_s4 + $0x8] sm:$0xff] %v427_v56 }
  0xef   : > { %v425_v39 = vmul.f32 %v417_v63, %v779_v62  ;;  %436 = vst [vmem:[%s198_s4 + $0x10] sm:$0xff] %v428_v61 }
  0xf0   : > { %v432_v3 = vadd.f32 %v424_v1, %v776_v59  ;;  %437 = vst [vmem:[%s198_s4 + $0x18] sm:$0xff] %v429_v38 }
  0xf1   : > { %v433_v4 = vadd.f32 %v425_v39, %v776_v59  ;;  %438 = vst [vmem:[%s198_s4 + $0x20] sm:$0xff] %v430_v0 }
  0xf2   : > { %439 = vst [vmem:[%s198_s4 + $0x28] sm:$0xff] %v431_v2 }
  0xf3   : > { %440 = vst [vmem:[%s198_s4 + $0x30] sm:$0xff] %v432_v3 }
  0xf4   : > { %441 = vst [vmem:[%s198_s4 + $0x38] sm:$0xff] %v433_v4 }
  0xf5 PF: > { %s13_s14 = sadd.s32 1, %s685_s14   ;;  %s954_s12 = smov %s681_s13 }
  0xf6   : > { %p10_p5 = scmp.ge.s32.totalorder %s13_s14, 4   ;;  %s955_s13 = smov %s957_s15 }
  0xf8   :  { %12 = sbr.rel (!%p10_p5) target bundleno = 2 (0x2), region = 67 }

// kernel: compression_autoencoder_forward.3
= control target key start
LH: loop header
LB: loop body
LE: loop exit
PB: predicated region body
PF: predicated region fallthrough
CT: control target
= control target key end

     0   :  { %s5710_s12 = smov 0   ;;  %s7175_s0 = inlined_call_operand.vmem [shape: bf16[2,18,18,128], index: 0, kind: input, shape index: {}]   ;;  %s7176_s1 = inlined_call_operand.vmem [shape: bf16[9,128,128], index: 1, kind: input, shape index: {}]   ;;  %s7177_s2 = inlined_call_operand.vmem [shape: f32[1,128], index: 2, kind: input, shape index: {}]   ;;  %s7178_s3 = inlined_call_operand.vmem [shape: f32[2,256,128], index: 3, kind: output, shape index: {}]  }
   0x1 LB: > { %s4583_s13 = sadd.s32 4294967295, %s5688_s12   ;;  %p4587_p0 = scmp.ge.s32.totalorder %s5688_s12, 1  ;;  %s5688_s12 = sphi %s5710_s12, %s13_s12  }
   0x2   : > { %p137_p1 = scmp.lt.s32.totalorder %s5688_s12, 3 }
   0x4   : > { %p138_p2 = pnand %p4587_p0, %p137_p1 }
   0x6   : > { %141 = sbr.rel (%p138_p2) target bundleno = 762 (0x2fa), region = 32 }
   0xb   : > { %v5505_v0 = vld [vmem:[%s7176_s1 + $0x78] sm:$0xff]  ;;  %p161_p3 = scmp.lt.s32.totalorder %s4583_s13, 1  ;;  %v5504_v1 = vld [vmem:[%s7176_s1 + $0x70] sm:$0xff]  ;;  %v5503_v2 = vld [vmem:[%s7176_s1 + $0x68] sm:$0xff]  ;;  %vm235_vm0 = vsmask.f32 3328 }
   0xc   : > { %5594 = vmatpush.bf16.msra.mxu1 %v5505_v0  ;;  %5595 = vmatpush.bf16.msra.mxu2 %v5505_v0  ;;  %vm236_vm1 = vsmask.f32 7440  ;;  %v5502_v6 = vld [vmem:[%s7176_s1 + $0x60] sm:$0xff]  ;;  %v5501_v35 = vld [vmem:[%s7176_s1 + $0x58] sm:$0xff]  ;;  %v5500_v54 = vld [vmem:[%s7176_s1 + $0x50] sm:$0xff]  ;;  %vm1121_vm3 = vcmask 1042432  }
   0xd   : > { %s7188_s13 = smov (!%p161_p3, %s4583_s13), 1  ;;  %5596 = vmatpush.bf16.msra.mxu3 %v5505_v0  ;;  %751 = vmatpush.bf16.msra.mxu0 %v5505_v0  ;;  %vm5748_vm2 = vmor %vm235_vm0, %vm236_vm1  ;;  %vm1122_vm4 = vcmask 1046532  }
   0xe   : > { %s5618_s18 = smul.u32 216, %s7188_s13  ;;  %vm6048_vm5 = vmor %vm1121_vm3, %vm1122_vm4  ;;  %s5473_s19 = sshll.u32 %s7188_s13, 8 }
   0xf   : > { %s6894_s13 = scalar_lea.vmem %s7178_s3, %s5473_s19 }
  0x10   : > { %5597 = vmatpush.bf16.msra.mxu1 %v5504_v1  ;;  %5598 = vmatpush.bf16.msra.mxu2 %v5504_v1  ;;  %s5733_s23 = scalar_lea.vmem %s7175_s0, %s5618_s18 }
  0x11   : > { %5599 = vmatpush.bf16.msra.mxu3 %v5504_v1  ;;  %752 = vmatpush.bf16.msra.mxu0 %v5504_v1  ;;  %v179_v3 = vld [vmem:[%s5733_s23 + $0x30] sm:$0xf]  ;;  %v180_v4 = vld [vmem:[%s5733_s23 + $0x34] sm:$0xf]  ;;  %v223_v5 = vld [vmem:[%s5733_s23 + $0x38] sm:$0x1] }
  0x12   : > { %v335_v7 = vshrl.u32 %v179_v3, 16  ;;  %v338_v8 = vshll.u32 %v179_v3, 16  ;;  %v344_v9 = vshll.u32 %v180_v4, 16  ;;  %v348_v10 = vshrl.u32 %v180_v4, 16  ;;  %v187_v11 = vld [vmem:[%s5733_s23 + $0x60] sm:$0xf] }
  0x13   : > { %v354_v12 = vshll.u32 %v223_v5, 16  ;;  %v188_v13 = vld [vmem:[%s5733_s23 + $0x64] sm:$0xf]  ;;  %v227_v14 = vld [vmem:[%s5733_s23 + $0x68] sm:$0x1]  ;;  %v431_v15 = vshrl.u32 %v187_v11, 16 }
  0x14   : > { %5600 = vmatpush.bf16.msra.mxu1 %v5503_v2  ;;  %5601 = vmatpush.bf16.msra.mxu2 %v5503_v2  ;;  %v337_v16 = vrot.slane %v335_v7, 4  ;;  %v340_v17 = vrot.slane %v338_v8, 5  ;;  %v346_v18 = vrot.slane %v344_v9, 5  ;;  %v350_v19 = vrot.slane %v348_v10, 4  ;;  %v195_v20 = vld [vmem:[%s5733_s23 + $0x90] sm:$0xf] }
  0x15   : > { %5602 = vmatpush.bf16.msra.mxu3 %v5503_v2  ;;  %753 = vmatpush.bf16.msra.mxu0 %v5503_v2  ;;  %v356_v21 = vrot.slane %v354_v12, 5  ;;  %v433_v22 = vrot.slane %v431_v15, 4  ;;  %v434_v23 = vshll.u32 %v187_v11, 16  ;;  %v440_v24 = vshll.u32 %v188_v13, 16  ;;  %v196_v29 = vld [vmem:[%s5733_s23 + $0x94] sm:$0xf] }
  0x16   : > { %v341_v25 = vor.u32 %v340_v17, %v337_v16  ;;  %v351_v26 = vor.u32 %v350_v19, %v346_v18  ;;  %v444_v27 = vshrl.u32 %v188_v13, 16  ;;  %v450_v28 = vshll.u32 %v227_v14, 16  ;;  %v231_v41 = vld [vmem:[%s5733_s23 + $0x98] sm:$0x1]  ;;  %v171_v49 = vld [vmem:[%s5733_s23] sm:$0xf] }
  0x17   : > { %v436_v31 = vrot.slane %v434_v23, 5  ;;  %v442_v32 = vrot.slane %v440_v24, 5  ;;  %v527_v33 = vshrl.u32 %v195_v20, 16  ;;  %v530_v34 = vshll.u32 %v195_v20, 16  ;;  %v5773_v62 = vld [vmem:[%s5733_s23 + $0x4] sm:$0xf] }
  0x18   : > { %5603 = vmatpush.bf16.msra.mxu1 %v5502_v6  ;;  %5604 = vmatpush.bf16.msra.mxu2 %v5502_v6  ;;  %v342_v36 = vrot.slane %v341_v25, 4  ;;  %v352_v37 = vrot.slane %v351_v26, 4  ;;  %v446_v38 = vrot.slane %v444_v27, 4  ;;  %v452_v39 = vrot.slane %v450_v28, 5  ;;  %v5780_v4 = vld [vmem:[%s5733_s23 + $0x8] sm:$0x1] }
  0x19   : > { %5605 = vmatpush.bf16.msra.mxu3 %v5502_v6  ;;  %754 = vmatpush.bf16.msra.mxu0 %v5502_v6  ;;  %v437_v40 = vor.u32 %v436_v31, %v433_v22  ;;  %v529_v42 = vrot.slane %v527_v33, 4  ;;  %v532_v43 = vrot.slane %v530_v34, 5  ;;  %v536_v44 = vshll.u32 %v196_v29, 16  ;;  %v181_v5 = vld [vmem:[%s5733_s23 + $0x3c] sm:$0xf]  ;;  %v5499_v10 = vld [vmem:[%s7176_s1 + $0x48] sm:$0xff] }
  0x1a   : > { %v347_v45 = vsel %vm5748_vm2, %v342_v36, %v346_v18  ;;  %v357_v46 = vsel %vm5748_vm2, %v352_v37, %v356_v21  ;;  %v447_v47 = vor.u32 %v446_v38, %v442_v32  ;;  %v540_v48 = vshrl.u32 %v196_v29, 16  ;;  %v182_v15 = vld [vmem:[%s5733_s23 + $0x40] sm:$0xf]  ;;  %v224_v19 = vld [vmem:[%s5733_s23 + $0x44] sm:$0x1]  ;;  %v5513_v37 = vld [vmem:[%s7176_s1 + $0xb8] sm:$0xff] }
  0x1b   : > { %v5761_v50 = vunpack.c.l.b16 %v347_v45  ;;  %v5763_v51 = vunpack.c.l.b16 %v357_v46  ;;  %v438_v52 = vrot.slane %v437_v40, 4  ;;  %v533_v53 = vor.u32 %v532_v43, %v529_v42  ;;  %v189_v25 = vld [vmem:[%s5733_s23 + $0x6c] sm:$0xf]  ;;  %v5498_v31 = vld [vmem:[%s7176_s1 + $0x40] sm:$0xff]  ;;  %v190_v40 = vld [vmem:[%s5733_s23 + $0x70] sm:$0xf] }
  0x1c   : > { %5606 = vmatpush.bf16.msra.mxu1 %v5501_v35  ;;  %5607 = vmatpush.bf16.msra.mxu2 %v5501_v35  ;;  %v448_v55 = vrot.slane %v447_v47, 4  ;;  %v538_v56 = vrot.slane %v536_v44, 5  ;;  %v542_v57 = vrot.slane %v540_v48, 4  ;;  %v546_v58 = vshll.u32 %v231_v41, 16  ;;  %v5537_v43 = vld [vmem:[%s7176_s1 + $0xf8] sm:$0xff] }
  0x1d   : > { %5608 = vmatpush.bf16.msra.mxu3 %v5501_v35  ;;  %755 = vmatpush.bf16.msra.mxu0 %v5501_v35  ;;  %v675_v59 = vpack.c.b16 %v5763_v51, %v5761_v50  ;;  %v443_v60 = vsel %vm5748_vm2, %v438_v52, %v442_v32  ;;  %v534_v61 = vrot.slane %v533_v53, 4  ;;  %v239_v63 = vshrl.u32 %v171_v49, 16  ;;  %v228_v47 = vld [vmem:[%s5733_s23 + $0x74] sm:$0x1] }
  0x1e   : > { %v453_v0 = vsel %vm5748_vm2, %v448_v55, %v452_v39  ;;  %v5777_v1 = vunpack.c.l.b16 %v443_v60  ;;  %v543_v2 = vor.u32 %v542_v57, %v538_v56  ;;  %v548_v3 = vrot.slane %v546_v58, 5  ;;  %v5497_v57 = vld [vmem:[%s7176_s1 + $0x38] sm:$0xff] }
  0x1f   : > { %v5783_v6 = vunpack.c.l.b16 %v453_v0  ;;  %v539_v7 = vsel %vm5748_vm2, %v534_v61, %v538_v56  ;;  %v241_v8 = vrot.slane %v239_v63, 4  ;;  %v242_v9 = vshll.u32 %v171_v49, 16  ;;  %v5512_v63 = vld [vmem:[%s7176_s1 + $0xb0] sm:$0xff] }
  0x20   : > { %5609 = vmatpush.bf16.msra.mxu1 %v5500_v54  ;;  %5610 = vmatpush.bf16.msra.mxu2 %v5500_v54  ;;  %v544_v11 = vrot.slane %v543_v2, 4  ;;  %v5790_v12 = vunpack.c.l.b16 %v539_v7  ;;  %v248_v13 = vshll.u32 %v5773_v62, 16  ;;  %v252_v14 = vshrl.u32 %v5773_v62, 16 }
  0x21   : > { %5611 = vmatpush.bf16.msra.mxu3 %v5500_v54  ;;  %756 = vmatpush.bf16.msra.mxu0 %v5500_v54  ;;  %v679_v16 = vpack.c.b16 %v5783_v6, %v5777_v1  ;;  %v244_v17 = vrot.slane %v242_v9, 5  ;;  %v258_v18 = vshll.u32 %v5780_v4, 16  ;;  %v359_v20 = vshrl.u32 %v181_v5, 16  ;;  %v197_v54 = vld [vmem:[%s5733_s23 + $0x9c] sm:$0xf] }
  0x22   : > { %v549_v21 = vsel %vm5748_vm2, %v544_v11, %v548_v3  ;;  %v250_v22 = vrot.slane %v248_v13, 5  ;;  %v254_v23 = vrot.slane %v252_v14, 4  ;;  %v362_v24 = vshll.u32 %v181_v5, 16  ;;  %v5536_v3 = vld [vmem:[%s7176_s1 + $0xf0] sm:$0xff]  ;;  %v5545_v11 = vld [vmem:[%s7176_s1 + $0x138] sm:$0xff] }
  0x23   : > { %v664_v26 = vunpack.c.l.b16 %v549_v21  ;;  %v245_v27 = vor.u32 %v244_v17, %v241_v8  ;;  %v260_v28 = vrot.slane %v258_v18, 5  ;;  %v361_v29 = vrot.slane %v359_v20, 4  ;;  %v198_v8 = vld [vmem:[%s5733_s23 + $0xa0] sm:$0xf]  ;;  %v173_v17 = vld [vmem:[%s5733_s23 + $0xc] sm:$0xf] }
  0x24   : > { %5612 = vmatpush.bf16.msra.mxu1 %v5499_v10  ;;  %5613 = vmatpush.bf16.msra.mxu2 %v5499_v10  ;;  %v255_v32 = vor.u32 %v254_v23, %v250_v22  ;;  %v364_v33 = vrot.slane %v362_v24, 5  ;;  %v368_v34 = vshll.u32 %v182_v15, 16  ;;  %v372_v35 = vshrl.u32 %v182_v15, 16  ;;  %v232_v15 = vld [vmem:[%s5733_s23 + $0xa4] sm:$0x1]  ;;  %v5496_v18 = vld [vmem:[%s7176_s1 + $0x30] sm:$0xff] }
  0x25   : > { %5614 = vmatpush.bf16.msra.mxu3 %v5499_v10  ;;  %757 = vmatpush.bf16.msra.mxu0 %v5499_v10  ;;  %v683_v36 = vpack.c.b16 %v664_v26, %v5790_v12  ;;  %v246_v38 = vrot.slane %v245_v27, 4  ;;  %v378_v39 = vshll.u32 %v224_v19, 16  ;;  %v455_v41 = vshrl.u32 %v189_v25, 16  ;;  %v5511_v23 = vld [vmem:[%s7176_s1 + $0xa8] sm:$0xff]  ;;  %v5852_v27 = vld [vmem:[%s5733_s23 + $0x10] sm:$0xf] }
  0x26   : > { %v256_v42 = vrot.slane %v255_v32, 4  ;;  %v365_v44 = vor.u32 %v364_v33, %v361_v29  ;;  %v370_v45 = vrot.slane %v368_v34, 5  ;;  %v374_v46 = vrot.slane %v372_v35, 4  ;;  %v5535_v29 = vld [vmem:[%s7176_s1 + $0xe8] sm:$0xff]  ;;  %v5862_v35 = vld [vmem:[%s5733_s23 + $0x14] sm:$0x1] }
  0x27   : > { %v251_v48 = vsel %vm5748_vm2, %v246_v38, %v250_v22  ;;  %v380_v49 = vrot.slane %v378_v39, 5  ;;  %v457_v52 = vrot.slane %v455_v41, 4  ;;  %v458_v53 = vshll.u32 %v189_v25, 16  ;;  %v5495_v41 = vld [vmem:[%s7176_s1 + $0x28] sm:$0xff] }
  0x28   : > { %5615 = vmatpush.bf16.msra.mxu1 %v5498_v31  ;;  %5616 = vmatpush.bf16.msra.mxu2 %v5498_v31  ;;  %v261_v55 = vsel %vm5748_vm2, %v256_v42, %v260_v28  ;;  %v639_v56 = vunpack.c.l.b16 %v251_v48  ;;  %v366_v58 = vrot.slane %v365_v44, 4  ;;  %v375_v60 = vor.u32 %v374_v46, %v370_v45  ;;  %v183_v46 = vld [vmem:[%s5733_s23 + $0x48] sm:$0xf] }
  0x29   : > { %5617 = vmatpush.bf16.msra.mxu3 %v5498_v31  ;;  %758 = vmatpush.bf16.msra.mxu0 %v5498_v31  ;;  %v640_v61 = vunpack.c.l.b16 %v261_v55  ;;  %v460_v0 = vrot.slane %v458_v53, 5  ;;  %v464_v1 = vshll.u32 %v190_v40, 16  ;;  %v468_v2 = vshrl.u32 %v190_v40, 16  ;;  %v5510_v53 = vld [vmem:[%s7176_s1 + $0xa0] sm:$0xff] }
  0x2a   : > { %v371_v5 = vsel %vm5748_vm2, %v366_v58, %v370_v45  ;;  %v376_v6 = vrot.slane %v375_v60, 4  ;;  %v474_v7 = vshll.u32 %v228_v47, 16  ;;  %v551_v9 = vshrl.u32 %v197_v54, 16  ;;  %v5543_v60 = vld [vmem:[%s7176_s1 + $0x128] sm:$0xff] }
  0x2b   : > { %779 = vmatmul.bf16.vlgmr.msra.gmra.mxu1 %v675_v59  ;;  %799 = vmatmul.bf16.vlgmr.msra.gmra.mxu2 %v679_v16  ;;  %v671_v10 = vpack.c.b16 %v640_v61, %v639_v56  ;;  %v5837_v12 = vunpack.c.l.b16 %v371_v5  ;;  %v461_v13 = vor.u32 %v460_v0, %v457_v52  ;;  %v466_v14 = vrot.slane %v464_v1, 5  ;;  %v5494_v61 = vld [vmem:[%s7176_s1 + $0x20] sm:$0xff] }
  0x2c   : > { %1365 = vmatpush.bf16.msrb.mxu2 %v5513_v37  ;;  %819 = vmatmul.bf16.vlgmr.msra.gmra.mxu3 %v683_v36  ;;  %v381_v50 = vsel %vm5748_vm2, %v376_v6, %v380_v49  ;;  %v470_v51 = vrot.slane %v468_v2, 4  ;;  %v476_v59 = vrot.slane %v474_v7, 5  ;;  %v553_v16 = vrot.slane %v551_v9, 4  ;;  %v5544_v36 = vld [vmem:[%s7176_s1 + $0x130] sm:$0xff]  ;;  %v5891_v2 = vld [vmem:[%s5733_s23 + $0x4c] sm:$0xf] }
  0x2d   : > { %1680 = vmatpush.bf16.msrb.mxu3 %v5537_v43  ;;  %984 = vmatpush.bf16.msrb.mxu1 %v5497_v57  ;;  %v5846_v19 = vunpack.c.l.b16 %v381_v50  ;;  %v462_v20 = vrot.slane %v461_v13, 4  ;;  %v554_v21 = vshll.u32 %v197_v54, 16  ;;  %v560_v22 = vshll.u32 %v198_v8, 16  ;;  %v5534_v54 = vld [vmem:[%s7176_s1 + $0xe0] sm:$0xff] }
  0x2e   : > { %759 = vmatmul.bf16.vlgmr.msra.gmra.mxu0 %v671_v10  ;;  %v471_v24 = vor.u32 %v470_v51, %v466_v14  ;;  %v564_v25 = vshrl.u32 %v198_v8, 16  ;;  %v570_v26 = vshll.u32 %v232_v15, 16  ;;  %v263_v28 = vshrl.u32 %v173_v17, 16  ;;  %v225_v8 = vld [vmem:[%s5733_s23 + $0x50] sm:$0x1] }
  0x2f   : > { %2362 = vmatpush.bf16.msrb.mxu0 %v5545_v11  ;;  %v676_v31 = vpack.c.b16 %v5846_v19, %v5837_v12  ;;  %v467_v32 = vsel %vm5748_vm2, %v462_v20, %v466_v14  ;;  %v556_v33 = vrot.slane %v554_v21, 5  ;;  %v562_v34 = vrot.slane %v560_v22, 5  ;;  %v191_v10 = vld [vmem:[%s5733_s23 + $0x78] sm:$0xf] }
  0x30   : > { %1366 = vmatpush.bf16.msrb.mxu2 %v5512_v63  ;;  %v472_v37 = vrot.slane %v471_v24, 4  ;;  %v5867_v38 = vunpack.c.l.b16 %v467_v32  ;;  %v566_v39 = vrot.slane %v564_v25, 4  ;;  %v572_v40 = vrot.slane %v570_v26, 5  ;;  %v5542_v24 = vld [vmem:[%s7176_s1 + $0x120] sm:$0xff]  ;;  %v192_v32 = vld [vmem:[%s5733_s23 + $0x7c] sm:$0xf] }
  0x31   : > { %1681 = vmatpush.bf16.msrb.mxu3 %v5536_v3  ;;  %985 = vmatpush.bf16.msrb.mxu1 %v5496_v18  ;;  %v557_v42 = vor.u32 %v556_v33, %v553_v16  ;;  %v265_v43 = vrot.slane %v263_v28, 4  ;;  %v266_v44 = vshll.u32 %v173_v17, 16  ;;  %v272_v45 = vshll.u32 %v5852_v27, 16  ;;  %v5509_v17 = vld [vmem:[%s7176_s1 + $0x98] sm:$0xff]  ;;  %v229_v33 = vld [vmem:[%s5733_s23 + $0x80] sm:$0x1] }
  0x32   : > { %v477_v47 = vsel %vm5748_vm2, %v472_v37, %v476_v59  ;;  %v567_v48 = vor.u32 %v566_v39, %v562_v34  ;;  %v276_v49 = vshrl.u32 %v5852_v27, 16  ;;  %v282_v52 = vshll.u32 %v5862_v35, 16  ;;  %v5533_v18 = vld [vmem:[%s7176_s1 + $0xd8] sm:$0xff] }
  0x33   : > { %v658_v55 = vunpack.c.l.b16 %v477_v47  ;;  %v558_v56 = vrot.slane %v557_v42, 4  ;;  %v268_v57 = vrot.slane %v266_v44, 5  ;;  %v274_v58 = vrot.slane %v272_v45, 5  ;;  %2363 = vmatpush.bf16.msrb.mxu0 %v5544_v36  ;;  %v5532_v42 = vld [vmem:[%s7176_s1 + $0xd0] sm:$0xff] }
  0x34   : > { %1367 = vmatpush.bf16.msrb.mxu2 %v5511_v23  ;;  %v568_v63 = vrot.slane %v567_v48, 4  ;;  %v278_v0 = vrot.slane %v276_v49, 4  ;;  %v284_v1 = vrot.slane %v282_v52, 5  ;;  %v383_v3 = vshrl.u32 %v183_v46, 16 }
  0x35   : > { %1682 = vmatpush.bf16.msrb.mxu3 %v5535_v29  ;;  %986 = vmatpush.bf16.msrb.mxu1 %v5495_v41  ;;  %v680_v5 = vpack.c.b16 %v658_v55, %v5867_v38  ;;  %v563_v6 = vsel %vm5748_vm2, %v558_v56, %v562_v34  ;;  %v269_v7 = vor.u32 %v268_v57, %v265_v43  ;;  %v386_v9 = vshll.u32 %v183_v46, 16  ;;  %v5493_v34 = vld [vmem:[%s7176_s1 + $0x18] sm:$0xff]  ;;  %v5508_v41 = vld [vmem:[%s7176_s1 + $0x90] sm:$0xff] }
  0x36   : > { %v573_v11 = vsel %vm5748_vm2, %v568_v63, %v572_v40  ;;  %v665_v13 = vunpack.c.l.b16 %v563_v6  ;;  %v279_v14 = vor.u32 %v278_v0, %v274_v58  ;;  %v385_v15 = vrot.slane %v383_v3, 4  ;;  %v199_v40 = vld [vmem:[%s5733_s23 + $0xa8] sm:$0xf]  ;;  %v5492_v56 = vld [vmem:[%s7176_s1 + $0x10] sm:$0xff]  ;;  %v175_v6 = vld [vmem:[%s5733_s23 + $0x18] sm:$0xf] }
  0x37   : > { %v666_v50 = vunpack.c.l.b16 %v573_v11  ;;  %v270_v51 = vrot.slane %v269_v7, 4  ;;  %2364 = vmatpush.bf16.msrb.mxu0 %v5543_v60  ;;  %v388_v59 = vrot.slane %v386_v9, 5  ;;  %v392_v16 = vshll.u32 %v5891_v2, 16  ;;  %v233_v63 = vld [vmem:[%s5733_s23 + $0xb0] sm:$0x1] }
  0x38   : > { %1368 = vmatpush.bf16.msrb.mxu2 %v5510_v53  ;;  %v280_v20 = vrot.slane %v279_v14, 4  ;;  %v396_v21 = vshrl.u32 %v5891_v2, 16  ;;  %v402_v22 = vshll.u32 %v225_v8, 16  ;;  %v479_v23 = vshrl.u32 %v191_v10, 16  ;;  %v5541_v53 = vld [vmem:[%s7176_s1 + $0x118] sm:$0xff] }
  0x39   : > { %1683 = vmatpush.bf16.msrb.mxu3 %v5534_v54  ;;  %987 = vmatpush.bf16.msrb.mxu1 %v5494_v61  ;;  %v684_v25 = vpack.c.b16 %v666_v50, %v665_v13  ;;  %v275_v26 = vsel %vm5748_vm2, %v270_v51, %v274_v58  ;;  %v389_v28 = vor.u32 %v388_v59, %v385_v15  ;;  %v394_v29 = vrot.slane %v392_v16, 5  ;;  %v5949_v59 = vld [vmem:[%s5733_s23 + $0x1c] sm:$0xf] }
  0x3a   : > { %v285_v36 = vsel %vm5748_vm2, %v280_v20, %v284_v1  ;;  %v641_v37 = vunpack.c.l.b16 %v275_v26  ;;  %v398_v38 = vrot.slane %v396_v21, 4  ;;  %v404_v39 = vrot.slane %v402_v22, 5 }
  0x3b   : > { %784 = vmatmul.bf16.gmra.mxu1 %v676_v31  ;;  %804 = vmatmul.bf16.gmra.mxu2 %v680_v5  ;;  %v642_v43 = vunpack.c.l.b16 %v285_v36  ;;  %v390_v44 = vrot.slane %v389_v28, 4  ;;  %v481_v45 = vrot.slane %v479_v23, 4  ;;  %v482_v46 = vshll.u32 %v191_v10, 16  ;;  %v200_v31 = vld [vmem:[%s5733_s23 + $0xac] sm:$0xf] }
  0x3c   : > { %1369 = vmatpush.bf16.msrb.mxu2 %v5509_v17  ;;  %824 = vmatmul.bf16.gmra.mxu3 %v684_v25  ;;  %v399_v47 = vor.u32 %v398_v38, %v394_v29  ;;  %v488_v48 = vshll.u32 %v192_v32, 16  ;;  %v492_v49 = vshrl.u32 %v192_v32, 16  ;;  %v498_v52 = vshll.u32 %v229_v33, 16  ;;  %v5507_v17 = vld [vmem:[%s7176_s1 + $0x88] sm:$0xff]  ;;  %v185_v25 = vld [vmem:[%s5733_s23 + $0x54] sm:$0xf] }
  0x3d   : > { %1684 = vmatpush.bf16.msrb.mxu3 %v5533_v18  ;;  %2365 = vmatpush.bf16.msrb.mxu0 %v5542_v24  ;;  %v672_v54 = vpack.c.b16 %v642_v43, %v641_v37  ;;  %v395_v12 = vsel %vm5748_vm2, %v390_v44, %v394_v29  ;;  %v484_v19 = vrot.slane %v482_v46, 5  ;;  %v575_v55 = vshrl.u32 %v199_v40, 16  ;;  %v5955_v24 = vld [vmem:[%s5733_s23 + $0x20] sm:$0x1]  ;;  %v5531_v38 = vld [vmem:[%s7176_s1 + $0xc8] sm:$0xff] }
  0x3e   : > { %988 = vmatpush.bf16.msrb.mxu1 %v5493_v34  ;;  %v400_v57 = vrot.slane %v399_v47, 4  ;;  %v5939_v58 = vunpack.c.l.b16 %v395_v12  ;;  %v490_v60 = vrot.slane %v488_v48, 5  ;;  %v494_v61 = vrot.slane %v492_v49, 4 }
  0x3f   : > { %764 = vmatmul.bf16.gmra.mxu0 %v672_v54  ;;  %v485_v0 = vor.u32 %v484_v19, %v481_v45  ;;  %v500_v1 = vrot.slane %v498_v52, 5  ;;  %v577_v3 = vrot.slane %v575_v55, 4  ;;  %v578_v5 = vshll.u32 %v199_v40, 16  ;;  %v5491_v40 = vld [vmem:[%s7176_s1 + $0x8] sm:$0xff]  ;;  %v5506_v45 = vld [vmem:[%s7176_s1 + $0x80] sm:$0xff] }
  0x40   : > { %1370 = vmatpush.bf16.msrb.mxu2 %v5508_v41  ;;  %v405_v7 = vsel %vm5748_vm2, %v400_v57, %v404_v39  ;;  %v495_v8 = vor.u32 %v494_v61, %v490_v60  ;;  %v584_v9 = vshll.u32 %v200_v31, 16  ;;  %v588_v10 = vshrl.u32 %v200_v31, 16  ;;  %v5540_v39 = vld [vmem:[%s7176_s1 + $0x110] sm:$0xff]  ;;  %v5978_v52 = vld [vmem:[%s5733_s23 + $0x58] sm:$0xf]  ;;  %v5539_v57 = vld [vmem:[%s7176_s1 + $0x108] sm:$0xff] }
  0x41   : > { %1685 = vmatpush.bf16.msrb.mxu3 %v5532_v42  ;;  %2366 = vmatpush.bf16.msrb.mxu0 %v5541_v53  ;;  %v652_v11 = vunpack.c.l.b16 %v405_v7  ;;  %v486_v13 = vrot.slane %v485_v0, 4  ;;  %v580_v14 = vrot.slane %v578_v5, 5  ;;  %v594_v15 = vshll.u32 %v233_v63, 16  ;;  %v5981_v53 = vld [vmem:[%s5733_s23 + $0x5c] sm:$0x1]  ;;  %v5490_v0 = vld [vmem:[%s7176_s1] sm:$0xff] }
  0x42   : > { %989 = vmatpush.bf16.msrb.mxu1 %v5492_v56  ;;  %v496_v18 = vrot.slane %v495_v8, 4  ;;  %v586_v50 = vrot.slane %v584_v9, 5  ;;  %v590_v51 = vrot.slane %v588_v10, 4  ;;  %v287_v16 = vshrl.u32 %v175_v6, 16  ;;  %v193_v55 = vld [vmem:[%s5733_s23 + $0x84] sm:$0xf] }
  0x43   : > { %v677_v20 = vpack.c.b16 %v652_v11, %v5939_v58  ;;  %v491_v21 = vsel %vm5748_vm2, %v486_v13, %v490_v60  ;;  %v581_v22 = vor.u32 %v580_v14, %v577_v3  ;;  %v596_v23 = vrot.slane %v594_v15, 5  ;;  %v5530_v56 = vld [vmem:[%s7176_s1 + $0xc0] sm:$0xff]  ;;  %v194_v10 = vld [vmem:[%s5733_s23 + $0x88] sm:$0xf] }
  0x44   : > { %1371 = vmatpush.bf16.msrb.mxu2 %v5507_v17  ;;  %v501_v26 = vsel %vm5748_vm2, %v496_v18, %v500_v1  ;;  %v659_v28 = vunpack.c.l.b16 %v491_v21  ;;  %v591_v29 = vor.u32 %v590_v51, %v586_v50  ;;  %v289_v32 = vrot.slane %v287_v16, 4  ;;  %v5538_v18 = vld [vmem:[%s7176_s1 + $0x100] sm:$0xff]  ;;  %v230_v16 = vld [vmem:[%s5733_s23 + $0x8c] sm:$0x1] }
  0x45   : > { %v660_v33 = vunpack.c.l.b16 %v501_v26  ;;  %v582_v34 = vrot.slane %v581_v22, 4  ;;  %v290_v36 = vshll.u32 %v175_v6, 16  ;;  %v296_v37 = vshll.u32 %v5949_v59, 16  ;;  %1686 = vmatpush.bf16.msrb.mxu3 %v5531_v38  ;;  %2367 = vmatpush.bf16.msrb.mxu0 %v5540_v39  ;;  %v201_v22 = vld [vmem:[%s5733_s23 + $0xb4] sm:$0xf] }
  0x46   : > { %v592_v41 = vrot.slane %v591_v29, 4  ;;  %v300_v42 = vshrl.u32 %v5949_v59, 16  ;;  %v306_v43 = vshll.u32 %v5955_v24, 16  ;;  %v407_v44 = vshrl.u32 %v185_v25, 16  ;;  %990 = vmatpush.bf16.msrb.mxu1 %v5491_v40  ;;  %v202_v39 = vld [vmem:[%s5733_s23 + $0xb8] sm:$0xf] }
  0x47   : > { %v681_v46 = vpack.c.b16 %v660_v33, %v659_v28  ;;  %v587_v47 = vsel %vm5748_vm2, %v582_v34, %v586_v50  ;;  %v292_v48 = vrot.slane %v290_v36, 5  ;;  %v298_v49 = vrot.slane %v296_v37, 5 }
  0x48   : > { %v597_v54 = vsel %vm5748_vm2, %v592_v41, %v596_v23  ;;  %v667_v12 = vunpack.c.l.b16 %v587_v47  ;;  %v302_v19 = vrot.slane %v300_v42, 4  ;;  %v308_v31 = vrot.slane %v306_v43, 5  ;;  %1372 = vmatpush.bf16.msrb.mxu2 %v5506_v45  ;;  %v234_v45 = vld [vmem:[%s5733_s23 + $0xbc] sm:$0x1] }
  0x49   : > { %v668_v58 = vunpack.c.l.b16 %v597_v54  ;;  %v293_v60 = vor.u32 %v292_v48, %v289_v32  ;;  %v409_v61 = vrot.slane %v407_v44, 4  ;;  %v410_v63 = vshll.u32 %v185_v25, 16  ;;  %1687 = vmatpush.bf16.msrb.mxu3 %v5530_v56  ;;  %2368 = vmatpush.bf16.msrb.mxu0 %v5539_v57  ;;  %v5577_v47 = vld [vmem:[%s7176_s1 + $0x1b8] sm:$0xff] }
  0x4a   : > { %v303_v1 = vor.u32 %v302_v19, %v298_v49  ;;  %v416_v3 = vshll.u32 %v5978_v52, 16  ;;  %v420_v5 = vshrl.u32 %v5978_v52, 16  ;;  %v426_v6 = vshll.u32 %v5981_v53, 16  ;;  %991 = vmatpush.bf16.msrb.mxu1 %v5490_v0 }
  0x4b   : > { %789 = vmatmul.bf16.gmra.mxu1 %v677_v20  ;;  %809 = vmatmul.bf16.gmra.mxu2 %v681_v46  ;;  %v685_v7 = vpack.c.b16 %v668_v58, %v667_v12  ;;  %v294_v8 = vrot.slane %v293_v60, 4  ;;  %v412_v9 = vrot.slane %v410_v63, 5  ;;  %v503_v11 = vshrl.u32 %v193_v55, 16  ;;  %v177_v46 = vld [vmem:[%s5733_s23 + $0x24] sm:$0xf] }
  0x4c   : > { %v304_v13 = vrot.slane %v303_v1, 4  ;;  %v418_v14 = vrot.slane %v416_v3, 5  ;;  %v422_v15 = vrot.slane %v420_v5, 4  ;;  %v428_v17 = vrot.slane %v426_v6, 5  ;;  %3103 = vmatpush.bf16.msra.mxu2 %v5577_v47  ;;  %v5585_v6 = vld [vmem:[%s7176_s1 + $0x1f8] sm:$0xff] }
  0x4d   : > { %829 = vmatmul.bf16.gmra.mxu3 %v685_v7  ;;  %v299_v50 = vsel %vm5748_vm2, %v294_v8, %v298_v49  ;;  %v413_v51 = vor.u32 %v412_v9, %v409_v61  ;;  %v505_v20 = vrot.slane %v503_v11, 4  ;;  %v506_v21 = vshll.u32 %v193_v55, 16  ;;  %2369 = vmatpush.bf16.msrb.mxu0 %v5538_v18  ;;  %v6019_v61 = vld [vmem:[%s5733_s23 + $0x28] sm:$0xf]  ;;  %v5553_v7 = vld [vmem:[%s7176_s1 + $0x178] sm:$0xff] }
  0x4e   : > { %v309_v23 = vsel %vm5748_vm2, %v304_v13, %v308_v31  ;;  %v643_v25 = vunpack.c.l.b16 %v299_v50  ;;  %v423_v26 = vor.u32 %v422_v15, %v418_v14  ;;  %v512_v28 = vshll.u32 %v194_v10, 16  ;;  %v5593_v8 = vld [vmem:[%s7176_s1 + $0x238] sm:$0xff]  ;;  %3785 = vmatpush.bf16.msra.mxu3 %v5585_v6  ;;  %2788 = vmatpush.bf16.msra.mxu1 %v5553_v7 }
  0x4f   : > { %v644_v29 = vunpack.c.l.b16 %v309_v23  ;;  %v414_v32 = vrot.slane %v413_v51, 4  ;;  %v508_v33 = vrot.slane %v506_v21, 5  ;;  %v516_v34 = vshrl.u32 %v194_v10, 16 }
  0x50   : > { %v424_v36 = vrot.slane %v423_v26, 4  ;;  %v514_v37 = vrot.slane %v512_v28, 5  ;;  %v522_v38 = vshll.u32 %v230_v16, 16  ;;  %v599_v40 = vshrl.u32 %v201_v22, 16  ;;  %v1073_v26 = vld [vmem:[%s5733_s23] sm:$0xe] }
  0x51   : > { %v673_v41 = vpack.c.b16 %v644_v29, %v643_v25  ;;  %v419_v42 = vsel %vm5748_vm2, %v414_v32, %v418_v14  ;;  %v509_v43 = vor.u32 %v508_v33, %v505_v20  ;;  %v518_v44 = vrot.slane %v516_v34, 4  ;;  %v6033_v14 = vld [vmem:[%s5733_s23 + $0x2c] sm:$0x1]  ;;  %4211 = vmatpush.bf16.msra.mxu0 %v5593_v8 }
  0x52   : > { %v429_v48 = vsel %vm5748_vm2, %v424_v36, %v428_v17  ;;  %v653_v49 = vunpack.c.l.b16 %v419_v42  ;;  %v524_v54 = vrot.slane %v522_v38, 5  ;;  %v601_v12 = vrot.slane %v599_v40, 4  ;;  %v4943_v38 = vld [vmem:[%s5733_s23 + $0xc] sm:$0xf] }
  0x53   : > { %769 = vmatmul.bf16.gmra.mxu0 %v673_v41  ;;  %v654_v19 = vunpack.c.l.b16 %v429_v48  ;;  %v510_v31 = vrot.slane %v509_v43, 4  ;;  %v519_v55 = vor.u32 %v518_v44, %v514_v37  ;;  %v602_v56 = vshll.u32 %v201_v22, 16 }
  0x54   : > { %v608_v57 = vshll.u32 %v202_v39, 16  ;;  %v612_v58 = vshrl.u32 %v202_v39, 16  ;;  %v618_v60 = vshll.u32 %v234_v45, 16  ;;  %v311_v63 = vshrl.u32 %v177_v46, 16  ;;  %v4944_v39 = vld [vmem:[%s5733_s23 + $0x10] sm:$0xf] }
  0x55   : > { %v678_v0 = vpack.c.b16 %v654_v19, %v653_v49  ;;  %v515_v1 = vsel %vm5748_vm2, %v510_v31, %v514_v37  ;;  %v520_v3 = vrot.slane %v519_v55, 4  ;;  %v604_v5 = vrot.slane %v602_v56, 5 }
  0x56   : > { %v661_v9 = vunpack.c.l.b16 %v515_v1  ;;  %v610_v10 = vrot.slane %v608_v57, 5  ;;  %v614_v11 = vrot.slane %v612_v58, 4  ;;  %v620_v13 = vrot.slane %v618_v60, 5  ;;  %v4945_v58 = vld [vmem:[%s5733_s23 + $0x14] sm:$0x1] }
  0x57   : > { %v525_v15 = vsel %vm5748_vm2, %v520_v3, %v524_v54  ;;  %v605_v17 = vor.u32 %v604_v5, %v601_v12  ;;  %v313_v18 = vrot.slane %v311_v63, 4  ;;  %v314_v50 = vshll.u32 %v177_v46, 16 }
  0x58   : > { %v662_v51 = vunpack.c.l.b16 %v525_v15  ;;  %v615_v16 = vor.u32 %v614_v11, %v610_v10  ;;  %v320_v20 = vshll.u32 %v6019_v61, 16  ;;  %v324_v21 = vshrl.u32 %v6019_v61, 16 }
  0x59   : > { %v606_v22 = vrot.slane %v605_v17, 4  ;;  %v316_v23 = vrot.slane %v314_v50, 5  ;;  %v330_v25 = vshll.u32 %v6033_v14, 16  ;;  %v4735_v44 = vrot.slane %v1073_v26, 9  ;;  %v4946_v50 = vld [vmem:[%s5733_s23 + $0x18] sm:$0xf] }
  0x5a   : > { %v682_v28 = vpack.c.b16 %v662_v51, %v661_v9  ;;  %v616_v29 = vrot.slane %v615_v16, 4  ;;  %v322_v32 = vrot.slane %v320_v20, 5  ;;  %v326_v33 = vrot.slane %v324_v21, 4  ;;  %v5474_v51 = vld [vmem:[%s5733_s23] sm:$0xff]  ;;  %v4947_v16 = vld [vmem:[%s5733_s23 + $0x1c] sm:$0xf] }
  0x5b   : > { %794 = vmatmul.bf16.gmra.mxu1 %v678_v0  ;;  %v611_v34 = vsel %vm5748_vm2, %v606_v22, %v610_v10  ;;  %v317_v36 = vor.u32 %v316_v23, %v313_v18  ;;  %v332_v37 = vrot.slane %v330_v25, 5  ;;  %v1126_v47 = vrot.slane %v5773_v62, 5  ;;  %v1074_v21 = vld [vmem:[%s5733_s23 + $0xc] sm:$0xe] }
  0x5c   : > { %814 = vmatmul.bf16.gmra.mxu2 %v682_v28  ;;  %v621_v40 = vsel %vm5748_vm2, %v616_v29, %v620_v13  ;;  %v669_v41 = vunpack.c.l.b16 %v611_v34  ;;  %v327_v42 = vor.u32 %v326_v33, %v322_v32  ;;  %v1129_v48 = vrot.slane %v5780_v4, 5  ;;  %v5514_v34 = vld [vmem:[%s5733_s23 + $0xc] sm:$0xff] }
  0x5d   : > { %v670_v45 = vunpack.c.l.b16 %v621_v40  ;;  %v318_v46 = vrot.slane %v317_v36, 4  ;;  %v1850_v54 = vshrl.u32 %v4943_v38, 16  ;;  %v1853_v12 = vshll.u32 %v4943_v38, 16 }
  0x5e   : > { %v328_v49 = vrot.slane %v327_v42, 4  ;;  %v1859_v19 = vshll.u32 %v4944_v39, 16  ;;  %v1127_v56 = vsel %vm6048_vm5, %v4735_v44, %v1126_v47  ;;  %v1128_v57 = vrot.slane %v1126_v47, 4  ;;  %v4948_v44 = vld [vmem:[%s5733_s23 + $0x20] sm:$0x1] }
  0x5f   : > { %v686_v31 = vpack.c.b16 %v670_v45, %v669_v41  ;;  %v323_v55 = vsel %vm5748_vm2, %v318_v46, %v322_v32  ;;  %v1253_v62 = vunpack.c.l.b16 %v1127_v56  ;;  %v1852_v0 = vrot.slane %v1850_v54, 4  ;;  %v5552_v56 = vld [vmem:[%s7176_s1 + $0x170] sm:$0xff] }
  0x60   : > { %v333_v60 = vsel %vm5748_vm2, %v328_v49, %v332_v37  ;;  %v645_v63 = vunpack.c.l.b16 %v323_v55  ;;  %v1130_v1 = vsel %vm6048_vm5, %v1128_v57, %v1129_v48  ;;  %v1855_v3 = vrot.slane %v1853_v12, 5  ;;  %v5576_v48 = vld [vmem:[%s7176_s1 + $0x1b0] sm:$0xff]  ;;  %2789 = vmatpush.bf16.msra.mxu1 %v5552_v56 }
  0x61   : > { %834 = vmatmul.bf16.gmra.mxu3 %v686_v31  ;;  %v646_v4 = vunpack.c.l.b16 %v333_v60  ;;  %v1254_v5 = vunpack.c.l.b16 %v1130_v1  ;;  %v1861_v6 = vrot.slane %v1859_v19, 5  ;;  %v1863_v7 = vshrl.u32 %v4944_v39, 16  ;;  %3104 = vmatpush.bf16.msra.mxu2 %v5576_v48  ;;  %v4949_v31 = vld [vmem:[%s5733_s23 + $0x24] sm:$0xf]  ;;  %v5584_v55 = vld [vmem:[%s7176_s1 + $0x1f0] sm:$0xff] }
  0x62   : > { %v1869_v8 = vshll.u32 %v4945_v58, 16  ;;  %v1856_v10 = vor.u32 %v1855_v3, %v1852_v0  ;;  %v1133_v22 = vrot.slane %v5852_v27, 5  ;;  %v1874_v23 = vshrl.u32 %v4946_v50, 16  ;;  %v5592_v57 = vld [vmem:[%s7176_s1 + $0x230] sm:$0xff]  ;;  %3786 = vmatpush.bf16.msra.mxu3 %v5584_v55  ;;  %v1076_v48 = vld [vmem:[%s5733_s23 + $0x24] sm:$0xe] }
  0x63   : > { %v674_v9 = vpack.c.b16 %v646_v4, %v645_v63  ;;  %v1285_v11 = vpack.c.b16 %v1254_v5, %v1253_v62  ;;  %v1865_v13 = vrot.slane %v1863_v7, 4  ;;  %v1877_v25 = vshll.u32 %v4946_v50, 16  ;;  %v4950_v62 = vld [vmem:[%s5733_s23 + $0x28] sm:$0xf]  ;;  %v5475_v0 = vld [vmem:[%s5733_s23 + $0xc] sm:$0xff]  ;;  %4212 = vmatpush.bf16.msra.mxu0 %v5592_v57 }
  0x64   : > { %v1857_v15 = vrot.slane %v1856_v10, 4  ;;  %v1871_v18 = vrot.slane %v1869_v8, 5  ;;  %v1883_v29 = vshll.u32 %v4947_v16, 16  ;;  %v1887_v32 = vshrl.u32 %v4947_v16, 16 }
  0x65   : > { %774 = vmatmul.bf16.gmra.mxu0 %v674_v9  ;;  %v1866_v17 = vor.u32 %v1865_v13, %v1861_v6  ;;  %v4736_v33 = vrot.slane %v1074_v21, 9  ;;  %v1135_v38 = vrot.slane %v1133_v22, 4  ;;  %v1136_v27 = vrot.slane %v5862_v35, 5  ;;  %v4951_v21 = vld [vmem:[%s5733_s23 + $0x2c] sm:$0x1] }
  0x66   : > { %v1862_v26 = vsel %vm5748_vm2, %v1857_v15, %v1861_v6  ;;  %v1876_v39 = vrot.slane %v1874_v23, 4  ;;  %v1879_v40 = vrot.slane %v1877_v25, 5  ;;  %v1885_v41 = vrot.slane %v1883_v29, 5  ;;  %v1075_v6 = vld [vmem:[%s5733_s23 + $0x18] sm:$0xe] }
  0x67   : > { %v1867_v20 = vrot.slane %v1866_v17, 4  ;;  %v2250_v36 = vunpack.c.l.b16 %v1862_v26  ;;  %v1889_v42 = vrot.slane %v1887_v32, 4  ;;  %v1134_v46 = vsel %vm6048_vm5, %v4736_v33, %v1133_v22 }
  0x68   : > { %v1137_v47 = vsel %vm6048_vm5, %v1135_v38, %v1136_v27  ;;  %v1880_v35 = vor.u32 %v1879_v40, %v1876_v39  ;;  %v1893_v54 = vshll.u32 %v4948_v44, 16  ;;  %v1255_v12 = vunpack.c.l.b16 %v1134_v46  ;;  %v4953_v38 = vld [vmem:[%s5733_s23 + $0x34] sm:$0xf]  ;;  %v5476_v27 = vld [vmem:[%s5733_s23 + $0x18] sm:$0xff] }
  0x69   : > { %v1872_v28 = vsel %vm5748_vm2, %v1867_v20, %v1871_v18  ;;  %v1890_v49 = vor.u32 %v1889_v42, %v1885_v41  ;;  %v1256_v19 = vunpack.c.l.b16 %v1137_v47  ;;  %v1140_v1 = vrot.slane %v5949_v59, 5  ;;  %v5515_v18 = vld [vmem:[%s5733_s23 + $0x18] sm:$0xff] }
  0x6a   : > { %v2251_v37 = vunpack.c.l.b16 %v1872_v28  ;;  %v1881_v58 = vrot.slane %v1880_v35, 4  ;;  %v1895_v63 = vrot.slane %v1893_v54, 5  ;;  %v1898_v3 = vshrl.u32 %v4949_v31, 16 }
  0x6b   : > { %992 = vmatmul.bf16.vlgmr.msrb.gmra.mxu1 %v5474_v51  ;;  %v1891_v60 = vrot.slane %v1890_v49, 4  ;;  %v1286_v4 = vpack.c.b16 %v1256_v19, %v1255_v12  ;;  %v1901_v5 = vshll.u32 %v4949_v31, 16  ;;  %v1907_v7 = vshll.u32 %v4950_v62, 16  ;;  %v5516_v31 = vld [vmem:[%s5733_s23 + $0x24] sm:$0xff] }
  0x6c   : > { %1373 = vmatmul.bf16.vlgmr.msrb.gmra.mxu2 %v1285_v11  ;;  %v2282_v45 = vpack.c.b16 %v2251_v37, %v2250_v36  ;;  %v1911_v8 = vshrl.u32 %v4950_v62, 16  ;;  %v1886_v9 = vsel %vm5748_vm2, %v1881_v58, %v1885_v41  ;;  %v1143_v11 = vrot.slane %v5955_v24, 5  ;;  %v4952_v37 = vld [vmem:[%s5733_s23 + $0x30] sm:$0xf] }
  0x6d   : > { %v1896_v10 = vsel %vm5748_vm2, %v1891_v60, %v1895_v63  ;;  %v4737_v13 = vrot.slane %v1075_v6, 9  ;;  %v1142_v59 = vrot.slane %v1140_v1, 4  ;;  %v1900_v15 = vrot.slane %v1898_v3, 4  ;;  %v4955_v6 = vld [vmem:[%s5733_s23 + $0x3c] sm:$0xf] }
  0x6e   : > { %v1903_v17 = vrot.slane %v1901_v5, 5  ;;  %v2252_v50 = vunpack.c.l.b16 %v1886_v9  ;;  %v2253_v51 = vunpack.c.l.b16 %v1896_v10  ;;  %v1909_v16 = vrot.slane %v1907_v7, 5  ;;  %v4956_v7 = vld [vmem:[%s5733_s23 + $0x40] sm:$0xf] }
  0x6f   : > { %v1913_v20 = vrot.slane %v1911_v8, 4  ;;  %v1141_v22 = vsel %vm6048_vm5, %v4737_v13, %v1140_v1  ;;  %v1144_v25 = vsel %vm6048_vm5, %v1142_v59, %v1143_v11  ;;  %v1917_v28 = vshll.u32 %v4951_v21, 16  ;;  %v5575_v1 = vld [vmem:[%s7176_s1 + $0x1a8] sm:$0xff]  ;;  %v5628_v21 = vld [vmem:[%s5733_s23 + $0x34] sm:$0xf] }
  0x70   : > { %v1904_v23 = vor.u32 %v1903_v17, %v1900_v15  ;;  %v2283_v24 = vpack.c.b16 %v2253_v51, %v2252_v50  ;;  %v1257_v29 = vunpack.c.l.b16 %v1141_v22  ;;  %v1258_v32 = vunpack.c.l.b16 %v1144_v25  ;;  %3105 = vmatpush.bf16.msra.mxu2 %v5575_v1  ;;  %v5583_v11 = vld [vmem:[%s7176_s1 + $0x1e8] sm:$0xff]  ;;  %v1078_v1 = vld [vmem:[%s5733_s23 + $0x3c] sm:$0xe] }
  0x71   : > { %1688 = vmatmul.bf16.vlgmr.msrb.gmra.mxu3 %v5514_v34  ;;  %v1914_v26 = vor.u32 %v1913_v20, %v1909_v16  ;;  %v1919_v36 = vrot.slane %v1917_v28, 5  ;;  %v1922_v41 = vshrl.u32 %v4952_v37, 16  ;;  %v1925_v42 = vshll.u32 %v4952_v37, 16  ;;  %v5551_v13 = vld [vmem:[%s7176_s1 + $0x168] sm:$0xff]  ;;  %v5629_v37 = vld [vmem:[%s5733_s23 + $0x38] sm:$0x1] }
  0x72   : > { %v1905_v33 = vrot.slane %v1904_v23, 4  ;;  %v1287_v39 = vpack.c.b16 %v1258_v32, %v1257_v29  ;;  %v1931_v46 = vshll.u32 %v4953_v38, 16  ;;  %v1935_v47 = vshrl.u32 %v4953_v38, 16  ;;  %v5591_v59 = vld [vmem:[%s7176_s1 + $0x228] sm:$0xff]  ;;  %3787 = vmatpush.bf16.msra.mxu3 %v5583_v11  ;;  %2790 = vmatpush.bf16.msra.mxu1 %v5551_v13  ;;  %v5631_v13 = vld [vmem:[%s5733_s23 + $0x44] sm:$0x1] }
  0x73   : > { %v1915_v34 = vrot.slane %v1914_v26, 4  ;;  %v1150_v54 = vrot.slane %v6033_v14, 5  ;;  %v1924_v12 = vrot.slane %v1922_v41, 4  ;;  %v1927_v19 = vrot.slane %v1925_v42, 5  ;;  %v5477_v15 = vld [vmem:[%s5733_s23 + $0x24] sm:$0xff]  ;;  %4213 = vmatpush.bf16.msra.mxu0 %v5591_v59 }
  0x74   : > { %v1910_v40 = vsel %vm5748_vm2, %v1905_v33, %v1909_v16  ;;  %v4738_v55 = vrot.slane %v1076_v48, 9  ;;  %v1933_v57 = vrot.slane %v1931_v46, 5  ;;  %v1937_v58 = vrot.slane %v1935_v47, 4  ;;  %v5517_v33 = vld [vmem:[%s5733_s23 + $0x30] sm:$0xff] }
  0x75   : > { %2370 = vmatmul.bf16.vlgmr.msrb.gmra.mxu0 %v2282_v45  ;;  %v1920_v44 = vsel %vm5748_vm2, %v1915_v34, %v1919_v36  ;;  %v1147_v45 = vrot.slane %v6019_v61, 5  ;;  %v2254_v35 = vunpack.c.l.b16 %v1910_v40  ;;  %v4954_v61 = vld [vmem:[%s5733_s23 + $0x38] sm:$0x1]  ;;  %v1928_v63 = vor.u32 %v1927_v19, %v1924_v12  ;;  %v4958_v12 = vld [vmem:[%s5733_s23 + $0x48] sm:$0xf] }
  0x76   : > { %v2255_v49 = vunpack.c.l.b16 %v1920_v44  ;;  %v1938_v14 = vor.u32 %v1937_v58, %v1933_v57  ;;  %v1946_v17 = vshrl.u32 %v4955_v6, 16  ;;  %v1955_v51 = vshll.u32 %v4956_v7, 16  ;;  %v4959_v19 = vld [vmem:[%s5733_s23 + $0x4c] sm:$0xf] }
  0x77   : > { %v1149_v56 = vrot.slane %v1147_v45, 4  ;;  %v1148_v62 = vsel %vm6048_vm5, %v4738_v55, %v1147_v45  ;;  %v1929_v8 = vrot.slane %v1928_v63, 4  ;;  %v1154_v22 = vrot.slane %v5628_v21, 5 }
  0x78   : > { %v2284_v60 = vpack.c.b16 %v2255_v49, %v2254_v35  ;;  %v1259_v3 = vunpack.c.l.b16 %v1148_v62  ;;  %v1939_v9 = vrot.slane %v1938_v14, 4  ;;  %v1959_v23 = vshrl.u32 %v4956_v7, 16  ;;  %v5630_v62 = vld [vmem:[%s5733_s23 + $0x40] sm:$0xf] }
  0x79   : > { %v1934_v16 = vsel %vm5748_vm2, %v1929_v8, %v1933_v57  ;;  %v1948_v25 = vrot.slane %v1946_v17, 4  ;;  %v1957_v32 = vrot.slane %v1955_v51, 5  ;;  %v1156_v36 = vrot.slane %v1154_v22, 4 }
  0x7a   : > { %v2256_v28 = vunpack.c.l.b16 %v1934_v16  ;;  %v1157_v38 = vrot.slane %v5629_v37, 5  ;;  %v1970_v58 = vshrl.u32 %v4958_v12, 16  ;;  %v1983_v14 = vshrl.u32 %v4959_v19, 16  ;;  %v4962_v37 = vld [vmem:[%s5733_s23 + $0x58] sm:$0xf] }
  0x7b   : > { %997 = vmatmul.bf16.gmra.mxu1 %v5475_v0  ;;  %v1151_v0 = vsel %vm6048_vm5, %v1149_v56, %v1150_v54  ;;  %v1164_v59 = vrot.slane %v5631_v13, 5 }
  0x7c   : > { %1378 = vmatmul.bf16.gmra.mxu2 %v1286_v4  ;;  %v1941_v4 = vshll.u32 %v4954_v61, 16  ;;  %v1260_v5 = vunpack.c.l.b16 %v1151_v0  ;;  %v1158_v44 = vsel %vm6048_vm5, %v1156_v36, %v1157_v38  ;;  %v1973_v61 = vshll.u32 %v4958_v12, 16  ;;  %v5582_v38 = vld [vmem:[%s7176_s1 + $0x1e0] sm:$0xff] }
  0x7d   : > { %v1262_v35 = vunpack.c.l.b16 %v1158_v44  ;;  %v1161_v0 = vrot.slane %v5630_v62, 5  ;;  %3788 = vmatpush.bf16.msra.mxu3 %v5582_v38  ;;  %v2007_v12 = vshrl.u32 %v4962_v37, 16 }
  0x7e   : > { %v1943_v10 = vrot.slane %v1941_v4, 5  ;;  %v1288_v50 = vpack.c.b16 %v1260_v5, %v1259_v3  ;;  %v1975_v7 = vrot.slane %v1973_v61, 5 }
  0x7f   : > { %v1163_v11 = vrot.slane %v1161_v0, 4 }
  0x80   : > { %v1944_v20 = vsel %vm5748_vm2, %v1939_v9, %v1943_v10  ;;  %v5518_v9 = vld [vmem:[%s5733_s23 + $0x3c] sm:$0xff]  ;;  %v4740_v10 = vrot.slane %v1078_v1, 9 }
  0x81   : > { %1693 = vmatmul.bf16.gmra.mxu3 %v5515_v18  ;;  %v1949_v18 = vshll.u32 %v4955_v6, 16  ;;  %v2257_v29 = vunpack.c.l.b16 %v1944_v20  ;;  %v1972_v6 = vrot.slane %v1970_v58, 4 }
  0x82   : > { %v1162_v21 = vsel %vm6048_vm5, %v4740_v10, %v1161_v0 }
  0x83   : > { %v1951_v26 = vrot.slane %v1949_v18, 5  ;;  %v2285_v41 = vpack.c.b16 %v2257_v29, %v2256_v28  ;;  %v4960_v18 = vld [vmem:[%s5733_s23 + $0x50] sm:$0x1]  ;;  %v1976_v20 = vor.u32 %v1975_v7, %v1972_v6  ;;  %v1263_v28 = vunpack.c.l.b16 %v1162_v21 }
  0x85   : > { %2375 = vmatmul.bf16.gmra.mxu0 %v2283_v24  ;;  %v1077_v24 = vld [vmem:[%s5733_s23 + $0x30] sm:$0xe]  ;;  %v1952_v40 = vor.u32 %v1951_v26, %v1948_v25  ;;  %v5574_v25 = vld [vmem:[%s7176_s1 + $0x1a0] sm:$0xff] }
  0x86   : > { %v4739_v34 = vrot.slane %v1077_v24, 9  ;;  %v1989_v24 = vshll.u32 %v4960_v18, 16  ;;  %3106 = vmatpush.bf16.msra.mxu2 %v5574_v25 }
  0x87   : > { %v1953_v47 = vrot.slane %v1952_v40, 4 }
  0x88   : > { %v1155_v42 = vsel %vm6048_vm5, %v4739_v34, %v1154_v22  ;;  %v1165_v22 = vsel %vm6048_vm5, %v1163_v11, %v1164_v59  ;;  %v1991_v36 = vrot.slane %v1989_v24, 5 }
  0x89   : > { %v1261_v48 = vunpack.c.l.b16 %v1155_v42  ;;  %v1958_v55 = vsel %vm5748_vm2, %v1953_v47, %v1957_v32  ;;  %v1264_v29 = vunpack.c.l.b16 %v1165_v22  ;;  %v2003_v47 = vshll.u32 %v4962_v37, 16  ;;  %v4964_v22 = vld [vmem:[%s5733_s23 + $0x60] sm:$0xf] }
  0x8a   : > { %v2258_v3 = vunpack.c.l.b16 %v1958_v55  ;;  %v2021_v37 = vshll.u32 %v4964_v22, 16 }
  0x8b   : > { %1002 = vmatmul.bf16.gmra.mxu1 %v5476_v27  ;;  %v1961_v27 = vrot.slane %v1959_v23, 4  ;;  %v1289_v57 = vpack.c.b16 %v1262_v35, %v1261_v48  ;;  %v5590_v48 = vld [vmem:[%s7176_s1 + $0x220] sm:$0xff] }
  0x8c   : > { %1383 = vmatmul.bf16.gmra.mxu2 %v1287_v39  ;;  %v4957_v39 = vld [vmem:[%s5733_s23 + $0x44] sm:$0x1]  ;;  %4214 = vmatpush.bf16.msra.mxu0 %v5590_v48 }
  0x8d   : > { %v1962_v45 = vor.u32 %v1961_v27, %v1957_v32  ;;  %v1965_v46 = vshll.u32 %v4957_v39, 16  ;;  %v1977_v32 = vrot.slane %v1976_v20, 4  ;;  %v5550_v27 = vld [vmem:[%s7176_s1 + $0x160] sm:$0xff] }
  0x8e   : > { %2791 = vmatpush.bf16.msra.mxu1 %v5550_v27 }
  0x8f   : > { %v1963_v49 = vrot.slane %v1962_v45, 4  ;;  %v1967_v54 = vrot.slane %v1965_v46, 5  ;;  %v1290_v46 = vpack.c.b16 %v1264_v29, %v1263_v28  ;;  %v5480_v29 = vld [vmem:[%s5733_s23 + $0x48] sm:$0xff] }
  0x91   : > { %1698 = vmatmul.bf16.gmra.mxu3 %v5516_v31  ;;  %v5478_v31 = vld [vmem:[%s5733_s23 + $0x30] sm:$0xff]  ;;  %v1968_v63 = vsel %vm5748_vm2, %v1963_v49, %v1967_v54  ;;  %v1168_v54 = vrot.slane %v5891_v2, 5 }
  0x92   : > { %v2259_v5 = vunpack.c.l.b16 %v1968_v63  ;;  %v5519_v63 = vld [vmem:[%s5733_s23 + $0x48] sm:$0xff] }
  0x93   : > { %v1170_v0 = vrot.slane %v1168_v54, 4 }
  0x94   : > { %v2286_v51 = vpack.c.b16 %v2259_v5, %v2258_v3  ;;  %v2009_v3 = vrot.slane %v2007_v12, 4  ;;  %v4963_v5 = vld [vmem:[%s5733_s23 + $0x5c] sm:$0x1] }
  0x95   : > { %2380 = vmatmul.bf16.gmra.mxu0 %v2284_v60  ;;  %v1979_v60 = vshll.u32 %v4959_v19, 16  ;;  %v1079_v19 = vld [vmem:[%s5733_s23 + $0x48] sm:$0xe]  ;;  %v2013_v59 = vshll.u32 %v4963_v5, 16  ;;  %v5573_v5 = vld [vmem:[%s7176_s1 + $0x198] sm:$0xff] }
  0x96   : > { %v4741_v62 = vrot.slane %v1079_v19, 9  ;;  %3107 = vmatpush.bf16.msra.mxu2 %v5573_v5 }
  0x97   : > { %v1981_v8 = vrot.slane %v1979_v60, 5  ;;  %v2005_v60 = vrot.slane %v2003_v47, 5  ;;  %v2015_v21 = vrot.slane %v2013_v59, 5  ;;  %v4967_v59 = vld [vmem:[%s5733_s23 + $0x6c] sm:$0xf] }
  0x98   : > { %v1169_v10 = vsel %vm6048_vm5, %v4741_v62, %v1168_v54  ;;  %v5520_v54 = vld [vmem:[%s5733_s23 + $0x54] sm:$0xff] }
  0x99   : > { %v1982_v35 = vsel %vm5748_vm2, %v1977_v32, %v1981_v8  ;;  %v2010_v13 = vor.u32 %v2009_v3, %v2005_v60  ;;  %v1265_v18 = vunpack.c.l.b16 %v1169_v10 }
  0x9a   : > { %v2260_v58 = vunpack.c.l.b16 %v1982_v35  ;;  %v2023_v35 = vrot.slane %v2021_v37, 5  ;;  %v5633_v37 = vld [vmem:[%s5733_s23 + $0x64] sm:$0xf] }
  0x9b   : > { %1007 = vmatmul.bf16.gmra.mxu1 %v5477_v15  ;;  %v1985_v15 = vrot.slane %v1983_v14, 4  ;;  %v5632_v14 = vld [vmem:[%s5733_s23 + $0x50] sm:$0x1]  ;;  %v2011_v20 = vrot.slane %v2010_v13, 4 }
  0x9c   : > { %1388 = vmatmul.bf16.gmra.mxu2 %v1288_v50  ;;  %v1171_v1 = vrot.slane %v5632_v14, 5 }
  0x9d   : > { %v1986_v23 = vor.u32 %v1985_v15, %v1981_v8  ;;  %v2016_v27 = vsel %vm5748_vm2, %v2011_v20, %v2015_v21  ;;  %v5481_v20 = vld [vmem:[%s5733_s23 + $0x54] sm:$0xff]  ;;  %v4968_v21 = vld [vmem:[%s5733_s23 + $0x70] sm:$0xf] }
  0x9e   : > { %v1172_v11 = vsel %vm6048_vm5, %v1170_v0, %v1171_v1  ;;  %v2263_v47 = vunpack.c.l.b16 %v2016_v27  ;;  %v2045_v27 = vshll.u32 %v4967_v59, 16 }
  0x9f   : > { %v1987_v34 = vrot.slane %v1986_v23, 4  ;;  %v4965_v23 = vld [vmem:[%s5733_s23 + $0x64] sm:$0xf] }
  0xa0   : > { %v2027_v38 = vshll.u32 %v4965_v23, 16 }
  0xa1   : > { %1703 = vmatmul.bf16.gmra.mxu3 %v5517_v33  ;;  %v4961_v33 = vld [vmem:[%s5733_s23 + $0x54] sm:$0xf]  ;;  %v1992_v49 = vsel %vm5748_vm2, %v1987_v34, %v1991_v36  ;;  %v2018_v36 = vshrl.u32 %v4964_v22, 16 }
  0xa2   : > { %v1994_v42 = vshrl.u32 %v4961_v33, 16  ;;  %v1997_v44 = vshll.u32 %v4961_v33, 16  ;;  %v2261_v61 = vunpack.c.l.b16 %v1992_v49  ;;  %v2029_v49 = vrot.slane %v2027_v38, 5 }
  0xa3   : > { %v2020_v48 = vrot.slane %v2018_v36, 4  ;;  %v1182_v38 = vrot.slane %v5633_v37, 5 }
  0xa4   : > { %v1999_v55 = vrot.slane %v1997_v44, 5  ;;  %v2287_v8 = vpack.c.b16 %v2261_v61, %v2260_v58  ;;  %v1080_v44 = vld [vmem:[%s5733_s23 + $0x54] sm:$0xe]  ;;  %v4966_v61 = vld [vmem:[%s5733_s23 + $0x68] sm:$0x1] }
  0xa5   : > { %2385 = vmatmul.bf16.gmra.mxu0 %v2285_v41  ;;  %v5479_v41 = vld [vmem:[%s5733_s23 + $0x3c] sm:$0xff]  ;;  %v4742_v12 = vrot.slane %v1080_v44, 9  ;;  %v2024_v62 = vor.u32 %v2023_v35, %v2020_v48  ;;  %v2037_v3 = vshll.u32 %v4966_v61, 16  ;;  %v2051_v44 = vshll.u32 %v4968_v21, 16 }
  0xa6   : > { %v2047_v61 = vrot.slane %v2045_v27, 5  ;;  %v5482_v27 = vld [vmem:[%s5733_s23 + $0x60] sm:$0xff] }
  0xa7   : > { %v2025_v10 = vrot.slane %v2024_v62, 4  ;;  %v2039_v13 = vrot.slane %v2037_v3, 5 }
  0xa8   : > { %v6156_v56 = vpop.f32.mrf.mxu1 }
  0xab   : > { %v6161_v4 = vpop.f32.mrf.mxu0  ;;  %1012 = vmatmul.bf16.gmra.mxu1 %v5478_v31  ;;  %v1996_v31 = vrot.slane %v1994_v42, 4  ;;  %v2031_v42 = vshrl.u32 %v4965_v23, 16 }
  0xac   : > { %1393 = vmatmul.bf16.gmra.mxu2 %v1289_v57 }
  0xad   : > { %v2000_v7 = vor.u32 %v1999_v55, %v1996_v31  ;;  %v1178_v31 = vrot.slane %v5981_v53, 5  ;;  %v2033_v55 = vrot.slane %v2031_v42, 4  ;;  %v1081_v42 = vld [vmem:[%s5733_s23 + $0x60] sm:$0xe] }
  0xae   : > { %v6166_v17 = vpop.f32.mrf.mxu2 }
  0xaf   : > { %v6169_v50 = vpop.f32.mrf.mxu3  ;;  %v2001_v15 = vrot.slane %v2000_v7, 4  ;;  %v2034_v1 = vor.u32 %v2033_v55, %v2029_v49 }
  0xb0   : > { %v6171_v16 = vpop.f32.mrf.mxu1 }
  0xb1   : > { %1708 = vmatmul.bf16.gmra.mxu3 %v5518_v9  ;;  %v2006_v32 = vsel %vm5748_vm2, %v2001_v15, %v2005_v60  ;;  %v5581_v15 = vld [vmem:[%s7176_s1 + $0x1d8] sm:$0xff] }
  0xb2   : > { %3789 = vmatpush.bf16.msra.mxu3 %v5581_v15 }
  0xb3   : > { %v6180_v26 = vpop.f32.mrf.mxu0 }
  0xb5   : > { %2390 = vmatmul.bf16.gmra.mxu0 %v2286_v51  ;;  %v1266_v51 = vunpack.c.l.b16 %v1172_v11  ;;  %v2035_v11 = vrot.slane %v2034_v1, 4 }
  0xb6   : > { %v6190_v39 = vpop.f32.mrf.mxu2 }
  0xb7   : > { %v6192_v40 = vpop.f32.mrf.mxu3  ;;  %v1291_v34 = vpack.c.b16 %v1266_v51, %v1265_v18  ;;  %v5549_v18 = vld [vmem:[%s7176_s1 + $0x158] sm:$0xff]  ;;  %v2040_v36 = vsel %vm5748_vm2, %v2035_v11, %v2039_v13 }
  0xb8   : > { %v6195_v45 = vpop.f32.mrf.mxu1  ;;  %2792 = vmatpush.bf16.msra.mxu1 %v5549_v18  ;;  %v2265_v35 = vunpack.c.l.b16 %v2040_v36 }
  0xbb   : > { %1017 = vmatmul.bf16.gmra.mxu1 %v5479_v41  ;;  %v1175_v41 = vrot.slane %v5978_v52, 5 }
  0xbc   : > { %v6206_v57 = vpop.f32.mrf.mxu0  ;;  %1398 = vmatmul.bf16.gmra.mxu2 %v1290_v46  ;;  %v2262_v46 = vunpack.c.l.b16 %v2006_v32 }
  0xbd   : > { %v1177_v19 = vrot.slane %v1175_v41, 4  ;;  %v1176_v14 = vsel %vm6048_vm5, %v4742_v12, %v1175_v41  ;;  %v4743_v12 = vrot.slane %v1081_v42, 9 }
  0xbe   : > { %v6210_v2 = vpop.f32.mrf.mxu2  ;;  %v2288_v60 = vpack.c.b16 %v2263_v47, %v2262_v46  ;;  %v1267_v7 = vunpack.c.l.b16 %v1176_v14  ;;  %v2055_v46 = vshrl.u32 %v4968_v21, 16  ;;  %v5589_v47 = vld [vmem:[%s7176_s1 + $0x218] sm:$0xff] }
  0xbf   : > { %v6213_v6 = vpop.f32.mrf.mxu3  ;;  %v1179_v53 = vsel %vm6048_vm5, %v1177_v19, %v1178_v31  ;;  %4215 = vmatpush.bf16.msra.mxu0 %v5589_v47  ;;  %v1184_v19 = vrot.slane %v1182_v38, 4  ;;  %v5634_v31 = vld [vmem:[%s5733_s23 + $0x68] sm:$0x1]  ;;  %v1183_v5 = vsel %vm6048_vm5, %v4743_v12, %v1182_v38  ;;  %v4971_v21 = vld [vmem:[%s5733_s23 + $0x7c] sm:$0xf] }
  0xc0   : > { %v6215_v9 = vpop.f32.mrf.mxu1  ;;  %v1185_v55 = vrot.slane %v5634_v31, 5  ;;  %v2057_v62 = vrot.slane %v2055_v46, 4  ;;  %v1269_v18 = vunpack.c.l.b16 %v1183_v5  ;;  %v2075_v42 = vshll.u32 %v4971_v21, 16  ;;  %v5635_v47 = vld [vmem:[%s5733_s23 + $0x70] sm:$0xf] }
  0xc1   : > { %1713 = vmatmul.bf16.gmra.mxu3 %v5519_v63 }
  0xc4   : > { %v6223_v24 = vpop.f32.mrf.mxu0 }
  0xc5   : > { %2395 = vmatmul.bf16.gmra.mxu0 %v2287_v8  ;;  %v1268_v8 = vunpack.c.l.b16 %v1179_v53  ;;  %v4969_v53 = vld [vmem:[%s5733_s23 + $0x74] sm:$0x1] }
  0xc6   : > { %v6225_v25 = vpop.f32.mrf.mxu2  ;;  %v2061_v13 = vshll.u32 %v4969_v53, 16 }
  0xc7   : > { %v6227_v28 = vpop.f32.mrf.mxu3  ;;  %v1292_v23 = vpack.c.b16 %v1268_v8, %v1267_v7  ;;  %v1186_v7 = vsel %vm6048_vm5, %v1184_v19, %v1185_v55 }
  0xc8   : > { %v6232_v33 = vpop.f32.mrf.mxu1 }
  0xcb   : > { %1022 = vmatmul.bf16.gmra.mxu1 %v5480_v29  ;;  %v2042_v29 = vshrl.u32 %v4967_v59, 16  ;;  %v4970_v59 = vld [vmem:[%s5733_s23 + $0x78] sm:$0xf] }
  0xcc   : > { %1403 = vmatmul.bf16.gmra.mxu2 %v1291_v34  ;;  %v2030_v34 = vsel %vm5748_vm2, %v2025_v10, %v2029_v49  ;;  %v2066_v36 = vshrl.u32 %v4970_v59, 16  ;;  %v2069_v37 = vshll.u32 %v4970_v59, 16 }
  0xcd   : > { %v2264_v48 = vunpack.c.l.b16 %v2030_v34  ;;  %v2044_v49 = vrot.slane %v2042_v29, 4  ;;  %v2063_v34 = vrot.slane %v2061_v13, 5  ;;  %v5522_v13 = vld [vmem:[%s5733_s23 + $0x6c] sm:$0xff] }
  0xce   : > { %v6240_v58 = vpop.f32.mrf.mxu2  ;;  %v2068_v55 = vrot.slane %v2066_v36, 4 }
  0xcf   : > { %v2289_v1 = vpack.c.b16 %v2265_v35, %v2264_v48  ;;  %v2048_v8 = vor.u32 %v2047_v61, %v2044_v49  ;;  %v1189_v48 = vrot.slane %v5635_v47, 5  ;;  %v2071_v61 = vrot.slane %v2069_v37, 5  ;;  %v5572_v47 = vld [vmem:[%s7176_s1 + $0x190] sm:$0xff] }
  0xd0   : > { %v6243_v52 = vpop.f32.mrf.mxu0  ;;  %v6245_v63 = vpop.f32.mrf.mxu3  ;;  %3108 = vmatpush.bf16.msra.mxu2 %v5572_v47 }
  0xd1   : > { %1718 = vmatmul.bf16.gmra.mxu3 %v5520_v54  ;;  %v6247_v0 = vpop.f32.mrf.mxu1  ;;  %v5521_v54 = vld [vmem:[%s5733_s23 + $0x60] sm:$0xff] }
  0xd5   : > { %2400 = vmatmul.bf16.gmra.mxu0 %v2288_v60  ;;  %v2053_v60 = vrot.slane %v2051_v44, 5  ;;  %v2079_v44 = vshrl.u32 %v4971_v21, 16 }
  0xd6   : > { %v6263_v51 = vpop.f32.mrf.mxu2 }
  0xd7   : > { %v2058_v11 = vor.u32 %v2057_v62, %v2053_v60  ;;  %v2077_v62 = vrot.slane %v2075_v42, 5  ;;  %v2081_v53 = vrot.slane %v2079_v44, 4 }
  0xd8   : > { %v6267_v22 = vpop.f32.mrf.mxu0  ;;  %v6276_v41 = vpop.f32.mrf.mxu3 }
  0xd9   : > { %v6269_v32 = vpop.f32.mrf.mxu1  ;;  %v2059_v29 = vrot.slane %v2058_v11, 4  ;;  %v4972_v11 = vld [vmem:[%s5733_s23 + $0x80] sm:$0x1]  ;;  %v2082_v21 = vor.u32 %v2081_v53, %v2077_v62  ;;  %v5548_v53 = vld [vmem:[%s7176_s1 + $0x150] sm:$0xff] }
  0xda   : > { %2793 = vmatpush.bf16.msra.mxu1 %v5548_v53 }
  0xdb   : > { %1027 = vmatmul.bf16.gmra.mxu1 %v5481_v20  ;;  %v1270_v20 = vunpack.c.l.b16 %v1186_v7  ;;  %v2064_v31 = vsel %vm5748_vm2, %v2059_v29, %v2063_v34  ;;  %v5636_v7 = vld [vmem:[%s5733_s23 + $0x74] sm:$0x1] }
  0xdc   : > { %1408 = vmatmul.bf16.gmra.mxu2 %v1292_v23  ;;  %v2049_v23 = vrot.slane %v2048_v8, 4  ;;  %v1192_v8 = vrot.slane %v5636_v7, 5  ;;  %v5483_v7 = vld [vmem:[%s5733_s23 + $0x6c] sm:$0xff] }
  0xdd   : > { %v1293_v46 = vpack.c.b16 %v1270_v20, %v1269_v18  ;;  %v2267_v18 = vunpack.c.l.b16 %v2064_v31  ;;  %v4973_v31 = vld [vmem:[%s5733_s23 + $0x84] sm:$0xf] }
  0xde   : > { %v2054_v49 = vsel %vm5748_vm2, %v2049_v23, %v2053_v60  ;;  %v1191_v60 = vrot.slane %v1189_v48, 4  ;;  %v2085_v23 = vshll.u32 %v4972_v11, 16 }
  0xdf   : > { %v6284_v14 = vpop.f32.mrf.mxu2  ;;  %v2266_v59 = vunpack.c.l.b16 %v2054_v49 }
  0xe0   : > { %v1193_v36 = vsel %vm6048_vm5, %v1191_v60, %v1192_v8 }
  0xe1   : > { %1723 = vmatmul.bf16.gmra.mxu3 %v5521_v54  ;;  %v6287_v3 = vpop.f32.mrf.mxu1  ;;  %v1082_v54 = vld [vmem:[%s5733_s23 + $0x6c] sm:$0xe]  ;;  %v2290_v37 = vpack.c.b16 %v2267_v18, %v2266_v59  ;;  %v1272_v49 = vunpack.c.l.b16 %v1193_v36 }
  0xe2   : > { %v6293_v10 = vpop.f32.mrf.mxu0  ;;  %v4744_v5 = vrot.slane %v1082_v54, 9  ;;  %v2083_v54 = vrot.slane %v2082_v21, 4 }
  0xe4   : > { %v6296_v15 = vpop.f32.mrf.mxu3  ;;  %v1190_v34 = vsel %vm6048_vm5, %v4744_v5, %v1189_v48  ;;  %v2087_v48 = vrot.slane %v2085_v23, 5 }
  0xe5   : > { %2405 = vmatmul.bf16.gmra.mxu0 %v2289_v1 }
  0xe6   : > { %v2088_v11 = vsel %vm5748_vm2, %v2083_v54, %v2087_v48 }
  0xe7   : > { %v6299_v38 = vpop.f32.mrf.mxu2 }
  0xe9   : > { %v993_v35 = vpop.f32.mrf.mxu1 }
  0xea   : > { %v6306_v12 = vpop.f32.mrf.mxu0  ;;  %v994_v19 = vadd.f32 %v993_v35, %v6161_v4  ;;  %v2072_v4 = vor.u32 %v2071_v61, %v2068_v55  ;;  %v1271_v35 = vunpack.c.l.b16 %v1190_v34  ;;  %v4974_v61 = vld [vmem:[%s5733_s23 + $0x88] sm:$0xf] }
  0xeb   : > { %1032 = vmatmul.bf16.gmra.mxu1 %v5482_v27  ;;  %v2103_v21 = vshrl.u32 %v4974_v61, 16 }
  0xec   : > { %v6311_v1 = vpop.f32.mrf.mxu3  ;;  %1413 = vmatmul.bf16.gmra.mxu2 %v1293_v46  ;;  %v2073_v46 = vrot.slane %v2072_v4, 4  ;;  %v1294_v8 = vpack.c.b16 %v1272_v49, %v1271_v35  ;;  %v2093_v4 = vshll.u32 %v4973_v31, 16 }
  0xed   : > { %v2105_v54 = vrot.slane %v2103_v21, 4 }
  0xee   : > { %v2078_v5 = vsel %vm5748_vm2, %v2073_v46, %v2077_v62  ;;  %v2095_v35 = vrot.slane %v2093_v4, 5 }
  0xef   : > { %v1374_v20 = vpop.f32.mrf.mxu2 }
  0xf0   : > { %v1454_v29 = vadd.f32 %v1374_v20, %v994_v19  ;;  %v2099_v20 = vshll.u32 %v4974_v61, 16 }
  0xf1   : > { %1728 = vmatmul.bf16.gmra.mxu3 %v5522_v13  ;;  %v995_v27 = vpop.f32.mrf.mxu1  ;;  %v2090_v13 = vshrl.u32 %v4973_v31, 16 }
  0xf2   : > { %v2371_v42 = vpop.f32.mrf.mxu0  ;;  %v996_v44 = vadd.f32 %v995_v27, %v6180_v26  ;;  %v5580_v26 = vld [vmem:[%s7176_s1 + $0x1d0] sm:$0xff]  ;;  %v2101_v49 = vrot.slane %v2099_v20, 5 }
  0xf3   : > { %3790 = vmatpush.bf16.msra.mxu3 %v5580_v26  ;;  %v5588_v27 = vld [vmem:[%s7176_s1 + $0x210] sm:$0xff]  ;;  %v2092_v47 = vrot.slane %v2090_v13, 4  ;;  %v4975_v26 = vld [vmem:[%s5733_s23 + $0x8c] sm:$0x1] }
  0xf4   : > { %v1689_v19 = vpop.f32.mrf.mxu3  ;;  %4216 = vmatpush.bf16.msra.mxu0 %v5588_v27  ;;  %v2109_v4 = vshll.u32 %v4975_v26, 16  ;;  %v5639_v26 = vld [vmem:[%s5733_s23 + $0x88] sm:$0xf] }
  0xf5   : > { %2410 = vmatmul.bf16.gmra.mxu0 %v2290_v37  ;;  %v1769_v55 = vadd.f32 %v1689_v19, %v1454_v29  ;;  %v5637_v29 = vld [vmem:[%s5733_s23 + $0x7c] sm:$0xf]  ;;  %v1083_v37 = vld [vmem:[%s5733_s23 + $0x78] sm:$0xe] }
  0xf6   : > { %v1196_v34 = vrot.slane %v5637_v29, 5  ;;  %v5523_v19 = vld [vmem:[%s5733_s23 + $0x78] sm:$0xff] }
  0xf7   : > { %v1376_v60 = vpop.f32.mrf.mxu2  ;;  %v6337_v59 = vadd.f32 %v2371_v42, %v1769_v55  ;;  %v2268_v42 = vunpack.c.l.b16 %v2078_v5  ;;  %v5638_v55 = vld [vmem:[%s5733_s23 + $0x80] sm:$0x1] }
  0xf8   : > { %v1455_v18 = vadd.f32 %v1376_v60, %v996_v44  ;;  %v2269_v44 = vunpack.c.l.b16 %v2088_v11  ;;  %v1198_v31 = vrot.slane %v1196_v34, 4  ;;  %v1199_v61 = vrot.slane %v5638_v55, 5 }
  0xf9   : > { %v998_v23 = vpop.f32.mrf.mxu1 }
  0xfa   : > { %v2373_v62 = vpop.f32.mrf.mxu0  ;;  %v999_v36 = vadd.f32 %v998_v23, %v6206_v57  ;;  %v4745_v57 = vrot.slane %v1083_v37, 9  ;;  %v2291_v60 = vpack.c.b16 %v2269_v44, %v2268_v42  ;;  %v2096_v23 = vor.u32 %v2095_v35, %v2092_v47  ;;  %v5484_v47 = vld [vmem:[%s5733_s23 + $0x78] sm:$0xff]  ;;  %v4977_v35 = vld [vmem:[%s5733_s23 + $0x94] sm:$0xf] }
  0xfb   : > { %1037 = vmatmul.bf16.gmra.mxu1 %v5483_v7  ;;  %v1200_v13 = vsel %vm6048_vm5, %v1198_v31, %v1199_v61  ;;  %v2111_v44 = vrot.slane %v2109_v4, 5 }
  0xfc   : > { %v1691_v46 = vpop.f32.mrf.mxu3  ;;  %1418 = vmatmul.bf16.gmra.mxu2 %v1294_v8  ;;  %v1197_v11 = vsel %vm6048_vm5, %v4745_v57, %v1196_v34  ;;  %v2097_v27 = vrot.slane %v2096_v23, 4  ;;  %v4976_v34 = vld [vmem:[%s5733_s23 + $0x90] sm:$0xf]  ;;  %v1084_v23 = vld [vmem:[%s5733_s23 + $0x84] sm:$0xe] }
  0xfd   : > { %v1770_v48 = vadd.f32 %v1691_v46, %v1455_v18  ;;  %v2106_v18 = vor.u32 %v2105_v54, %v2101_v49  ;;  %v2114_v57 = vshrl.u32 %v4976_v34, 16 }
  0xfe   : > { %v2102_v55 = vsel %vm5748_vm2, %v2097_v27, %v2101_v49 }
  0xff   : > { %v1379_v53 = vpop.f32.mrf.mxu2  ;;  %v6348_v5 = vadd.f32 %v2373_v62, %v1770_v48  ;;  %v1274_v62 = vunpack.c.l.b16 %v1200_v13  ;;  %v2107_v42 = vrot.slane %v2106_v18, 4  ;;  %v2270_v18 = vunpack.c.l.b16 %v2102_v55 }
 0x100   : > { %v1456_v7 = vadd.f32 %v1379_v53, %v999_v36  ;;  %v1273_v36 = vunpack.c.l.b16 %v1197_v11  ;;  %v1203_v53 = vrot.slane %v5639_v26, 5  ;;  %v2127_v11 = vshrl.u32 %v4977_v35, 16 }
 0x101   : > { %1733 = vmatmul.bf16.gmra.mxu3 %v5523_v19  ;;  %v1000_v8 = vpop.f32.mrf.mxu1  ;;  %v2112_v61 = vsel %vm5748_vm2, %v2107_v42, %v2111_v44  ;;  %v2116_v49 = vrot.slane %v2114_v57, 4 }
 0x102   : > { %v2376_v20 = vpop.f32.mrf.mxu0  ;;  %v1001_v21 = vadd.f32 %v1000_v8, %v6223_v24  ;;  %v1295_v19 = vpack.c.b16 %v1274_v62, %v1273_v36  ;;  %v2117_v24 = vshll.u32 %v4976_v34, 16  ;;  %v2123_v8 = vshll.u32 %v4977_v35, 16  ;;  %v4978_v34 = vld [vmem:[%s5733_s23 + $0x98] sm:$0x1] }
 0x103   : > { %v2271_v4 = vunpack.c.l.b16 %v2112_v61  ;;  %v4746_v36 = vrot.slane %v1084_v23, 9  ;;  %v1205_v62 = vrot.slane %v1203_v53, 4  ;;  %v2133_v26 = vshll.u32 %v4978_v34, 16 }
 0x104   : > { %v1694_v29 = vpop.f32.mrf.mxu3  ;;  %v6369_v42 = vrot.slane %v2123_v8, 5 }
 0x105   : > { %2415 = vmatmul.bf16.gmra.mxu0 %v2291_v60  ;;  %v1771_v37 = vadd.f32 %v1694_v29, %v1456_v7  ;;  %v5524_v29 = vld [vmem:[%s5733_s23 + $0x84] sm:$0xff]  ;;  %v2292_v35 = vpack.c.b16 %v2271_v4, %v2270_v18 }
 0x106   : > { %v5547_v4 = vld [vmem:[%s7176_s1 + $0x148] sm:$0xff] }
 0x107   : > { %v1381_v46 = vpop.f32.mrf.mxu2  ;;  %v6358_v48 = vadd.f32 %v2376_v20, %v1771_v37  ;;  %v2119_v20 = vrot.slane %v2117_v24, 5  ;;  %v5640_v37 = vld [vmem:[%s5733_s23 + $0x8c] sm:$0x1]  ;;  %2794 = vmatpush.bf16.msra.mxu1 %v5547_v4 }
 0x108   : > { %v1457_v54 = vadd.f32 %v1381_v46, %v1001_v21  ;;  %v1206_v27 = vrot.slane %v5640_v37, 5 }
 0x109   : > { %v1003_v31 = vpop.f32.mrf.mxu1  ;;  %v2120_v24 = vor.u32 %v2119_v20, %v2116_v49  ;;  %v2135_v20 = vrot.slane %v2133_v26, 5 }
 0x10a   : > { %v2378_v60 = vpop.f32.mrf.mxu0  ;;  %v1004_v7 = vadd.f32 %v1003_v31, %v6243_v52  ;;  %v2129_v52 = vrot.slane %v2127_v11, 4  ;;  %v1207_v57 = vsel %vm6048_vm5, %v1205_v62, %v1206_v27  ;;  %v5485_v62 = vld [vmem:[%s5733_s23 + $0x84] sm:$0xff] }
 0x10b   : > { %1042 = vmatmul.bf16.gmra.mxu1 %v5484_v47  ;;  %v1276_v11 = vunpack.c.l.b16 %v1207_v57  ;;  %v2121_v18 = vrot.slane %v2120_v24, 4  ;;  %v1085_v57 = vld [vmem:[%s5733_s23 + $0x90] sm:$0xe] }
 0x10c   : > { %v1696_v13 = vpop.f32.mrf.mxu3  ;;  %1423 = vmatmul.bf16.gmra.mxu2 %v1295_v19  ;;  %v2130_v61 = vor.u32 %v2129_v52, %v6369_v42 }
 0x10d   : > { %v1772_v21 = vadd.f32 %v1696_v13, %v1457_v54  ;;  %v1204_v54 = vsel %vm6048_vm5, %v4746_v36, %v1203_v53  ;;  %v4980_v53 = vld [vmem:[%s5733_s23 + $0xa0] sm:$0xf] }
 0x10e   : > { %v1275_v8 = vunpack.c.l.b16 %v1204_v54  ;;  %v2131_v49 = vrot.slane %v2130_v61, 4  ;;  %v2147_v37 = vshll.u32 %v4980_v53, 16  ;;  %v2151_v27 = vshrl.u32 %v4980_v53, 16  ;;  %v5642_v53 = vld [vmem:[%s5733_s23 + $0x98] sm:$0x1] }
 0x10f   : > { %v1384_v44 = vpop.f32.mrf.mxu2  ;;  %v6372_v47 = vadd.f32 %v2378_v60, %v1772_v21  ;;  %v5571_v60 = vld [vmem:[%s7176_s1 + $0x188] sm:$0xff]  ;;  %v2126_v54 = vsel %vm5748_vm2, %v2121_v18, %v6369_v42  ;;  %v4747_v42 = vrot.slane %v1085_v57, 9 }
 0x110   : > { %v1458_v46 = vadd.f32 %v1384_v44, %v1004_v7  ;;  %v4979_v7 = vld [vmem:[%s5733_s23 + $0x9c] sm:$0xf]  ;;  %3109 = vmatpush.bf16.msra.mxu2 %v5571_v60  ;;  %v1296_v34 = vpack.c.b16 %v1276_v11, %v1275_v8  ;;  %v2136_v26 = vsel %vm5748_vm2, %v2131_v49, %v2135_v20  ;;  %v5587_v60 = vld [vmem:[%s7176_s1 + $0x208] sm:$0xff]  ;;  %v2272_v4 = vunpack.c.l.b16 %v2126_v54 }
 0x111   : > { %1738 = vmatmul.bf16.gmra.mxu3 %v5524_v29  ;;  %v1005_v19 = vpop.f32.mrf.mxu1  ;;  %v2138_v21 = vshrl.u32 %v4979_v7, 16  ;;  %v2141_v29 = vshll.u32 %v4979_v7, 16  ;;  %v2149_v7 = vrot.slane %v2147_v37, 5  ;;  %4217 = vmatpush.bf16.msra.mxu0 %v5587_v60  ;;  %v2273_v49 = vunpack.c.l.b16 %v2136_v26 }
 0x112   : > { %v2381_v31 = vpop.f32.mrf.mxu0  ;;  %v1006_v55 = vadd.f32 %v1005_v19, %v6267_v22  ;;  %v5579_v22 = vld [vmem:[%s7176_s1 + $0x1c8] sm:$0xff] }
 0x113   : > { %3791 = vmatpush.bf16.msra.mxu3 %v5579_v22  ;;  %v5525_v22 = vld [vmem:[%s5733_s23 + $0x90] sm:$0xff] }
 0x114   : > { %v1699_v23 = vpop.f32.mrf.mxu3 }
 0x115   : > { %2420 = vmatmul.bf16.gmra.mxu0 %v2292_v35  ;;  %v1773_v13 = vadd.f32 %v1699_v23, %v1458_v46  ;;  %v5641_v46 = vld [vmem:[%s5733_s23 + $0x94] sm:$0xf]  ;;  %v2153_v23 = vrot.slane %v2151_v27, 4 }
 0x116   : > { %v1210_v35 = vrot.slane %v5641_v46, 5 }
 0x117   : > { %v1386_v36 = vpop.f32.mrf.mxu2  ;;  %v6392_v52 = vadd.f32 %v2381_v31, %v1773_v13  ;;  %v2140_v31 = vrot.slane %v2138_v21, 4  ;;  %v1213_v13 = vrot.slane %v5642_v53, 5 }
 0x118   : > { %v1459_v44 = vadd.f32 %v1386_v36, %v1006_v55  ;;  %v2143_v55 = vrot.slane %v2141_v29, 5  ;;  %v1212_v11 = vrot.slane %v1210_v35, 4  ;;  %v2154_v29 = vor.u32 %v2153_v23, %v2149_v7 }
 0x119   : > { %v1008_v19 = vpop.f32.mrf.mxu1  ;;  %v1211_v37 = vsel %vm6048_vm5, %v4747_v42, %v1210_v35  ;;  %v4982_v35 = vld [vmem:[%s5733_s23 + $0xa8] sm:$0xf] }
 0x11a   : > { %v2383_v24 = vpop.f32.mrf.mxu0  ;;  %v1009_v61 = vadd.f32 %v1008_v19, %v6293_v10  ;;  %v4981_v10 = vld [vmem:[%s5733_s23 + $0xa4] sm:$0x1]  ;;  %v2144_v20 = vor.u32 %v2143_v55, %v2140_v31  ;;  %v1214_v27 = vsel %vm6048_vm5, %v1212_v11, %v1213_v13  ;;  %v1277_v26 = vunpack.c.l.b16 %v1211_v37  ;;  %v5486_v11 = vld [vmem:[%s5733_s23 + $0x90] sm:$0xff] }
 0x11b   : > { %1047 = vmatmul.bf16.gmra.mxu1 %v5485_v62  ;;  %v2157_v36 = vshll.u32 %v4981_v10, 16  ;;  %v1278_v31 = vunpack.c.l.b16 %v1214_v27  ;;  %v2162_v13 = vshrl.u32 %v4982_v35, 16 }
 0x11c   : > { %v1701_v8 = vpop.f32.mrf.mxu3  ;;  %1428 = vmatmul.bf16.gmra.mxu2 %v1296_v34  ;;  %v2145_v57 = vrot.slane %v2144_v20, 4 }
 0x11d   : > { %v1774_v18 = vadd.f32 %v1701_v8, %v1459_v44  ;;  %v2293_v44 = vpack.c.b16 %v2273_v49, %v2272_v4  ;;  %v2159_v55 = vrot.slane %v2157_v36, 5  ;;  %v4983_v8 = vld [vmem:[%s5733_s23 + $0xac] sm:$0xf]  ;;  %v1297_v53 = vpack.c.b16 %v1278_v31, %v1277_v26  ;;  %v5526_v26 = vld [vmem:[%s5733_s23 + $0x9c] sm:$0xff] }
 0x11e   : > { %v2171_v4 = vshll.u32 %v4983_v8, 16  ;;  %v2175_v49 = vshrl.u32 %v4983_v8, 16 }
 0x11f   : > { %v1389_v21 = vpop.f32.mrf.mxu2  ;;  %v6412_v34 = vadd.f32 %v2383_v24, %v1774_v18  ;;  %v2150_v24 = vsel %vm5748_vm2, %v2145_v57, %v2149_v7  ;;  %v1086_v7 = vld [vmem:[%s5733_s23 + $0x9c] sm:$0xe] }
 0x120   : > { %v1460_v62 = vadd.f32 %v1389_v21, %v1009_v61  ;;  %v2155_v61 = vrot.slane %v2154_v29, 4  ;;  %v5643_v21 = vld [vmem:[%s5733_s23 + $0xa0] sm:$0xf]  ;;  %v4748_v31 = vrot.slane %v1086_v7, 9  ;;  %v4985_v7 = vld [vmem:[%s5733_s23 + $0xb4] sm:$0xf] }
 0x121   : > { %1743 = vmatmul.bf16.gmra.mxu3 %v5525_v22  ;;  %v1010_v46 = vpop.f32.mrf.mxu1  ;;  %v2165_v22 = vshll.u32 %v4982_v35, 16  ;;  %v1217_v29 = vrot.slane %v5643_v21, 5 }
 0x122   : > { %v2386_v19 = vpop.f32.mrf.mxu0  ;;  %v1011_v54 = vadd.f32 %v1010_v46, %v6306_v12  ;;  %v2160_v12 = vsel %vm5748_vm2, %v2155_v61, %v2159_v55  ;;  %v5644_v55 = vld [vmem:[%s5733_s23 + $0xa4] sm:$0x1] }
 0x123   : > { %v2275_v37 = vunpack.c.l.b16 %v2160_v12  ;;  %v2167_v46 = vrot.slane %v2165_v22, 5  ;;  %v1219_v61 = vrot.slane %v1217_v29, 4 }
 0x124   : > { %v1704_v60 = vpop.f32.mrf.mxu3 }
 0x125   : > { %2425 = vmatmul.bf16.gmra.mxu0 %v2293_v44  ;;  %v1775_v23 = vadd.f32 %v1704_v60, %v1460_v62  ;;  %v2274_v62 = vunpack.c.l.b16 %v2150_v24  ;;  %v2164_v44 = vrot.slane %v2162_v13, 4  ;;  %v1220_v60 = vrot.slane %v5644_v55, 5 }
 0x126   : > { %v1218_v13 = vsel %vm6048_vm5, %v4748_v31, %v1217_v29  ;;  %v4986_v31 = vld [vmem:[%s5733_s23 + $0xb8] sm:$0xf]  ;;  %v2189_v55 = vshll.u32 %v4985_v7, 16 }
 0x127   : > { %v1391_v42 = vpop.f32.mrf.mxu2  ;;  %v6422_v10 = vadd.f32 %v2386_v19, %v1775_v23  ;;  %v2173_v19 = vrot.slane %v2171_v4, 5  ;;  %v4984_v23 = vld [vmem:[%s5733_s23 + $0xb0] sm:$0x1]  ;;  %v1279_v21 = vunpack.c.l.b16 %v1218_v13  ;;  %v1087_v13 = vld [vmem:[%s5733_s23 + $0xa8] sm:$0xe] }
 0x128   : > { %v1461_v18 = vadd.f32 %v1391_v42, %v1011_v54  ;;  %v2177_v54 = vrot.slane %v2175_v49, 4  ;;  %v2294_v42 = vpack.c.b16 %v2275_v37, %v2274_v62  ;;  %v2181_v4 = vshll.u32 %v4984_v23, 16 }
 0x129   : > { %v1013_v20 = vpop.f32.mrf.mxu1 }
 0x12a   : > { %v2388_v36 = vpop.f32.mrf.mxu0  ;;  %v1014_v35 = vadd.f32 %v1013_v20, %v6156_v56  ;;  %v2178_v22 = vor.u32 %v2177_v54, %v2173_v19  ;;  %v5570_v56 = vld [vmem:[%s7176_s1 + $0x180] sm:$0xff] }
 0x12b   : > { %1052 = vmatmul.bf16.gmra.mxu1 %v5486_v11  ;;  %v2168_v11 = vor.u32 %v2167_v46, %v2164_v44  ;;  %3110 = vmatpush.bf16.msra.mxu2 %v5570_v56  ;;  %v5578_v44 = vld [vmem:[%s7176_s1 + $0x1c0] sm:$0xff]  ;;  %v2191_v56 = vrot.slane %v2189_v55, 5 }
 0x12c   : > { %v1706_v27 = vpop.f32.mrf.mxu3  ;;  %1433 = vmatmul.bf16.gmra.mxu2 %v1297_v53  ;;  %v2179_v37 = vrot.slane %v2178_v22, 4  ;;  %v5546_v46 = vld [vmem:[%s7176_s1 + $0x140] sm:$0xff]  ;;  %3792 = vmatpush.bf16.msra.mxu3 %v5578_v44  ;;  %v2199_v22 = vshrl.u32 %v4986_v31, 16 }
 0x12d   : > { %v1776_v57 = vadd.f32 %v1706_v27, %v1461_v18  ;;  %v1221_v18 = vsel %vm6048_vm5, %v1219_v61, %v1220_v60  ;;  %v2169_v29 = vrot.slane %v2168_v11, 4  ;;  %v2183_v27 = vrot.slane %v2181_v4, 5  ;;  %2795 = vmatpush.bf16.msra.mxu1 %v5546_v46  ;;  %v5586_v4 = vld [vmem:[%s7176_s1 + $0x200] sm:$0xff] }
 0x12e   : > { %v2186_v61 = vshrl.u32 %v4985_v7, 16  ;;  %4218 = vmatpush.bf16.msra.mxu0 %v5586_v4  ;;  %v5527_v7 = vld [vmem:[%s5733_s23 + $0xa8] sm:$0xff]  ;;  %v4988_v4 = vld [vmem:[%s5733_s23 + $0xc0] sm:$0xf] }
 0x12f   : > { %v1394_v8 = vpop.f32.mrf.mxu2  ;;  %v6430_v12 = vadd.f32 %v2388_v36, %v1776_v57  ;;  %v1280_v36 = vunpack.c.l.b16 %v1221_v18  ;;  %v2195_v18 = vshll.u32 %v4986_v31, 16 }
 0x130   : > { %v1462_v24 = vadd.f32 %v1394_v8, %v1014_v35 }
 0x131   : > { %1748 = vmatmul.bf16.gmra.mxu3 %v5526_v26  ;;  %v1015_v53 = vpop.f32.mrf.mxu1  ;;  %v5487_v26 = vld [vmem:[%s5733_s23 + $0x9c] sm:$0xff]  ;;  %v1298_v23 = vpack.c.b16 %v1280_v36, %v1279_v21  ;;  %v2197_v46 = vrot.slane %v2195_v18, 5 }
 0x132   : > { %v2391_v49 = vpop.f32.mrf.mxu0  ;;  %v1016_v54 = vadd.f32 %v1015_v53, %v6171_v16  ;;  %v5645_v16 = vld [vmem:[%s5733_s23 + $0xac] sm:$0xf] }
 0x133   : > { %v1224_v11 = vrot.slane %v5645_v16, 5 }
 0x134   : > { %v1709_v20 = vpop.f32.mrf.mxu3 }
 0x135   : > { %2430 = vmatmul.bf16.gmra.mxu0 %v2294_v42  ;;  %v1777_v62 = vadd.f32 %v1709_v20, %v1462_v24  ;;  %v2174_v42 = vsel %vm5748_vm2, %v2169_v29, %v2173_v19  ;;  %v2184_v24 = vsel %vm5748_vm2, %v2179_v37, %v2183_v27  ;;  %v1226_v29 = vrot.slane %v1224_v11, 4  ;;  %v5646_v37 = vld [vmem:[%s5733_s23 + $0xb0] sm:$0x1] }
 0x136   : > { %v2276_v20 = vunpack.c.l.b16 %v2174_v42  ;;  %v2277_v21 = vunpack.c.l.b16 %v2184_v24  ;;  %v1227_v27 = vrot.slane %v5646_v37, 5  ;;  %v2210_v37 = vshrl.u32 %v4988_v4, 16 }
 0x137   : > { %v1396_v57 = vpop.f32.mrf.mxu2  ;;  %v6449_v60 = vadd.f32 %v2391_v49, %v1777_v62  ;;  %v2188_v49 = vrot.slane %v2186_v61, 4  ;;  %v4749_v62 = vrot.slane %v1087_v13, 9 }
 0x138   : > { %v1463_v35 = vadd.f32 %v1396_v57, %v1016_v54  ;;  %v2201_v54 = vrot.slane %v2199_v22, 4 }
 0x139   : > { %v1018_v8 = vpop.f32.mrf.mxu1  ;;  %v2192_v31 = vor.u32 %v2191_v56, %v2188_v49  ;;  %v1225_v42 = vsel %vm6048_vm5, %v4749_v62, %v1224_v11  ;;  %v4989_v56 = vld [vmem:[%s5733_s23 + $0xc4] sm:$0xf]  ;;  %v5488_v62 = vld [vmem:[%s5733_s23 + $0xa8] sm:$0xff] }
 0x13a   : > { %v2393_v53 = vpop.f32.mrf.mxu0  ;;  %v1019_v44 = vadd.f32 %v1018_v8, %v6195_v45  ;;  %v1228_v45 = vsel %vm6048_vm5, %v1226_v29, %v1227_v27  ;;  %v2202_v24 = vor.u32 %v2201_v54, %v2197_v46  ;;  %v1281_v22 = vunpack.c.l.b16 %v1225_v42 }
 0x13b   : > { %1057 = vmatmul.bf16.gmra.mxu1 %v5487_v26  ;;  %v4987_v26 = vld [vmem:[%s5733_s23 + $0xbc] sm:$0x1]  ;;  %v2193_v13 = vrot.slane %v2192_v31, 4  ;;  %v2213_v27 = vshll.u32 %v4988_v4, 16  ;;  %v2223_v31 = vshrl.u32 %v4989_v56, 16 }
 0x13c   : > { %v1711_v19 = vpop.f32.mrf.mxu3  ;;  %1438 = vmatmul.bf16.gmra.mxu2 %v1298_v23  ;;  %v2205_v16 = vshll.u32 %v4987_v26, 16  ;;  %v2219_v26 = vshll.u32 %v4989_v56, 16 }
 0x13d   : > { %v1778_v36 = vadd.f32 %v1711_v19, %v1463_v35  ;;  %v2295_v35 = vpack.c.b16 %v2277_v21, %v2276_v20  ;;  %v5647_v19 = vld [vmem:[%s5733_s23 + $0x10] sm:$0xf]  ;;  %v2203_v21 = vrot.slane %v2202_v24, 4  ;;  %v2198_v29 = vsel %vm5748_vm2, %v2193_v13, %v2197_v46 }
 0x13e   : > { %v2549_v20 = vrot.slane %v5647_v19, 5  ;;  %v2212_v13 = vrot.slane %v2210_v37, 4  ;;  %v2225_v56 = vrot.slane %v2223_v31, 4 }
 0x13f   : > { %v1399_v57 = vpop.f32.mrf.mxu2  ;;  %v6464_v55 = vadd.f32 %v2393_v53, %v1778_v36  ;;  %v1282_v53 = vunpack.c.l.b16 %v1228_v45  ;;  %v2207_v36 = vrot.slane %v2205_v16, 5  ;;  %v5649_v45 = vld [vmem:[%s5733_s23 + $0x14] sm:$0x1] }
 0x140   : > { %v1464_v61 = vadd.f32 %v1399_v57, %v1019_v44  ;;  %v2551_v42 = vrot.slane %v2549_v20, 4  ;;  %v2552_v24 = vrot.slane %v5649_v45, 5 }
 0x141   : > { %7183 = vst [vmem:[#allocation2_spill] sm:$0xff] %v6464_v55  ;;  %1753 = vmatmul.bf16.gmra.mxu3 %v5527_v7  ;;  %v1020_v23 = vpop.f32.mrf.mxu1  ;;  %v1299_v57 = vpack.c.b16 %v1282_v53, %v1281_v22  ;;  %v2208_v46 = vsel %vm5748_vm2, %v2203_v21, %v2207_v36  ;;  %v5039_v22 = vld [vmem:[%s5733_s23 + $0xc] sm:$0xe]  ;;  %v4990_v21 = vld [vmem:[%s5733_s23 + $0xc8] sm:$0x1] }
 0x142   : > { %v2396_v8 = vpop.f32.mrf.mxu0  ;;  %v1021_v11 = vadd.f32 %v1020_v23, %v6215_v9  ;;  %v5648_v9 = vld [vmem:[%s5733_s23 + $0xb8] sm:$0xf]  ;;  %v5055_v19 = vrot.slane %v5039_v22, 9 }
 0x143   : > { %v1231_v23 = vrot.slane %v5648_v9, 5  ;;  %v2279_v9 = vunpack.c.l.b16 %v2208_v46 }
 0x144   : > { %v1714_v18 = vpop.f32.mrf.mxu3 }
 0x145   : > { %2435 = vmatmul.bf16.gmra.mxu0 %v2295_v35  ;;  %v1779_v49 = vadd.f32 %v1714_v18, %v1464_v61  ;;  %v1088_v35 = vld [vmem:[%s5733_s23 + $0xb4] sm:$0xe]  ;;  %v2215_v18 = vrot.slane %v2213_v27, 5  ;;  %v1233_v45 = vrot.slane %v1231_v23, 4 }
 0x146   : > { %v4750_v4 = vrot.slane %v1088_v35, 9  ;;  %v2229_v35 = vshll.u32 %v4990_v21, 16  ;;  %v5489_v21 = vld [vmem:[%s5733_s23 + $0xb4] sm:$0xff] }
 0x147   : > { %v1401_v7 = vpop.f32.mrf.mxu2  ;;  %v6477_v44 = vadd.f32 %v2396_v8, %v1779_v49  ;;  %v2278_v8 = vunpack.c.l.b16 %v2198_v29  ;;  %v2221_v49 = vrot.slane %v2219_v26, 5  ;;  %v2553_v29 = vsel %vm6048_vm5, %v2551_v42, %v2552_v24  ;;  %v5263_v42 = vld [vmem:[%s5733_s23 + $0x18] sm:$0xf] }
 0x148   : > { %v1465_v54 = vadd.f32 %v1401_v7, %v1021_v11  ;;  %v5528_v7 = vld [vmem:[%s5733_s23 + $0xb4] sm:$0xff]  ;;  %v2216_v27 = vor.u32 %v2215_v18, %v2212_v13  ;;  %v1232_v31 = vsel %vm6048_vm5, %v4750_v4, %v1231_v23  ;;  %v6503_v18 = vld [vmem:[%s5733_s23 + $0x1c] sm:$0xf] }
 0x149   : > { %7184 = vst [vmem:[#allocation3_spill] sm:$0xff] %v6477_v44  ;;  %v1023_v61 = vpop.f32.mrf.mxu1  ;;  %v5650_v44 = vld [vmem:[%s5733_s23 + $0xbc] sm:$0x1]  ;;  %v1283_v22 = vunpack.c.l.b16 %v1232_v31 }
 0x14a   : > { %v2398_v16 = vpop.f32.mrf.mxu0  ;;  %v1234_v55 = vrot.slane %v5650_v44, 5  ;;  %v1024_v36 = vadd.f32 %v1023_v61, %v6232_v33  ;;  %v2226_v44 = vor.u32 %v2225_v56, %v2221_v49  ;;  %v2296_v33 = vpack.c.b16 %v2279_v9, %v2278_v8 }
 0x14b   : > { %1062 = vmatmul.bf16.gmra.mxu1 %v5488_v62  ;;  %v2550_v62 = vsel %vm6048_vm5, %v5055_v19, %v2549_v20  ;;  %v2231_v19 = vrot.slane %v2229_v35, 5  ;;  %v3273_v8 = vshrl.u32 %v5263_v42, 16  ;;  %v3276_v9 = vshll.u32 %v5263_v42, 16  ;;  %v5265_v35 = vld [vmem:[%s5733_s23 + $0x20] sm:$0x1] }
 0x14c   : > { %v1716_v53 = vpop.f32.mrf.mxu3  ;;  %1443 = vmatmul.bf16.gmra.mxu2 %v1299_v57  ;;  %v2676_v57 = vunpack.c.l.b16 %v2550_v62  ;;  %v1235_v20 = vsel %vm6048_vm5, %v1233_v45, %v1234_v55  ;;  %v2227_v56 = vrot.slane %v2226_v44, 4  ;;  %v3282_v55 = vshll.u32 %v6503_v18, 16 }
 0x14d   : > { %v1780_v11 = vadd.f32 %v1716_v53, %v1465_v54  ;;  %v2677_v54 = vunpack.c.l.b16 %v2553_v29  ;;  %v2217_v53 = vrot.slane %v2216_v27, 4  ;;  %v1284_v4 = vunpack.c.l.b16 %v1235_v20 }
 0x14e   : > { %v2232_v27 = vsel %vm5748_vm2, %v2227_v56, %v2231_v19  ;;  %v3284_v31 = vrot.slane %v3282_v55, 5  ;;  %v5266_v56 = vld [vmem:[%s5733_s23 + $0x24] sm:$0xf] }
 0x14f   : > { %v1404_v37 = vpop.f32.mrf.mxu2  ;;  %v6497_v46 = vpack.c.b16 %v2677_v54, %v2676_v57  ;;  %v6500_v24 = vadd.f32 %v2398_v16, %v1780_v11  ;;  %v3286_v16 = vshrl.u32 %v6503_v18, 16  ;;  %v1300_v29 = vpack.c.b16 %v1284_v4, %v1283_v22 }
 0x150   : > { %v1466_v26 = vadd.f32 %v1404_v37, %v1024_v36  ;;  %v2222_v37 = vsel %vm5748_vm2, %v2217_v53, %v2221_v49  ;;  %v3275_v54 = vrot.slane %v3273_v8, 4  ;;  %v2281_v20 = vunpack.c.l.b16 %v2232_v27 }
 0x151   : > { %1758 = vmatmul.bf16.gmra.mxu3 %v5528_v7  ;;  %v1025_v61 = vpop.f32.mrf.mxu1  ;;  %v3288_v44 = vrot.slane %v3286_v16, 4  ;;  %v3292_v53 = vshll.u32 %v5265_v35, 16  ;;  %v3300_v27 = vshll.u32 %v5266_v56, 16 }
 0x152   : > { %v2401_v13 = vpop.f32.mrf.mxu0  ;;  %v1026_v11 = vadd.f32 %v1025_v61, %v6247_v0  ;;  %v2280_v61 = vunpack.c.l.b16 %v2222_v37  ;;  %v3297_v37 = vshrl.u32 %v5266_v56, 16  ;;  %v5651_v56 = vld [vmem:[%s5733_s23 + $0x1c] sm:$0xf] }
 0x153   : > { %v3289_v22 = vor.u32 %v3288_v44, %v3284_v31 }
 0x154   : > { %v1719_v23 = vpop.f32.mrf.mxu3  ;;  %v2297_v19 = vpack.c.b16 %v2281_v20, %v2280_v61  ;;  %v3975_v20 = vrot.slane %v5265_v35, 5 }
 0x155   : > { %2440 = vmatmul.bf16.gmra.mxu0 %v2296_v33  ;;  %v1781_v7 = vadd.f32 %v1719_v23, %v1466_v26  ;;  %v3278_v26 = vrot.slane %v3276_v9, 5  ;;  %v3290_v16 = vrot.slane %v3289_v22, 4 }
 0x157   : > { %v1406_v45 = vpop.f32.mrf.mxu2  ;;  %v6509_v36 = vadd.f32 %v2401_v13, %v1781_v7  ;;  %v5529_v13 = vld [vmem:[%s5733_s23 + $0xc0] sm:$0xff]  ;;  %v3279_v49 = vor.u32 %v3278_v26, %v3275_v54  ;;  %v6520_v7 = vld [vmem:[%s5733_s23 + $0x28] sm:$0xf] }
 0x158   : > { %v1467_v62 = vadd.f32 %v1406_v45, %v1026_v11  ;;  %v3294_v11 = vrot.slane %v3292_v53, 5 }
 0x159   : > { %v1028_v57 = vpop.f32.mrf.mxu1  ;;  %v3280_v55 = vrot.slane %v3279_v49, 4  ;;  %v3302_v49 = vrot.slane %v3300_v27, 5 }
 0x15a   : > { %v2403_v0 = vpop.f32.mrf.mxu0  ;;  %v1029_v23 = vadd.f32 %v1028_v57, %v6269_v32  ;;  %v3306_v32 = vshll.u32 %v6520_v7, 16  ;;  %v3310_v57 = vshrl.u32 %v6520_v7, 16 }
 0x15b   : > { %1067 = vmatmul.bf16.gmra.mxu1 %v5489_v21  ;;  %v3285_v44 = vsel %vm5748_vm2, %v3280_v55, %v3284_v31  ;;  %v5554_v31 = vld [vmem:[%s5733_s23 + $0x18] sm:$0xff] }
 0x15c   : > { %v1721_v33 = vpop.f32.mrf.mxu3  ;;  %1448 = vmatmul.bf16.gmra.mxu2 %v1300_v29  ;;  %v3972_v29 = vrot.slane %v6503_v18, 5  ;;  %v6533_v22 = vrot.slane %v3306_v32, 5  ;;  %v3312_v53 = vrot.slane %v3310_v57, 4 }
 0x15d   : > { %v1782_v42 = vadd.f32 %v1721_v33, %v1467_v62  ;;  %v5359_v62 = vld [vmem:[%s5733_s23 + $0x18] sm:$0xe] }
 0x15e   : > { %v5375_v33 = vrot.slane %v5359_v62, 9  ;;  %v3974_v61 = vrot.slane %v3972_v29, 4 }
 0x15f   : > { %v1409_v4 = vpop.f32.mrf.mxu2  ;;  %v6522_v45 = vadd.f32 %v2403_v0, %v1782_v42  ;;  %v3295_v0 = vsel %vm5748_vm2, %v3290_v16, %v3294_v11  ;;  %v3299_v42 = vrot.slane %v3297_v37, 4  ;;  %v5040_v16 = vld [vmem:[%s5733_s23 + $0x18] sm:$0xe]  ;;  %v3313_v37 = vor.u32 %v3312_v53, %v6533_v22 }
 0x160   : > { %v1468_v8 = vadd.f32 %v1409_v4, %v1029_v23  ;;  %v3973_v11 = vsel %vm6048_vm5, %v5375_v33, %v3972_v29  ;;  %v3976_v62 = vsel %vm6048_vm5, %v3974_v61, %v3975_v20  ;;  %v5056_v57 = vrot.slane %v5040_v16, 9  ;;  %v5269_v16 = vld [vmem:[%s5733_s23 + $0x30] sm:$0xf] }
 0x161   : > { %1763 = vmatmul.bf16.gmra.mxu3 %v5529_v13  ;;  %v1030_v9 = vpop.f32.mrf.mxu1  ;;  %v4099_v29 = vunpack.c.l.b16 %v3973_v11  ;;  %v4100_v33 = vunpack.c.l.b16 %v3976_v62  ;;  %v6562_v11 = vld [vmem:[%s5733_s23 + $0x34] sm:$0xf] }
 0x162   : > { %v2406_v21 = vpop.f32.mrf.mxu0  ;;  %v1031_v18 = vadd.f32 %v1030_v9, %v6287_v3  ;;  %v3673_v3 = vunpack.c.l.b16 %v3285_v44  ;;  %v3674_v9 = vunpack.c.l.b16 %v3295_v0 }
 0x164   : > { %v1724_v54 = vpop.f32.mrf.mxu3 }
 0x165   : > { %2445 = vmatmul.bf16.gmra.mxu0 %v2297_v19  ;;  %v1783_v26 = vadd.f32 %v1724_v54, %v1468_v8  ;;  %v2556_v19 = vrot.slane %v5651_v56, 5  ;;  %v6540_v8 = vld [vmem:[%s5733_s23 + $0x2c] sm:$0x1]  ;;  %v5360_v56 = vld [vmem:[%s5733_s23 + $0x24] sm:$0xe] }
 0x166   : > { %v3316_v27 = vshll.u32 %v6540_v8, 16 }
 0x167   : > { %v1411_v13 = vpop.f32.mrf.mxu2  ;;  %v6535_v23 = vadd.f32 %v2406_v21, %v1783_v26  ;;  %v3303_v21 = vor.u32 %v3302_v49, %v3299_v42  ;;  %v2558_v54 = vrot.slane %v2556_v19, 4  ;;  %v5652_v26 = vld [vmem:[%s5733_s23 + $0x20] sm:$0x1]  ;;  %v3314_v42 = vrot.slane %v3313_v37, 4 }
 0x168   : > { %v1469_v4 = vadd.f32 %v1411_v13, %v1031_v18  ;;  %v2559_v44 = vrot.slane %v5652_v26, 5  ;;  %v3705_v18 = vpack.c.b16 %v3674_v9, %v3673_v3  ;;  %v3318_v13 = vrot.slane %v3316_v27, 5 }
 0x169   : > { %v1033_v55 = vpop.f32.mrf.mxu1  ;;  %v3304_v20 = vrot.slane %v3303_v21, 4  ;;  %v2557_v53 = vsel %vm6048_vm5, %v5056_v57, %v2556_v19  ;;  %v4131_v3 = vpack.c.b16 %v4100_v33, %v4099_v29  ;;  %v5376_v37 = vrot.slane %v5360_v56, 9 }
 0x16a   : > { %v2408_v35 = vpop.f32.mrf.mxu0  ;;  %v1034_v61 = vadd.f32 %v1033_v55, %v6166_v17  ;;  %v2678_v62 = vunpack.c.l.b16 %v2557_v53  ;;  %v3321_v57 = vshrl.u32 %v5269_v16, 16  ;;  %v3982_v26 = vrot.slane %v6540_v8, 5  ;;  %v5041_v53 = vld [vmem:[%s5733_s23 + $0x24] sm:$0xe] }
 0x16b   : > { %2796 = vmatmul.bf16.vlgmr.msra.gmra.mxu1 %v6497_v46  ;;  %v3309_v19 = vsel %vm5748_vm2, %v3304_v20, %v6533_v22 }
 0x16c   : > { %v1726_v32 = vpop.f32.mrf.mxu3  ;;  %3111 = vmatmul.bf16.vlgmr.msra.gmra.mxu2 %v5554_v31  ;;  %v2560_v31 = vsel %vm6048_vm5, %v2558_v54, %v2559_v44  ;;  %v3330_v44 = vshll.u32 %v6562_v11, 16  ;;  %v3675_v33 = vunpack.c.l.b16 %v3309_v19  ;;  %v3323_v8 = vrot.slane %v3321_v57, 4 }
 0x16d   : > { %v1784_v0 = vadd.f32 %v1726_v32, %v1469_v4  ;;  %v3979_v4 = vrot.slane %v6520_v7, 5  ;;  %v2679_v21 = vunpack.c.l.b16 %v2560_v31  ;;  %v3319_v7 = vsel %vm5748_vm2, %v3314_v42, %v3318_v13  ;;  %v5555_v13 = vld [vmem:[%s5733_s23 + $0x24] sm:$0xff] }
 0x16f   : > { %v1414_v46 = vpop.f32.mrf.mxu2  ;;  %v6559_v17 = vadd.f32 %v2408_v35, %v1784_v0  ;;  %v3981_v32 = vrot.slane %v3979_v4, 4  ;;  %v3324_v35 = vshll.u32 %v5269_v16, 16  ;;  %v3334_v0 = vshrl.u32 %v6562_v11, 16 }
 0x170   : > { %v1470_v49 = vadd.f32 %v1414_v46, %v1034_v61  ;;  %v2709_v29 = vpack.c.b16 %v2679_v21, %v2678_v62  ;;  %v5653_v61 = vld [vmem:[%s5733_s23 + $0x28] sm:$0xf]  ;;  %v5057_v21 = vrot.slane %v5041_v53, 9 }
 0x171   : > { %3793 = vmatmul.bf16.vlgmr.msra.gmra.mxu3 %v3705_v18  ;;  %v1035_v9 = vpop.f32.mrf.mxu1  ;;  %v2563_v46 = vrot.slane %v5653_v61, 5  ;;  %v3326_v31 = vrot.slane %v3324_v35, 5  ;;  %v3336_v16 = vrot.slane %v3334_v0, 4  ;;  %v5272_v61 = vld [vmem:[%s5733_s23 + $0x3c] sm:$0xf] }
 0x172   : > { %v2411_v55 = vpop.f32.mrf.mxu0  ;;  %v1036_v22 = vadd.f32 %v1035_v9, %v6190_v39  ;;  %v3983_v39 = vsel %vm6048_vm5, %v3981_v32, %v3982_v26  ;;  %v6582_v9 = vrot.slane %v3330_v44, 5 }
 0x173   : > { %v2565_v19 = vrot.slane %v2563_v46, 4 }
 0x174   : > { %v1729_v27 = vpop.f32.mrf.mxu3  ;;  %v3337_v26 = vor.u32 %v3336_v16, %v6582_v9  ;;  %v5361_v16 = vld [vmem:[%s5733_s23 + $0x30] sm:$0xe] }
 0x175   : > { %4219 = vmatmul.bf16.vlgmr.msra.gmra.mxu0 %v4131_v3  ;;  %v1785_v54 = vadd.f32 %v1729_v27, %v1470_v49  ;;  %v3676_v49 = vunpack.c.l.b16 %v3319_v7  ;;  %v3980_v3 = vsel %vm6048_vm5, %v5376_v37, %v3979_v4  ;;  %v5654_v27 = vld [vmem:[%s5733_s23 + $0x2c] sm:$0x1]  ;;  %v4102_v4 = vunpack.c.l.b16 %v3983_v39 }
 0x176   : > { %v2566_v7 = vrot.slane %v5654_v27, 5  ;;  %v4101_v35 = vunpack.c.l.b16 %v3980_v3  ;;  %v3327_v37 = vor.u32 %v3326_v31, %v3323_v8 }
 0x177   : > { %v1416_v18 = vpop.f32.mrf.mxu2  ;;  %v6574_v20 = vadd.f32 %v2411_v55, %v1785_v54  ;;  %v6585_v55 = vld [vmem:[%s5733_s23 + $0x38] sm:$0x1]  ;;  %v3706_v32 = vpack.c.b16 %v3676_v49, %v3675_v33  ;;  %v3338_v49 = vrot.slane %v3337_v26, 4 }
 0x178   : > { %v1471_v42 = vadd.f32 %v1416_v18, %v1036_v22  ;;  %v3340_v44 = vshll.u32 %v6585_v55, 16  ;;  %v2564_v18 = vsel %vm6048_vm5, %v5057_v21, %v2563_v46  ;;  %v3328_v8 = vrot.slane %v3327_v37, 4 }
 0x179   : > { %v1038_v56 = vpop.f32.mrf.mxu1  ;;  %v2680_v46 = vunpack.c.l.b16 %v2564_v18  ;;  %v3345_v21 = vshrl.u32 %v5272_v61, 16  ;;  %v3989_v26 = vrot.slane %v6585_v55, 5 }
 0x17a   : > { %v2413_v62 = vpop.f32.mrf.mxu0  ;;  %v1039_v0 = vadd.f32 %v1038_v56, %v6210_v2  ;;  %v3342_v31 = vrot.slane %v3340_v44, 5  ;;  %v3986_v2 = vrot.slane %v6562_v11, 5 }
 0x17b   : > { %2801 = vmatmul.bf16.gmra.mxu1 %v2709_v29  ;;  %v2567_v29 = vsel %vm6048_vm5, %v2565_v19, %v2566_v7  ;;  %v3348_v19 = vshll.u32 %v5272_v61, 16  ;;  %v3347_v44 = vrot.slane %v3345_v21, 4 }
 0x17c   : > { %v1731_v57 = vpop.f32.mrf.mxu3  ;;  %3116 = vmatmul.bf16.gmra.mxu2 %v5555_v13  ;;  %v4132_v13 = vpack.c.b16 %v4102_v4, %v4101_v35  ;;  %v2681_v39 = vunpack.c.l.b16 %v2567_v29  ;;  %v3333_v35 = vsel %vm5748_vm2, %v3328_v8, %v6582_v9  ;;  %v5377_v4 = vrot.slane %v5361_v16, 9 }
 0x17d   : > { %v1786_v54 = vadd.f32 %v1731_v57, %v1471_v42  ;;  %v6597_v42 = vld [vmem:[%s5733_s23 + $0x40] sm:$0xf]  ;;  %v3988_v37 = vrot.slane %v3986_v2, 4 }
 0x17e   : > { %v3354_v27 = vshll.u32 %v6597_v42, 16  ;;  %v3358_v7 = vshrl.u32 %v6597_v42, 16 }
 0x17f   : > { %v1419_v22 = vpop.f32.mrf.mxu2  ;;  %v6600_v56 = vadd.f32 %v2413_v62, %v1786_v54  ;;  %v3343_v62 = vsel %vm5748_vm2, %v3338_v49, %v3342_v31  ;;  %v6619_v49 = vld [vmem:[%s5733_s23 + $0x44] sm:$0x1]  ;;  %v3990_v16 = vsel %vm6048_vm5, %v3988_v37, %v3989_v26 }
 0x180   : > { %v1472_v53 = vadd.f32 %v1419_v22, %v1039_v0  ;;  %v3350_v22 = vrot.slane %v3348_v19, 5  ;;  %v6612_v9 = vrot.slane %v3354_v27, 5  ;;  %v3360_v18 = vrot.slane %v3358_v7, 4 }
 0x181   : > { %3798 = vmatmul.bf16.gmra.mxu3 %v3706_v32  ;;  %v1040_v33 = vpop.f32.mrf.mxu1  ;;  %v2710_v32 = vpack.c.b16 %v2681_v39, %v2680_v46  ;;  %v3678_v31 = vunpack.c.l.b16 %v3343_v62  ;;  %v5042_v46 = vld [vmem:[%s5733_s23 + $0x30] sm:$0xe]  ;;  %v3987_v39 = vsel %vm6048_vm5, %v5377_v4, %v3986_v2  ;;  %v3364_v19 = vshll.u32 %v6619_v49, 16 }
 0x182   : > { %v2416_v3 = vpop.f32.mrf.mxu0  ;;  %v1041_v54 = vadd.f32 %v1040_v33, %v6225_v25  ;;  %v3677_v33 = vunpack.c.l.b16 %v3333_v35  ;;  %v3361_v21 = vor.u32 %v3360_v18, %v6612_v9  ;;  %v5058_v7 = vrot.slane %v5042_v46, 9  ;;  %v5656_v35 = vld [vmem:[%s5733_s23 + $0x38] sm:$0x1]  ;;  %v5275_v46 = vld [vmem:[%s5733_s23 + $0x48] sm:$0xf] }
 0x183   : > { %v4103_v2 = vunpack.c.l.b16 %v3987_v39  ;;  %v4104_v4 = vunpack.c.l.b16 %v3990_v16  ;;  %v6640_v39 = vld [vmem:[%s5733_s23 + $0x4c] sm:$0xf] }
 0x184   : > { %v1734_v57 = vpop.f32.mrf.mxu3 }
 0x185   : > { %4224 = vmatmul.bf16.gmra.mxu0 %v4132_v13  ;;  %v1787_v11 = vadd.f32 %v1734_v57, %v1472_v53  ;;  %v5556_v13 = vld [vmem:[%s5733_s23 + $0x30] sm:$0xff] }
 0x186   : > { %v5655_v53 = vld [vmem:[%s5733_s23 + $0x34] sm:$0xf] }
 0x187   : > { %v1421_v0 = vpop.f32.mrf.mxu2  ;;  %v6614_v29 = vadd.f32 %v2416_v3, %v1787_v11  ;;  %v2570_v8 = vrot.slane %v5655_v53, 5  ;;  %v3351_v3 = vor.u32 %v3350_v22, %v3347_v44  ;;  %v2573_v11 = vrot.slane %v5656_v35, 5  ;;  %v5362_v53 = vld [vmem:[%s5733_s23 + $0x3c] sm:$0xe] }
 0x188   : > { %v1473_v61 = vadd.f32 %v1421_v0, %v1041_v54  ;;  %v3707_v54 = vpack.c.b16 %v3678_v31, %v3677_v33  ;;  %v3362_v44 = vrot.slane %v3361_v21, 4  ;;  %v3366_v0 = vrot.slane %v3364_v19, 5 }
 0x189   : > { %v1043_v25 = vpop.f32.mrf.mxu1  ;;  %v2572_v57 = vrot.slane %v2570_v8, 4  ;;  %v3352_v26 = vrot.slane %v3351_v3, 4  ;;  %v2571_v18 = vsel %vm6048_vm5, %v5058_v7, %v2570_v8  ;;  %v4133_v33 = vpack.c.b16 %v4104_v4, %v4103_v2 }
 0x18a   : > { %v2418_v55 = vpop.f32.mrf.mxu0  ;;  %v1044_v37 = vadd.f32 %v1043_v25, %v6240_v58  ;;  %v2682_v16 = vunpack.c.l.b16 %v2571_v18  ;;  %v5378_v21 = vrot.slane %v5362_v53, 9  ;;  %v3369_v7 = vshrl.u32 %v5275_v46, 16  ;;  %v5043_v18 = vld [vmem:[%s5733_s23 + $0x3c] sm:$0xe] }
 0x18b   : > { %2806 = vmatmul.bf16.gmra.mxu1 %v2710_v32  ;;  %v3357_v8 = vsel %vm5748_vm2, %v3352_v26, %v6612_v9  ;;  %v3996_v35 = vrot.slane %v6619_v49, 5 }
 0x18c   : > { %v1736_v27 = vpop.f32.mrf.mxu3  ;;  %3121 = vmatmul.bf16.gmra.mxu2 %v5556_v13  ;;  %v2574_v13 = vsel %vm6048_vm5, %v2572_v57, %v2573_v11  ;;  %v3378_v11 = vshll.u32 %v6640_v39, 16  ;;  %v3679_v4 = vunpack.c.l.b16 %v3357_v8  ;;  %v3371_v49 = vrot.slane %v3369_v7, 4 }
 0x18d   : > { %v1788_v62 = vadd.f32 %v1736_v27, %v1473_v61  ;;  %v3993_v61 = vrot.slane %v6597_v42, 5  ;;  %v2683_v3 = vunpack.c.l.b16 %v2574_v13  ;;  %v3367_v42 = vsel %vm5748_vm2, %v3362_v44, %v3366_v0  ;;  %v5557_v0 = vld [vmem:[%s5733_s23 + $0x3c] sm:$0xff] }
 0x18f   : > { %v1424_v32 = vpop.f32.mrf.mxu2  ;;  %v6637_v58 = vadd.f32 %v2418_v55, %v1788_v62  ;;  %v3995_v27 = vrot.slane %v3993_v61, 4  ;;  %v3372_v55 = vshll.u32 %v5275_v46, 16  ;;  %v3382_v62 = vshrl.u32 %v6640_v39, 16 }
 0x190   : > { %v1474_v22 = vadd.f32 %v1424_v32, %v1044_v37  ;;  %v2711_v2 = vpack.c.b16 %v2683_v3, %v2682_v16  ;;  %v5657_v37 = vld [vmem:[%s5733_s23 + $0x40] sm:$0xf]  ;;  %v5059_v3 = vrot.slane %v5043_v18, 9 }
 0x191   : > { %3803 = vmatmul.bf16.gmra.mxu3 %v3707_v54  ;;  %v1045_v31 = vpop.f32.mrf.mxu1  ;;  %v2577_v32 = vrot.slane %v5657_v37, 5  ;;  %v3374_v13 = vrot.slane %v3372_v55, 5  ;;  %v3384_v46 = vrot.slane %v3382_v62, 4  ;;  %v5278_v37 = vld [vmem:[%s5733_s23 + $0x54] sm:$0xf] }
 0x192   : > { %v2421_v25 = vpop.f32.mrf.mxu0  ;;  %v1046_v9 = vadd.f32 %v1045_v31, %v6263_v51  ;;  %v3997_v51 = vsel %vm6048_vm5, %v3995_v27, %v3996_v35  ;;  %v6660_v31 = vrot.slane %v3378_v11, 5 }
 0x193   : > { %v2579_v8 = vrot.slane %v2577_v32, 4 }
 0x194   : > { %v1739_v19 = vpop.f32.mrf.mxu3  ;;  %v3385_v35 = vor.u32 %v3384_v46, %v6660_v31  ;;  %v5363_v46 = vld [vmem:[%s5733_s23 + $0x48] sm:$0xe] }
 0x195   : > { %4229 = vmatmul.bf16.gmra.mxu0 %v4133_v33  ;;  %v1789_v57 = vadd.f32 %v1739_v19, %v1474_v22  ;;  %v3680_v22 = vunpack.c.l.b16 %v3367_v42  ;;  %v3994_v33 = vsel %vm6048_vm5, %v5378_v21, %v3993_v61  ;;  %v5658_v19 = vld [vmem:[%s5733_s23 + $0x44] sm:$0x1]  ;;  %v4106_v61 = vunpack.c.l.b16 %v3997_v51 }
 0x196   : > { %v2580_v42 = vrot.slane %v5658_v19, 5  ;;  %v4105_v55 = vunpack.c.l.b16 %v3994_v33  ;;  %v3375_v21 = vor.u32 %v3374_v13, %v3371_v49 }
 0x197   : > { %v1426_v54 = vpop.f32.mrf.mxu2  ;;  %v6652_v26 = vadd.f32 %v2421_v25, %v1789_v57  ;;  %v6663_v25 = vld [vmem:[%s5733_s23 + $0x50] sm:$0x1]  ;;  %v3708_v27 = vpack.c.b16 %v3680_v22, %v3679_v4  ;;  %v3386_v22 = vrot.slane %v3385_v35, 4 }
 0x198   : > { %v1475_v44 = vadd.f32 %v1426_v54, %v1046_v9  ;;  %v3388_v11 = vshll.u32 %v6663_v25, 16  ;;  %v2578_v54 = vsel %vm6048_vm5, %v5059_v3, %v2577_v32  ;;  %v3376_v49 = vrot.slane %v3375_v21, 4 }
 0x199   : > { %v1048_v53 = vpop.f32.mrf.mxu1  ;;  %v2684_v32 = vunpack.c.l.b16 %v2578_v54  ;;  %v3393_v3 = vshrl.u32 %v5278_v37, 16  ;;  %v4003_v35 = vrot.slane %v6663_v25, 5 }
 0x19a   : > { %v2423_v16 = vpop.f32.mrf.mxu0  ;;  %v1049_v62 = vadd.f32 %v1048_v53, %v6284_v14  ;;  %v3390_v13 = vrot.slane %v3388_v11, 5  ;;  %v4000_v14 = vrot.slane %v6640_v39, 5 }
 0x19b   : > { %2811 = vmatmul.bf16.gmra.mxu1 %v2711_v2  ;;  %v2581_v2 = vsel %vm6048_vm5, %v2579_v8, %v2580_v42  ;;  %v3396_v8 = vshll.u32 %v5278_v37, 16  ;;  %v3395_v11 = vrot.slane %v3393_v3, 4 }
 0x19c   : > { %v1741_v7 = vpop.f32.mrf.mxu3  ;;  %3126 = vmatmul.bf16.gmra.mxu2 %v5557_v0  ;;  %v4134_v0 = vpack.c.b16 %v4106_v61, %v4105_v55  ;;  %v2685_v51 = vunpack.c.l.b16 %v2581_v2  ;;  %v3381_v55 = vsel %vm5748_vm2, %v3376_v49, %v6660_v31  ;;  %v5379_v61 = vrot.slane %v5363_v46, 9 }
 0x19d   : > { %v1790_v57 = vadd.f32 %v1741_v7, %v1475_v44  ;;  %v6675_v44 = vld [vmem:[%s5733_s23 + $0x58] sm:$0xf]  ;;  %v4002_v21 = vrot.slane %v4000_v14, 4 }
 0x19e   : > { %v3402_v19 = vshll.u32 %v6675_v44, 16  ;;  %v3406_v42 = vshrl.u32 %v6675_v44, 16 }
 0x19f   : > { %v1429_v9 = vpop.f32.mrf.mxu2  ;;  %v6678_v53 = vadd.f32 %v2423_v16, %v1790_v57  ;;  %v3391_v16 = vsel %vm5748_vm2, %v3386_v22, %v3390_v13  ;;  %v6697_v22 = vld [vmem:[%s5733_s23 + $0x5c] sm:$0x1]  ;;  %v4004_v46 = vsel %vm6048_vm5, %v4002_v21, %v4003_v35 }
 0x1a0   : > { %v1476_v18 = vadd.f32 %v1429_v9, %v1049_v62  ;;  %v3398_v9 = vrot.slane %v3396_v8, 5  ;;  %v6690_v31 = vrot.slane %v3402_v19, 5  ;;  %v3408_v54 = vrot.slane %v3406_v42, 4 }
 0x1a1   : > { %3808 = vmatmul.bf16.gmra.mxu3 %v3708_v27  ;;  %v1050_v4 = vpop.f32.mrf.mxu1  ;;  %v2712_v27 = vpack.c.b16 %v2685_v51, %v2684_v32  ;;  %v3682_v13 = vunpack.c.l.b16 %v3391_v16  ;;  %v5044_v32 = vld [vmem:[%s5733_s23 + $0x48] sm:$0xe]  ;;  %v4001_v51 = vsel %vm6048_vm5, %v5379_v61, %v4000_v14  ;;  %v3412_v8 = vshll.u32 %v6697_v22, 16 }
 0x1a2   : > { %v2426_v33 = vpop.f32.mrf.mxu0  ;;  %v1051_v57 = vadd.f32 %v1050_v4, %v6299_v38  ;;  %v3681_v4 = vunpack.c.l.b16 %v3381_v55  ;;  %v3409_v3 = vor.u32 %v3408_v54, %v6690_v31  ;;  %v5060_v42 = vrot.slane %v5044_v32, 9  ;;  %v5660_v55 = vld [vmem:[%s5733_s23 + $0x50] sm:$0x1]  ;;  %v5281_v32 = vld [vmem:[%s5733_s23 + $0x60] sm:$0xf] }
 0x1a3   : > { %v4107_v14 = vunpack.c.l.b16 %v4001_v51  ;;  %v4108_v61 = vunpack.c.l.b16 %v4004_v46  ;;  %v6718_v51 = vld [vmem:[%s5733_s23 + $0x64] sm:$0xf] }
 0x1a4   : > { %v1744_v7 = vpop.f32.mrf.mxu3 }
 0x1a5   : > { %4234 = vmatmul.bf16.gmra.mxu0 %v4134_v0  ;;  %v1791_v39 = vadd.f32 %v1744_v7, %v1476_v18  ;;  %v5558_v0 = vld [vmem:[%s5733_s23 + $0x48] sm:$0xff] }
 0x1a6   : > { %v5659_v18 = vld [vmem:[%s5733_s23 + $0x4c] sm:$0xf] }
 0x1a7   : > { %v1431_v62 = vpop.f32.mrf.mxu2  ;;  %v6692_v2 = vadd.f32 %v2426_v33, %v1791_v39  ;;  %v2584_v49 = vrot.slane %v5659_v18, 5  ;;  %v3399_v33 = vor.u32 %v3398_v9, %v3395_v11  ;;  %v2587_v39 = vrot.slane %v5660_v55, 5  ;;  %v5364_v18 = vld [vmem:[%s5733_s23 + $0x54] sm:$0xe] }
 0x1a8   : > { %v1477_v37 = vadd.f32 %v1431_v62, %v1051_v57  ;;  %v3709_v57 = vpack.c.b16 %v3682_v13, %v3681_v4  ;;  %v3410_v11 = vrot.slane %v3409_v3, 4  ;;  %v3414_v62 = vrot.slane %v3412_v8, 5 }
 0x1a9   : > { %v1053_v38 = vpop.f32.mrf.mxu1  ;;  %v2586_v7 = vrot.slane %v2584_v49, 4  ;;  %v3400_v35 = vrot.slane %v3399_v33, 4  ;;  %v2585_v54 = vsel %vm6048_vm5, %v5060_v42, %v2584_v49  ;;  %v4135_v4 = vpack.c.b16 %v4108_v61, %v4107_v14 }
 0x1aa   : > { %v2428_v25 = vpop.f32.mrf.mxu0  ;;  %v1054_v21 = vadd.f32 %v1053_v38, %v6169_v50  ;;  %v2686_v46 = vunpack.c.l.b16 %v2585_v54  ;;  %v5380_v3 = vrot.slane %v5364_v18, 9  ;;  %v3417_v42 = vshrl.u32 %v5281_v32, 16  ;;  %v5045_v54 = vld [vmem:[%s5733_s23 + $0x54] sm:$0xe] }
 0x1ab   : > { %2816 = vmatmul.bf16.gmra.mxu1 %v2712_v27  ;;  %v3405_v49 = vsel %vm5748_vm2, %v3400_v35, %v6690_v31  ;;  %v4010_v55 = vrot.slane %v6697_v22, 5 }
 0x1ac   : > { %v1746_v19 = vpop.f32.mrf.mxu3  ;;  %3131 = vmatmul.bf16.gmra.mxu2 %v5558_v0  ;;  %v2588_v0 = vsel %vm6048_vm5, %v2586_v7, %v2587_v39  ;;  %v3426_v39 = vshll.u32 %v6718_v51, 16  ;;  %v3683_v61 = vunpack.c.l.b16 %v3405_v49  ;;  %v3419_v22 = vrot.slane %v3417_v42, 4 }
 0x1ad   : > { %v1792_v16 = vadd.f32 %v1746_v19, %v1477_v37  ;;  %v4007_v37 = vrot.slane %v6675_v44, 5  ;;  %v2687_v33 = vunpack.c.l.b16 %v2588_v0  ;;  %v3415_v44 = vsel %vm5748_vm2, %v3410_v11, %v3414_v62  ;;  %v5559_v62 = vld [vmem:[%s5733_s23 + $0x54] sm:$0xff] }
 0x1af   : > { %v1434_v27 = vpop.f32.mrf.mxu2  ;;  %v6715_v50 = vadd.f32 %v2428_v25, %v1792_v16  ;;  %v4009_v19 = vrot.slane %v4007_v37, 4  ;;  %v3420_v25 = vshll.u32 %v5281_v32, 16  ;;  %v3430_v16 = vshrl.u32 %v6718_v51, 16 }
 0x1b0   : > { %v1478_v9 = vadd.f32 %v1434_v27, %v1054_v21  ;;  %v2713_v14 = vpack.c.b16 %v2687_v33, %v2686_v46  ;;  %v5661_v21 = vld [vmem:[%s5733_s23 + $0x58] sm:$0xf]  ;;  %v6739_v33 = vld [vmem:[%s5733_s23 + $0x68] sm:$0x1] }
 0x1b1   : > { %3813 = vmatmul.bf16.gmra.mxu3 %v3709_v57  ;;  %v1055_v13 = vpop.f32.mrf.mxu1  ;;  %v2591_v27 = vrot.slane %v5661_v21, 5  ;;  %v3422_v0 = vrot.slane %v3420_v25, 5  ;;  %v3432_v32 = vrot.slane %v3430_v16, 4  ;;  %v5284_v21 = vld [vmem:[%s5733_s23 + $0x6c] sm:$0xf] }
 0x1b2   : > { %v2431_v38 = vpop.f32.mrf.mxu0  ;;  %v1056_v31 = vadd.f32 %v1055_v13, %v6192_v40  ;;  %v4011_v40 = vsel %vm6048_vm5, %v4009_v19, %v4010_v55  ;;  %v3428_v13 = vrot.slane %v3426_v39, 5  ;;  %v3436_v55 = vshll.u32 %v6739_v33, 16 }
 0x1b3   : > { %v2593_v49 = vrot.slane %v2591_v27, 4 }
 0x1b4   : > { %v1749_v8 = vpop.f32.mrf.mxu3  ;;  %v3433_v19 = vor.u32 %v3432_v32, %v3428_v13  ;;  %v5365_v32 = vld [vmem:[%s5733_s23 + $0x60] sm:$0xe] }
 0x1b5   : > { %4239 = vmatmul.bf16.gmra.mxu0 %v4135_v4  ;;  %v1793_v7 = vadd.f32 %v1749_v8, %v1478_v9  ;;  %v3684_v9 = vunpack.c.l.b16 %v3415_v44  ;;  %v4008_v4 = vsel %vm6048_vm5, %v5380_v3, %v4007_v37  ;;  %v5662_v8 = vld [vmem:[%s5733_s23 + $0x5c] sm:$0x1]  ;;  %v3423_v37 = vor.u32 %v3422_v0, %v3419_v22  ;;  %v6750_v22 = vld [vmem:[%s5733_s23 + $0x70] sm:$0xf] }
 0x1b6   : > { %v2594_v44 = vrot.slane %v5662_v8, 5  ;;  %v4109_v25 = vunpack.c.l.b16 %v4008_v4  ;;  %v3450_v8 = vshll.u32 %v6750_v22, 16 }
 0x1b7   : > { %v1436_v57 = vpop.f32.mrf.mxu2  ;;  %v6730_v35 = vadd.f32 %v2431_v38, %v1793_v7  ;;  %v5061_v38 = vrot.slane %v5045_v54, 9  ;;  %v4110_v7 = vunpack.c.l.b16 %v4011_v40  ;;  %v3424_v4 = vrot.slane %v3423_v37, 4 }
 0x1b8   : > { %v1479_v11 = vadd.f32 %v1436_v57, %v1056_v31  ;;  %v3710_v31 = vpack.c.b16 %v3684_v9, %v3683_v61  ;;  %v3438_v9 = vrot.slane %v3436_v55, 5 }
 0x1b9   : > { %v1058_v18 = vpop.f32.mrf.mxu1  ;;  %v2592_v57 = vsel %vm6048_vm5, %v5061_v38, %v2591_v27  ;;  %v3441_v38 = vshrl.u32 %v5284_v21, 16 }
 0x1ba   : > { %v2433_v46 = vpop.f32.mrf.mxu0  ;;  %v1059_v39 = vadd.f32 %v1058_v18, %v6213_v6  ;;  %v4014_v6 = vrot.slane %v6718_v51, 5  ;;  %v2688_v27 = vunpack.c.l.b16 %v2592_v57 }
 0x1bb   : > { %2821 = vmatmul.bf16.gmra.mxu1 %v2713_v14  ;;  %v2595_v14 = vsel %vm6048_vm5, %v2593_v49, %v2594_v44  ;;  %v3444_v49 = vshll.u32 %v5284_v21, 16  ;;  %v3454_v44 = vshrl.u32 %v6750_v22, 16  ;;  %v3443_v55 = vrot.slane %v3441_v38, 4 }
 0x1bc   : > { %v1751_v42 = vpop.f32.mrf.mxu3  ;;  %3136 = vmatmul.bf16.gmra.mxu2 %v5559_v62  ;;  %v4136_v62 = vpack.c.b16 %v4110_v7, %v4109_v25  ;;  %v2689_v40 = vunpack.c.l.b16 %v2595_v14  ;;  %v3429_v25 = vsel %vm5748_vm2, %v3424_v4, %v3428_v13  ;;  %v5381_v7 = vrot.slane %v5365_v32, 9 }
 0x1bd   : > { %v1794_v3 = vadd.f32 %v1751_v42, %v1479_v11  ;;  %v3434_v11 = vrot.slane %v3433_v19, 4  ;;  %v4016_v37 = vrot.slane %v4014_v6, 4  ;;  %v4017_v19 = vrot.slane %v6739_v33, 5 }
 0x1be   : > { %v6764_v13 = vrot.slane %v3450_v8, 5  ;;  %v3456_v57 = vrot.slane %v3454_v44, 4 }
 0x1bf   : > { %v1439_v16 = vpop.f32.mrf.mxu2  ;;  %v6753_v0 = vadd.f32 %v2433_v46, %v1794_v3  ;;  %v3439_v46 = vsel %vm5748_vm2, %v3434_v11, %v3438_v9  ;;  %v5046_v9 = vld [vmem:[%s5733_s23 + $0x60] sm:$0xe]  ;;  %v4018_v32 = vsel %vm6048_vm5, %v4016_v37, %v4017_v19 }
 0x1c0   : > { %v1480_v54 = vadd.f32 %v1439_v16, %v1059_v39  ;;  %v3446_v16 = vrot.slane %v3444_v49, 5  ;;  %v3457_v38 = vor.u32 %v3456_v57, %v6764_v13  ;;  %v5062_v8 = vrot.slane %v5046_v9, 9 }
 0x1c1   : > { %3818 = vmatmul.bf16.gmra.mxu3 %v3710_v31  ;;  %v1060_v61 = vpop.f32.mrf.mxu1  ;;  %v2714_v31 = vpack.c.b16 %v2689_v40, %v2688_v27  ;;  %v6772_v27 = vld [vmem:[%s5733_s23 + $0x74] sm:$0x1]  ;;  %v4015_v40 = vsel %vm6048_vm5, %v5381_v7, %v4014_v6  ;;  %v4112_v6 = vunpack.c.l.b16 %v4018_v32 }
 0x1c2   : > { %v2436_v18 = vpop.f32.mrf.mxu0  ;;  %v1061_v3 = vadd.f32 %v1060_v61, %v6227_v28  ;;  %v3685_v28 = vunpack.c.l.b16 %v3429_v25  ;;  %v3686_v61 = vunpack.c.l.b16 %v3439_v46  ;;  %v3458_v19 = vrot.slane %v3457_v38, 4 }
 0x1c4   : > { %v1754_v42 = vpop.f32.mrf.mxu3 }
 0x1c5   : > { %4244 = vmatmul.bf16.gmra.mxu0 %v4136_v62  ;;  %v1795_v51 = vadd.f32 %v1754_v42, %v1480_v54  ;;  %v5560_v62 = vld [vmem:[%s5733_s23 + $0x60] sm:$0xff]  ;;  %v5664_v42 = vld [vmem:[%s5733_s23 + $0x68] sm:$0x1] }
 0x1c6   : > { %v5663_v54 = vld [vmem:[%s5733_s23 + $0x64] sm:$0xf]  ;;  %v2601_v25 = vrot.slane %v5664_v42, 5 }
 0x1c7   : > { %v1441_v39 = vpop.f32.mrf.mxu2  ;;  %v6766_v14 = vadd.f32 %v2436_v18, %v1795_v51  ;;  %v2598_v4 = vrot.slane %v5663_v54, 5  ;;  %v3447_v18 = vor.u32 %v3446_v16, %v3443_v55  ;;  %v3460_v51 = vshll.u32 %v6772_v27, 16 }
 0x1c8   : > { %v1481_v21 = vadd.f32 %v1441_v39, %v1061_v3  ;;  %v3711_v3 = vpack.c.b16 %v3686_v61, %v3685_v28  ;;  %v4111_v39 = vunpack.c.l.b16 %v4015_v40  ;;  %v5366_v28 = vld [vmem:[%s5733_s23 + $0x6c] sm:$0xe]  ;;  %v4021_v61 = vrot.slane %v6750_v22, 5 }
 0x1c9   : > { %v1063_v11 = vpop.f32.mrf.mxu1  ;;  %v2600_v44 = vrot.slane %v2598_v4, 4  ;;  %v2599_v16 = vsel %vm6048_vm5, %v5062_v8, %v2598_v4  ;;  %v5382_v8 = vrot.slane %v5366_v28, 9 }
 0x1ca   : > { %v2438_v33 = vpop.f32.mrf.mxu0  ;;  %v1064_v7 = vadd.f32 %v1063_v11, %v6245_v63  ;;  %v5287_v11 = vld [vmem:[%s5733_s23 + $0x78] sm:$0xf]  ;;  %v2690_v40 = vunpack.c.l.b16 %v2599_v16 }
 0x1cb   : > { %2826 = vmatmul.bf16.gmra.mxu1 %v2714_v31  ;;  %v3448_v31 = vrot.slane %v3447_v18, 4  ;;  %v2602_v57 = vsel %vm6048_vm5, %v2600_v44, %v2601_v25  ;;  %v6792_v18 = vld [vmem:[%s5733_s23 + $0x7c] sm:$0xf]  ;;  %v4024_v44 = vrot.slane %v6772_v27, 5  ;;  %v3465_v42 = vshrl.u32 %v5287_v11, 16 }
 0x1cc   : > { %v1756_v49 = vpop.f32.mrf.mxu3  ;;  %3141 = vmatmul.bf16.gmra.mxu2 %v5560_v62  ;;  %v3462_v62 = vrot.slane %v3460_v51, 5  ;;  %v2691_v32 = vunpack.c.l.b16 %v2602_v57  ;;  %v3468_v51 = vshll.u32 %v5287_v11, 16 }
 0x1cd   : > { %v1796_v46 = vadd.f32 %v1756_v49, %v1481_v21  ;;  %v4137_v21 = vpack.c.b16 %v4112_v6, %v4111_v39  ;;  %v3453_v4 = vsel %vm5748_vm2, %v3448_v31, %v6764_v13  ;;  %v3478_v13 = vshrl.u32 %v6792_v18, 16  ;;  %v5665_v31 = vld [vmem:[%s5733_s23 + $0x70] sm:$0xf] }
 0x1ce   : > { %v3463_v49 = vsel %vm5748_vm2, %v3458_v19, %v3462_v62  ;;  %v2715_v39 = vpack.c.b16 %v2691_v32, %v2690_v40  ;;  %v2605_v19 = vrot.slane %v5665_v31, 5  ;;  %v3687_v27 = vunpack.c.l.b16 %v3453_v4  ;;  %v5047_v62 = vld [vmem:[%s5733_s23 + $0x6c] sm:$0xe]  ;;  %v5289_v40 = vld [vmem:[%s5733_s23 + $0x80] sm:$0x1] }
 0x1cf   : > { %v1444_v37 = vpop.f32.mrf.mxu2  ;;  %v6788_v9 = vadd.f32 %v2438_v33, %v1796_v46  ;;  %v4023_v33 = vrot.slane %v4021_v61, 4  ;;  %v3474_v46 = vshll.u32 %v6792_v18, 16  ;;  %v3688_v16 = vunpack.c.l.b16 %v3463_v49  ;;  %v5666_v49 = vld [vmem:[%s5733_s23 + $0x74] sm:$0x1] }
 0x1d0   : > { %v1482_v55 = vadd.f32 %v1444_v37, %v1064_v7  ;;  %v5561_v37 = vld [vmem:[%s5733_s23 + $0x6c] sm:$0xff]  ;;  %v3470_v28 = vrot.slane %v3468_v51, 5  ;;  %v3480_v11 = vrot.slane %v3478_v13, 4  ;;  %v2607_v4 = vrot.slane %v2605_v19, 4 }
 0x1d1   : > { %3823 = vmatmul.bf16.gmra.mxu3 %v3711_v3  ;;  %v1065_v54 = vpop.f32.mrf.mxu1  ;;  %v4025_v57 = vsel %vm6048_vm5, %v4023_v33, %v4024_v44 }
 0x1d2   : > { %v2441_v63 = vpop.f32.mrf.mxu0  ;;  %v1066_v25 = vadd.f32 %v1065_v54, %v6276_v41  ;;  %v4022_v41 = vsel %vm6048_vm5, %v5382_v8, %v4021_v61  ;;  %v3467_v54 = vrot.slane %v3465_v42, 4  ;;  %v3712_v61 = vpack.c.b16 %v3688_v16, %v3687_v27 }
 0x1d3   : > { %v4113_v8 = vunpack.c.l.b16 %v4022_v41  ;;  %v4114_v33 = vunpack.c.l.b16 %v4025_v57  ;;  %v5290_v41 = vld [vmem:[%s5733_s23 + $0x84] sm:$0xf] }
 0x1d4   : > { %v1759_v38 = vpop.f32.mrf.mxu3  ;;  %v3471_v42 = vor.u32 %v3470_v28, %v3467_v54 }
 0x1d5   : > { %4249 = vmatmul.bf16.gmra.mxu0 %v4137_v21  ;;  %v1797_v22 = vadd.f32 %v1759_v38, %v1482_v55  ;;  %v5063_v38 = vrot.slane %v5047_v62, 9  ;;  %v4138_v27 = vpack.c.b16 %v4114_v33, %v4113_v8 }
 0x1d6   : > { %v3472_v57 = vrot.slane %v3471_v42, 4 }
 0x1d7   : > { %v1446_v3 = vpop.f32.mrf.mxu2  ;;  %v6803_v6 = vadd.f32 %v2441_v63, %v1797_v22  ;;  %v3476_v63 = vrot.slane %v3474_v46, 5  ;;  %v2608_v22 = vrot.slane %v5666_v49, 5  ;;  %v3484_v46 = vshll.u32 %v5289_v40, 16 }
 0x1d8   : > { %v1483_v7 = vadd.f32 %v1446_v3, %v1066_v25  ;;  %v5367_v3 = vld [vmem:[%s5733_s23 + $0x78] sm:$0xe]  ;;  %v2606_v31 = vsel %vm6048_vm5, %v5063_v38, %v2605_v19  ;;  %v4031_v19 = vrot.slane %v5289_v40, 5 }
 0x1d9   : > { %v1068_v55 = vpop.f32.mrf.mxu1  ;;  %v3481_v51 = vor.u32 %v3480_v11, %v3476_v63  ;;  %v3486_v54 = vrot.slane %v3484_v46, 5  ;;  %v5383_v28 = vrot.slane %v5367_v3, 9  ;;  %v6825_v11 = vld [vmem:[%s5733_s23 + $0x88] sm:$0xf]  ;;  %v3477_v33 = vsel %vm5748_vm2, %v3472_v57, %v3476_v63  ;;  %v5048_v57 = vld [vmem:[%s5733_s23 + $0x78] sm:$0xe] }
 0x1da   : > { %v2443_v21 = vpop.f32.mrf.mxu0  ;;  %v1069_v44 = vadd.f32 %v1068_v55, %v6296_v15 }
 0x1db   : > { %2831 = vmatmul.bf16.gmra.mxu1 %v2715_v39  ;;  %v4028_v39 = vrot.slane %v6792_v18, 5  ;;  %v3482_v62 = vrot.slane %v3481_v51, 4  ;;  %v2692_v18 = vunpack.c.l.b16 %v2606_v31 }
 0x1dc   : > { %v1761_v32 = vpop.f32.mrf.mxu3  ;;  %3146 = vmatmul.bf16.gmra.mxu2 %v5561_v37 }
 0x1dd   : > { %v1798_v25 = vadd.f32 %v1761_v32, %v1483_v7  ;;  %v2609_v7 = vsel %vm6048_vm5, %v2607_v4, %v2608_v22  ;;  %v4030_v49 = vrot.slane %v4028_v39, 4  ;;  %v3489_v4 = vshrl.u32 %v5290_v41, 16 }
 0x1de   : > { %v2693_v32 = vunpack.c.l.b16 %v2609_v7  ;;  %v3492_v22 = vshll.u32 %v5290_v41, 16  ;;  %v3487_v40 = vsel %vm5748_vm2, %v3482_v62, %v3486_v54  ;;  %v4029_v51 = vsel %vm6048_vm5, %v5383_v28, %v4028_v39  ;;  %v6844_v28 = vld [vmem:[%s5733_s23 + $0x8c] sm:$0x1] }
 0x1df   : > { %v1449_v13 = vpop.f32.mrf.mxu2  ;;  %v6822_v15 = vadd.f32 %v2443_v21, %v1798_v25  ;;  %v3498_v21 = vshll.u32 %v6825_v11, 16  ;;  %v3502_v25 = vshrl.u32 %v6825_v11, 16  ;;  %v4032_v46 = vsel %vm6048_vm5, %v4030_v49, %v4031_v19 }
 0x1e0   : > { %v1484_v37 = vadd.f32 %v1449_v13, %v1069_v44  ;;  %v2716_v42 = vpack.c.b16 %v2693_v32, %v2692_v18  ;;  %v3491_v63 = vrot.slane %v3489_v4, 4  ;;  %v3494_v7 = vrot.slane %v3492_v22, 5 }
 0x1e1   : > { %3828 = vmatmul.bf16.gmra.mxu3 %v3712_v61  ;;  %v1070_v16 = vpop.f32.mrf.mxu1  ;;  %v3690_v41 = vunpack.c.l.b16 %v3487_v40  ;;  %v3500_v62 = vrot.slane %v3498_v21, 5  ;;  %v3504_v54 = vrot.slane %v3502_v25, 4  ;;  %v4116_v18 = vunpack.c.l.b16 %v4032_v46 }
 0x1e2   : > { %v2446_v55 = vpop.f32.mrf.mxu0  ;;  %v1071_v8 = vadd.f32 %v1070_v16, %v6311_v1  ;;  %v5562_v1 = vld [vmem:[%s5733_s23 + $0x78] sm:$0xff]  ;;  %v3689_v16 = vunpack.c.l.b16 %v3477_v33  ;;  %v5064_v49 = vrot.slane %v5048_v57, 9  ;;  %v3495_v22 = vor.u32 %v3494_v7, %v3491_v63 }
 0x1e3   : > { %v3505_v33 = vor.u32 %v3504_v54, %v3500_v62  ;;  %v3508_v21 = vshll.u32 %v6844_v28, 16  ;;  %v4035_v57 = vrot.slane %v6825_v11, 5 }
 0x1e4   : > { %v1764_v38 = vpop.f32.mrf.mxu3 }
 0x1e5   : > { %4254 = vmatmul.bf16.gmra.mxu0 %v4138_v27  ;;  %v1799_v61 = vadd.f32 %v1764_v38, %v1484_v37  ;;  %v5667_v37 = vld [vmem:[%s5733_s23 + $0x7c] sm:$0xf]  ;;  %v5668_v38 = vld [vmem:[%s5733_s23 + $0x80] sm:$0x1]  ;;  %v3506_v63 = vrot.slane %v3505_v33, 4  ;;  %v3510_v7 = vrot.slane %v3508_v21, 5 }
 0x1e6   : > { %v2612_v31 = vrot.slane %v5667_v37, 5  ;;  %v2615_v4 = vrot.slane %v5668_v38, 5 }
 0x1e7   : > { %v1451_v44 = vpop.f32.mrf.mxu2  ;;  %v6838_v13 = vadd.f32 %v2446_v55, %v1799_v61  ;;  %v4115_v55 = vunpack.c.l.b16 %v4029_v51 }
 0x1e8   : > { %v1485_v3 = vadd.f32 %v1451_v44, %v1071_v8  ;;  %v2614_v19 = vrot.slane %v2612_v31, 4  ;;  %v3713_v8 = vpack.c.b16 %v3690_v41, %v3689_v16  ;;  %v5293_v44 = vld [vmem:[%s5733_s23 + $0x90] sm:$0xf]  ;;  %v2613_v51 = vsel %vm6048_vm5, %v5064_v49, %v2612_v31  ;;  %v6855_v16 = vld [vmem:[%s5733_s23 + $0x94] sm:$0xf] }
 0x1e9   : > { %v2797_v27 = vpop.f32.mrf.mxu1  ;;  %v3513_v54 = vshrl.u32 %v5293_v44, 16  ;;  %v2694_v31 = vunpack.c.l.b16 %v2613_v51  ;;  %v3522_v49 = vshll.u32 %v6855_v16, 16  ;;  %v5049_v51 = vld [vmem:[%s5733_s23 + $0x84] sm:$0xe] }
 0x1ea   : > { %v2448_v39 = vpop.f32.mrf.mxu0  ;;  %v2877_v25 = vadd.f32 %v2797_v27, %v6337_v59  ;;  %v2616_v46 = vsel %vm6048_vm5, %v2614_v19, %v2615_v4  ;;  %v5368_v27 = vld [vmem:[%s5733_s23 + $0x84] sm:$0xe]  ;;  %v3526_v19 = vshrl.u32 %v6855_v16, 16  ;;  %v3511_v4 = vsel %vm5748_vm2, %v3506_v63, %v3510_v7 }
 0x1eb   : > { %2836 = vmatmul.bf16.gmra.mxu1 %v2716_v42  ;;  %v4139_v42 = vpack.c.b16 %v4116_v18, %v4115_v55  ;;  %v3516_v55 = vshll.u32 %v5293_v44, 16  ;;  %v2695_v18 = vunpack.c.l.b16 %v2616_v46  ;;  %v3515_v33 = vrot.slane %v3513_v54, 4  ;;  %v5669_v46 = vld [vmem:[%s5733_s23 + $0x88] sm:$0xf] }
 0x1ec   : > { %v1766_v32 = vpop.f32.mrf.mxu3  ;;  %3151 = vmatmul.bf16.gmra.mxu2 %v5562_v1  ;;  %v3496_v1 = vrot.slane %v3495_v22, 4  ;;  %v5384_v22 = vrot.slane %v5368_v27, 9  ;;  %v3528_v63 = vrot.slane %v3526_v19, 4 }
 0x1ed   : > { %v1800_v61 = vadd.f32 %v1766_v32, %v1485_v3  ;;  %v3518_v21 = vrot.slane %v3516_v55, 5 }
 0x1ee   : > { %v3501_v11 = vsel %vm5748_vm2, %v3496_v1, %v3500_v62  ;;  %v5563_v62 = vld [vmem:[%s5733_s23 + $0x84] sm:$0xff] }
 0x1ef   : > { %v3112_v40 = vpop.f32.mrf.mxu2  ;;  %v6857_v41 = vadd.f32 %v2448_v39, %v1800_v61  ;;  %v6866_v39 = vld [vmem:[%s7177_s2] ss:$0 sm:$0xff]  ;;  %v4037_v61 = vrot.slane %v4035_v57, 4  ;;  %v3691_v1 = vunpack.c.l.b16 %v3501_v11 }
 0x1f0   : > { %v3192_v3 = vadd.f32 %v3112_v40, %v2877_v25 }
 0x1f1   : > { %3833 = vmatmul.bf16.gmra.mxu3 %v3713_v8  ;;  %v2799_v37 = vpop.f32.mrf.mxu1  ;;  %v4038_v8 = vrot.slane %v6844_v28, 5 }
 0x1f2   : > { %v4220_v59 = vpop.f32.mrf.mxu0  ;;  %v2878_v40 = vadd.f32 %v2799_v37, %v6348_v5  ;;  %v4036_v5 = vsel %vm6048_vm5, %v5384_v22, %v4035_v57  ;;  %v6883_v37 = vld [vmem:[%s5733_s23 + $0x98] sm:$0x1] }
 0x1f3   : > { %v4039_v55 = vsel %vm6048_vm5, %v4037_v61, %v4038_v8  ;;  %v3532_v22 = vshll.u32 %v6883_v37, 16 }
 0x1f4   : > { %v3794_v32 = vpop.f32.mrf.mxu3  ;;  %v4118_v61 = vunpack.c.l.b16 %v4039_v55 }
 0x1f5   : > { %4259 = vmatmul.bf16.gmra.mxu0 %v4139_v42  ;;  %v3874_v38 = vadd.f32 %v3794_v32, %v3192_v3  ;;  %v2717_v42 = vpack.c.b16 %v2695_v18, %v2694_v31  ;;  %v2619_v3 = vrot.slane %v5669_v46, 5  ;;  %v6877_v32 = vrot.slane %v3522_v49, 5 }
 0x1f6   : > { %v5065_v31 = vrot.slane %v5049_v51, 9  ;;  %v3519_v18 = vor.u32 %v3518_v21, %v3515_v33 }
 0x1f7   : > { %v4300_v25 = vadd.f32 %v4220_v59, %v3874_v38  ;;  %v3114_v44 = vpop.f32.mrf.mxu2  ;;  %v3692_v59 = vunpack.c.l.b16 %v3511_v4  ;;  %v2621_v19 = vrot.slane %v2619_v3, 4  ;;  %v5670_v38 = vld [vmem:[%s5733_s23 + $0x8c] sm:$0x1]  ;;  %v4117_v4 = vunpack.c.l.b16 %v4036_v5 }
 0x1f8   : > { %v3193_v7 = vadd.f32 %v3114_v44, %v2878_v40  ;;  %v2622_v11 = vrot.slane %v5670_v38, 5  ;;  %v3529_v57 = vor.u32 %v3528_v63, %v6877_v32  ;;  %v2620_v8 = vsel %vm6048_vm5, %v5065_v31, %v2619_v3  ;;  %v5296_v63 = vld [vmem:[%s5733_s23 + $0x9c] sm:$0xf]  ;;  %v5369_v31 = vld [vmem:[%s5733_s23 + $0x90] sm:$0xe] }
 0x1f9   : > { %v4336_v28 = vadd.f32 %v6866_v39, %v4300_v25  ;;  %v2802_v27 = vpop.f32.mrf.mxu1  ;;  %v3714_v46 = vpack.c.b16 %v3692_v59, %v3691_v1  ;;  %v3520_v33 = vrot.slane %v3519_v18, 4  ;;  %v4140_v5 = vpack.c.b16 %v4118_v61, %v4117_v4 }
 0x1fa   : > { %v4222_v54 = vpop.f32.mrf.mxu0  ;;  %v2879_v51 = vadd.f32 %v2802_v27, %v6358_v48  ;;  %v2623_v1 = vsel %vm6048_vm5, %v2621_v19, %v2622_v11  ;;  %v4042_v18 = vrot.slane %v6855_v16, 5  ;;  %v2696_v27 = vunpack.c.l.b16 %v2620_v8 }
 0x1fb   : > { %v5439_v49 = vclamps-f32 %v4336_v28, 1.0  ;;  %2841 = vmatmul.bf16.gmra.mxu1 %v2717_v42  ;;  %v3530_v28 = vrot.slane %v3529_v57, 4  ;;  %v3537_v38 = vshrl.u32 %v5296_v63, 16  ;;  %v3540_v19 = vshll.u32 %v5296_v63, 16  ;;  %v5050_v63 = vld [vmem:[%s5733_s23 + $0x90] sm:$0xe] }
 0x1fc   : > { %v3796_v25 = vpop.f32.mrf.mxu3  ;;  %3156 = vmatmul.bf16.gmra.mxu2 %v5563_v62  ;;  %v4044_v61 = vrot.slane %v4042_v18, 4  ;;  %v4045_v8 = vrot.slane %v6883_v37, 5 }
 0x1fd   : > { %v4432_v40 = vadd.f32 1.0, %v5439_v49  ;;  %v3875_v44 = vadd.f32 %v3796_v25, %v3193_v7  ;;  %v3534_v7 = vrot.slane %v3532_v22, 5  ;;  %v2697_v49 = vunpack.c.l.b16 %v2623_v1 }
 0x1fe   : > { %v3525_v25 = vsel %vm5748_vm2, %v3520_v33, %v6877_v32  ;;  %v5385_v22 = vrot.slane %v5369_v31, 9  ;;  %v3539_v33 = vrot.slane %v3537_v38, 4 }
 0x1ff   : > { %v4464_v21 = vmul.f32 0.5, %v4432_v40  ;;  %v4301_v42 = vadd.f32 %v4222_v54, %v3875_v44  ;;  %v3117_v62 = vpop.f32.mrf.mxu2  ;;  %v6907_v54 = vld [vmem:[%s5733_s23 + $0xa0] sm:$0xf]  ;;  %v3535_v4 = vsel %vm5748_vm2, %v3530_v28, %v3534_v7  ;;  %v2718_v32 = vpack.c.b16 %v2697_v49, %v2696_v27  ;;  %v5671_v28 = vld [vmem:[%s5733_s23 + $0x94] sm:$0xf] }
 0x200   : > { %v3194_v3 = vadd.f32 %v3117_v62, %v2879_v51  ;;  %v3546_v16 = vshll.u32 %v6907_v54, 16  ;;  %v3550_v40 = vshrl.u32 %v6907_v54, 16  ;;  %v2626_v7 = vrot.slane %v5671_v28, 5 }
 0x201   : > { %4496 = vst [vmem:[%s6894_s13] sm:$0xff] %v4464_v21  ;;  %v4337_v59 = vadd.f32 %v6866_v39, %v4301_v42  ;;  %3838 = vmatmul.bf16.gmra.mxu3 %v3714_v46  ;;  %v2804_v55 = vpop.f32.mrf.mxu1  ;;  %v3542_v21 = vrot.slane %v3540_v19, 5  ;;  %v3693_v31 = vunpack.c.l.b16 %v3525_v25 }
 0x202   : > { %v4225_v48 = vpop.f32.mrf.mxu0  ;;  %v2880_v62 = vadd.f32 %v2804_v55, %v6372_v47  ;;  %v3552_v37 = vrot.slane %v3550_v40, 4  ;;  %v4043_v47 = vsel %vm6048_vm5, %v5385_v22, %v4042_v18  ;;  %v4046_v55 = vsel %vm6048_vm5, %v4044_v61, %v4045_v8 }
 0x203   : > { %v5440_v11 = vclamps-f32 %v4337_v59, 1.0  ;;  %v5564_v59 = vld [vmem:[%s5733_s23 + $0x90] sm:$0xff]  ;;  %v3543_v25 = vor.u32 %v3542_v21, %v3539_v33  ;;  %v5299_v21 = vld [vmem:[%s5733_s23 + $0xa8] sm:$0xf] }
 0x204   : > { %v3799_v57 = vpop.f32.mrf.mxu3 }
 0x205   : > { %v4433_v44 = vadd.f32 1.0, %v5440_v11  ;;  %4264 = vmatmul.bf16.gmra.mxu0 %v4140_v5  ;;  %v3876_v46 = vadd.f32 %v3799_v57, %v3194_v3  ;;  %v3694_v5 = vunpack.c.l.b16 %v3535_v4  ;;  %v6921_v3 = vrot.slane %v3546_v16, 5  ;;  %v5672_v16 = vld [vmem:[%s5733_s23 + $0x98] sm:$0x1] }
 0x206   : > { %v5066_v11 = vrot.slane %v5050_v63, 9  ;;  %v2628_v4 = vrot.slane %v2626_v7, 4  ;;  %v2629_v40 = vrot.slane %v5672_v16, 5 }
 0x207   : > { %v4465_v42 = vmul.f32 0.5, %v4433_v44  ;;  %v4302_v51 = vadd.f32 %v4225_v48, %v3876_v46  ;;  %v3119_v1 = vpop.f32.mrf.mxu2  ;;  %v6930_v48 = vld [vmem:[%s5733_s23 + $0xa4] sm:$0x1]  ;;  %v4119_v46 = vunpack.c.l.b16 %v4043_v47  ;;  %v3553_v18 = vor.u32 %v3552_v37, %v6921_v3  ;;  %v6942_v37 = vld [vmem:[%s5733_s23 + $0xac] sm:$0xf] }
 0x208   : > { %v3195_v49 = vadd.f32 %v3119_v1, %v2880_v62  ;;  %v3556_v22 = vshll.u32 %v6930_v48, 16  ;;  %v2627_v33 = vsel %vm6048_vm5, %v5066_v11, %v2626_v7  ;;  %v3561_v11 = vshrl.u32 %v5299_v21, 16 }
 0x209   : > { %4497 = vst [vmem:[%s6894_s13 + $0x8] sm:$0xff] %v4465_v42  ;;  %v4338_v27 = vadd.f32 %v6866_v39, %v4302_v51  ;;  %v2807_v38 = vpop.f32.mrf.mxu1  ;;  %v4120_v42 = vunpack.c.l.b16 %v4046_v55  ;;  %v3715_v51 = vpack.c.b16 %v3694_v5, %v3693_v31  ;;  %v3554_v47 = vrot.slane %v3553_v18, 4 }
 0x20a   : > { %v4227_v19 = vpop.f32.mrf.mxu0  ;;  %v2881_v63 = vadd.f32 %v2807_v38, %v6392_v52  ;;  %v4049_v31 = vrot.slane %v6907_v54, 5  ;;  %v3564_v52 = vshll.u32 %v5299_v21, 16  ;;  %v3574_v16 = vshrl.u32 %v6942_v37, 16 }
 0x20b   : > { %v5441_v57 = vclamps-f32 %v4338_v27, 1.0  ;;  %2846 = vmatmul.bf16.gmra.mxu1 %v2718_v32  ;;  %v3544_v32 = vrot.slane %v3543_v25, 4  ;;  %v4141_v27 = vpack.c.b16 %v4120_v42, %v4119_v46  ;;  %v2698_v25 = vunpack.c.l.b16 %v2627_v33 }
 0x20c   : > { %v3801_v44 = vpop.f32.mrf.mxu3  ;;  %3161 = vmatmul.bf16.gmra.mxu2 %v5564_v59  ;;  %v2630_v59 = vsel %vm6048_vm5, %v2628_v4, %v2629_v40  ;;  %v3570_v4 = vshll.u32 %v6942_v37, 16  ;;  %v4051_v18 = vrot.slane %v4049_v31, 4  ;;  %v3566_v33 = vrot.slane %v3564_v52, 5 }
 0x20d   : > { %v4434_v61 = vadd.f32 1.0, %v5441_v57  ;;  %v3877_v8 = vadd.f32 %v3801_v44, %v3195_v49  ;;  %v3558_v49 = vrot.slane %v3556_v22, 5  ;;  %v2699_v57 = vunpack.c.l.b16 %v2630_v59  ;;  %v5051_v59 = vld [vmem:[%s5733_s23 + $0x9c] sm:$0xe] }
 0x20e   : > { %v3549_v54 = vsel %vm5748_vm2, %v3544_v32, %v6921_v3  ;;  %v4052_v22 = vrot.slane %v6930_v48, 5  ;;  %v6956_v3 = vrot.slane %v3570_v4, 5  ;;  %v3576_v32 = vrot.slane %v3574_v16, 4 }
 0x20f   : > { %v4466_v62 = vmul.f32 0.5, %v4434_v61  ;;  %v4303_v1 = vadd.f32 %v4227_v19, %v3877_v8  ;;  %v3122_v28 = vpop.f32.mrf.mxu2  ;;  %v5370_v19 = vld [vmem:[%s5733_s23 + $0x9c] sm:$0xe]  ;;  %v3559_v46 = vsel %vm5748_vm2, %v3554_v47, %v3558_v49  ;;  %v2719_v21 = vpack.c.b16 %v2699_v57, %v2698_v25  ;;  %v5673_v47 = vld [vmem:[%s5733_s23 + $0xa0] sm:$0xf] }
 0x210   : > { %v3196_v5 = vadd.f32 %v3122_v28, %v2881_v63  ;;  %v5386_v42 = vrot.slane %v5370_v19, 9  ;;  %v2633_v48 = vrot.slane %v5673_v47, 5  ;;  %v6962_v49 = vld [vmem:[%s5733_s23 + $0xb0] sm:$0x1]  ;;  %v5067_v57 = vrot.slane %v5051_v59, 9 }
 0x211   : > { %4498 = vst [vmem:[%s6894_s13 + $0x10] sm:$0xff] %v4466_v62  ;;  %v4339_v7 = vadd.f32 %v6866_v39, %v4303_v1  ;;  %3843 = vmatmul.bf16.gmra.mxu3 %v3715_v51  ;;  %v2809_v55 = vpop.f32.mrf.mxu1  ;;  %v3563_v51 = vrot.slane %v3561_v11, 4  ;;  %v3577_v4 = vor.u32 %v3576_v32, %v6956_v3  ;;  %v3580_v16 = vshll.u32 %v6962_v49, 16  ;;  %v5371_v47 = vld [vmem:[%s5733_s23 + $0xa8] sm:$0xe] }
 0x212   : > { %v4230_v38 = vpop.f32.mrf.mxu0  ;;  %v2882_v63 = vadd.f32 %v2809_v55, %v6412_v34  ;;  %v4050_v19 = vsel %vm6048_vm5, %v5386_v42, %v4049_v31  ;;  %v4053_v34 = vsel %vm6048_vm5, %v4051_v18, %v4052_v22 }
 0x213   : > { %v5442_v40 = vclamps-f32 %v4339_v7, 1.0  ;;  %v5565_v7 = vld [vmem:[%s5733_s23 + $0x9c] sm:$0xff]  ;;  %v3567_v55 = vor.u32 %v3566_v33, %v3563_v51  ;;  %v4121_v42 = vunpack.c.l.b16 %v4050_v19  ;;  %v2634_v33 = vsel %vm6048_vm5, %v5067_v57, %v2633_v48 }
 0x214   : > { %v3804_v44 = vpop.f32.mrf.mxu3  ;;  %v3578_v32 = vrot.slane %v3577_v4, 4 }
 0x215   : > { %v4435_v61 = vadd.f32 1.0, %v5442_v40  ;;  %4269 = vmatmul.bf16.gmra.mxu0 %v4141_v27  ;;  %v3878_v8 = vadd.f32 %v3804_v44, %v3196_v5  ;;  %v3695_v27 = vunpack.c.l.b16 %v3549_v54  ;;  %v3696_v5 = vunpack.c.l.b16 %v3559_v46  ;;  %v5674_v44 = vld [vmem:[%s5733_s23 + $0xa4] sm:$0x1] }
 0x216   : > { %v2635_v54 = vrot.slane %v2633_v48, 4  ;;  %v2636_v31 = vrot.slane %v5674_v44, 5  ;;  %v3568_v51 = vrot.slane %v3567_v55, 4  ;;  %v4059_v44 = vrot.slane %v6962_v49, 5 }
 0x217   : > { %v4467_v62 = vmul.f32 0.5, %v4435_v61  ;;  %v4304_v1 = vadd.f32 %v4230_v38, %v3878_v8  ;;  %v3124_v28 = vpop.f32.mrf.mxu2  ;;  %v4122_v61 = vunpack.c.l.b16 %v4053_v34  ;;  %v3716_v22 = vpack.c.b16 %v3696_v5, %v3695_v27 }
 0x218   : > { %v3197_v52 = vadd.f32 %v3124_v28, %v2882_v63  ;;  %v2637_v59 = vsel %vm6048_vm5, %v2635_v54, %v2636_v31  ;;  %v4056_v27 = vrot.slane %v6942_v37, 5  ;;  %v2700_v34 = vunpack.c.l.b16 %v2634_v33 }
 0x219   : > { %4499 = vst [vmem:[%s6894_s13 + $0x18] sm:$0xff] %v4467_v62  ;;  %v4340_v11 = vadd.f32 %v6866_v39, %v4304_v1  ;;  %v2812_v38 = vpop.f32.mrf.mxu1  ;;  %v3582_v62 = vrot.slane %v3580_v16, 5  ;;  %v4142_v19 = vpack.c.b16 %v4122_v61, %v4121_v42  ;;  %v2701_v55 = vunpack.c.l.b16 %v2637_v59  ;;  %v5566_v59 = vld [vmem:[%s5733_s23 + $0xa8] sm:$0xff] }
 0x21a   : > { %v4232_v25 = vpop.f32.mrf.mxu0  ;;  %v2883_v63 = vadd.f32 %v2812_v38, %v6422_v10  ;;  %v6988_v10 = vld [vmem:[%s5733_s23 + $0xb8] sm:$0xf]  ;;  %v4058_v54 = vrot.slane %v4056_v27, 4 }
 0x21b   : > { %v5443_v40 = vclamps-f32 %v4340_v11, 1.0  ;;  %2851 = vmatmul.bf16.gmra.mxu1 %v2719_v21  ;;  %v3583_v4 = vsel %vm5748_vm2, %v3578_v32, %v3582_v62  ;;  %v3598_v31 = vshrl.u32 %v6988_v10, 16 }
 0x21c   : > { %v3806_v46 = vpop.f32.mrf.mxu3  ;;  %3166 = vmatmul.bf16.gmra.mxu2 %v5565_v7  ;;  %v5302_v7 = vld [vmem:[%s5733_s23 + $0xb4] sm:$0xf]  ;;  %v3698_v33 = vunpack.c.l.b16 %v3583_v4 }
 0x21d   : > { %v4436_v8 = vadd.f32 1.0, %v5443_v40  ;;  %v3879_v18 = vadd.f32 %v3806_v46, %v3197_v52  ;;  %v3573_v52 = vsel %vm5748_vm2, %v3568_v51, %v6956_v3  ;;  %v3585_v57 = vshrl.u32 %v5302_v7, 16 }
 0x21e   : > { %v3588_v16 = vshll.u32 %v5302_v7, 16  ;;  %v3594_v3 = vshll.u32 %v6988_v10, 16  ;;  %v3697_v61 = vunpack.c.l.b16 %v3573_v52  ;;  %v2720_v51 = vpack.c.b16 %v2701_v55, %v2700_v34 }
 0x21f   : > { %v4468_v21 = vmul.f32 0.5, %v4436_v8  ;;  %v4305_v1 = vadd.f32 %v4232_v25, %v3879_v18  ;;  %v3127_v28 = vpop.f32.mrf.mxu2  ;;  %v5387_v25 = vrot.slane %v5371_v47, 9  ;;  %v5052_v8 = vld [vmem:[%s5733_s23 + $0xa8] sm:$0xe]  ;;  %v5675_v18 = vld [vmem:[%s5733_s23 + $0xac] sm:$0xf]  ;;  %v4060_v47 = vsel %vm6048_vm5, %v4058_v54, %v4059_v44 }
 0x220   : > { %v3198_v48 = vadd.f32 %v3127_v28, %v2883_v63  ;;  %v3587_v62 = vrot.slane %v3585_v57, 4  ;;  %v3590_v28 = vrot.slane %v3588_v16, 5  ;;  %v5068_v7 = vrot.slane %v5052_v8, 9 }
 0x221   : > { %4500 = vst [vmem:[%s6894_s13 + $0x20] sm:$0xff] %v4468_v21  ;;  %v4341_v5 = vadd.f32 %v6866_v39, %v4305_v1  ;;  %3848 = vmatmul.bf16.gmra.mxu3 %v3716_v22  ;;  %v2814_v11 = vpop.f32.mrf.mxu1  ;;  %v2640_v22 = vrot.slane %v5675_v18, 5  ;;  %v4057_v32 = vsel %vm6048_vm5, %v5387_v25, %v4056_v27  ;;  %v7009_v25 = vld [vmem:[%s5733_s23 + $0xbc] sm:$0x1]  ;;  %v3717_v57 = vpack.c.b16 %v3698_v33, %v3697_v61 }
 0x222   : > { %v4235_v38 = vpop.f32.mrf.mxu0  ;;  %v2884_v1 = vadd.f32 %v2814_v11, %v6430_v12  ;;  %v4123_v16 = vunpack.c.l.b16 %v4057_v32  ;;  %v3604_v44 = vshll.u32 %v7009_v25, 16  ;;  %v5305_v32 = vld [vmem:[%s5733_s23 + $0xc0] sm:$0xf] }
 0x223   : > { %v5444_v37 = vclamps-f32 %v4341_v5, 1.0  ;;  %v3600_v5 = vrot.slane %v3598_v31, 4  ;;  %v2642_v34 = vrot.slane %v2640_v22, 4 }
 0x224   : > { %v3809_v40 = vpop.f32.mrf.mxu3 }
 0x225   : > { %v4437_v46 = vadd.f32 1.0, %v5444_v37  ;;  %4274 = vmatmul.bf16.gmra.mxu0 %v4142_v19  ;;  %v3880_v42 = vadd.f32 %v3809_v40, %v3198_v48  ;;  %v7003_v19 = vrot.slane %v3594_v3, 5  ;;  %v3591_v37 = vor.u32 %v3590_v28, %v3587_v62  ;;  %v7020_v62 = vld [vmem:[%s5733_s23 + $0xc4] sm:$0xf] }
 0x226   : > { %v4124_v40 = vunpack.c.l.b16 %v4060_v47 }
 0x227   : > { %v4469_v49 = vmul.f32 0.5, %v4437_v46  ;;  %v4306_v21 = vadd.f32 %v4235_v38, %v3880_v42  ;;  %v3129_v63 = vpop.f32.mrf.mxu2  ;;  %v5676_v38 = vld [vmem:[%s5733_s23 + $0xb0] sm:$0x1]  ;;  %v3601_v54 = vor.u32 %v3600_v5, %v7003_v19  ;;  %v2641_v46 = vsel %vm6048_vm5, %v5068_v7, %v2640_v22  ;;  %v5372_v7 = vld [vmem:[%s5733_s23 + $0xb4] sm:$0xe] }
 0x228   : > { %v3199_v48 = vadd.f32 %v3129_v63, %v2884_v1  ;;  %v2643_v55 = vrot.slane %v5676_v38, 5  ;;  %v3592_v33 = vrot.slane %v3591_v37, 4  ;;  %v3606_v63 = vrot.slane %v3604_v44, 5 }
 0x229   : > { %4501 = vst [vmem:[%s6894_s13 + $0x28] sm:$0xff] %v4469_v49  ;;  %v4342_v27 = vadd.f32 %v6866_v39, %v4306_v21  ;;  %v2817_v52 = vpop.f32.mrf.mxu1  ;;  %v2702_v49 = vunpack.c.l.b16 %v2641_v46  ;;  %v3602_v1 = vrot.slane %v3601_v54, 4  ;;  %v4143_v28 = vpack.c.b16 %v4124_v40, %v4123_v16 }
 0x22a   : > { %v4237_v12 = vpop.f32.mrf.mxu0  ;;  %v2644_v42 = vsel %vm6048_vm5, %v2642_v34, %v2643_v55  ;;  %v2885_v18 = vadd.f32 %v2817_v52, %v6449_v60  ;;  %v4063_v5 = vrot.slane %v6988_v10, 5  ;;  %v3618_v52 = vshll.u32 %v7020_v62, 16 }
 0x22b   : > { %v5445_v11 = vclamps-f32 %v4342_v27, 1.0  ;;  %2856 = vmatmul.bf16.gmra.mxu1 %v2720_v51  ;;  %v2703_v21 = vunpack.c.l.b16 %v2644_v42  ;;  %v3609_v27 = vshrl.u32 %v5305_v32, 16  ;;  %v3622_v34 = vshrl.u32 %v7020_v62, 16  ;;  %v7185_v42 = vld [vmem:[#allocation2_spill] sm:$0xff] }
 0x22c   : > { %v3811_v4 = vpop.f32.mrf.mxu3  ;;  %3171 = vmatmul.bf16.gmra.mxu2 %v5566_v59  ;;  %v5388_v10 = vrot.slane %v5372_v7, 9  ;;  %v4065_v16 = vrot.slane %v4063_v5, 4  ;;  %v4066_v40 = vrot.slane %v7009_v25, 5 }
 0x22d   : > { %v4438_v3 = vadd.f32 1.0, %v5445_v11  ;;  %v3881_v31 = vadd.f32 %v3811_v4, %v3199_v48  ;;  %v3612_v48 = vshll.u32 %v5305_v32, 16  ;;  %v3597_v11 = vsel %vm5748_vm2, %v3592_v33, %v7003_v19  ;;  %v7040_v32 = vld [vmem:[%s5733_s23 + $0xc8] sm:$0x1] }
 0x22e   : > { %v3611_v54 = vrot.slane %v3609_v27, 4  ;;  %v3624_v19 = vrot.slane %v3622_v34, 4 }
 0x22f   : > { %v4470_v61 = vmul.f32 0.5, %v4438_v3  ;;  %v4307_v8 = vadd.f32 %v4237_v12, %v3881_v31  ;;  %v3132_v51 = vpop.f32.mrf.mxu2  ;;  %v2721_v12 = vpack.c.b16 %v2703_v21, %v2702_v49  ;;  %v3614_v44 = vrot.slane %v3612_v48, 5  ;;  %v5567_v49 = vld [vmem:[%s5733_s23 + $0xb4] sm:$0xff] }
 0x230   : > { %v3200_v59 = vadd.f32 %v3132_v51, %v2885_v18  ;;  %v7034_v3 = vrot.slane %v3618_v52, 5  ;;  %v5053_v18 = vld [vmem:[%s5733_s23 + $0xb4] sm:$0xe]  ;;  %v5677_v51 = vld [vmem:[%s5733_s23 + $0xb8] sm:$0xf]  ;;  %v3699_v21 = vunpack.c.l.b16 %v3597_v11  ;;  %v3628_v48 = vshll.u32 %v7040_v32, 16 }
 0x231   : > { %4502 = vst [vmem:[%s6894_s13 + $0x30] sm:$0xff] %v4470_v61  ;;  %v4343_v22 = vadd.f32 %v6866_v39, %v4307_v8  ;;  %3853 = vmatmul.bf16.gmra.mxu3 %v3717_v57  ;;  %v2819_v47 = vpop.f32.mrf.mxu1  ;;  %v3607_v57 = vsel %vm5748_vm2, %v3602_v1, %v3606_v63  ;;  %v2647_v33 = vrot.slane %v5677_v51, 5  ;;  %v5069_v7 = vrot.slane %v5053_v18, 9 }
 0x232   : > { %v4240_v60 = vpop.f32.mrf.mxu0  ;;  %v2886_v61 = vadd.f32 %v2819_v47, %v7185_v42  ;;  %v3700_v25 = vunpack.c.l.b16 %v3607_v57  ;;  %v3625_v27 = vor.u32 %v3624_v19, %v7034_v3  ;;  %v4070_v18 = vrot.slane %v7020_v62, 5 }
 0x233   : > { %v5446_v38 = vclamps-f32 %v4343_v22, 1.0  ;;  %v2649_v34 = vrot.slane %v2647_v33, 4 }
 0x234   : > { %v3814_v55 = vpop.f32.mrf.mxu3  ;;  %v3718_v57 = vpack.c.b16 %v3700_v25, %v3699_v21  ;;  %v5308_v25 = vld [vmem:[%s5733_s23 + $0xcc] sm:$0xf] }
 0x235   : > { %v4439_v37 = vadd.f32 1.0, %v5446_v38  ;;  %4279 = vmatmul.bf16.gmra.mxu0 %v4143_v28  ;;  %v3882_v4 = vadd.f32 %v3814_v55, %v3200_v59  ;;  %v4064_v28 = vsel %vm6048_vm5, %v5388_v10, %v4063_v5  ;;  %v4067_v59 = vsel %vm6048_vm5, %v4065_v16, %v4066_v40  ;;  %v5678_v38 = vld [vmem:[%s5733_s23 + $0xbc] sm:$0x1] }
 0x236   : > { %v2650_v55 = vrot.slane %v5678_v38, 5  ;;  %v2648_v16 = vsel %vm6048_vm5, %v5069_v7, %v2647_v33 }
 0x237   : > { %v4471_v31 = vmul.f32 0.5, %v4439_v37  ;;  %v4308_v46 = vadd.f32 %v4240_v60, %v3882_v4  ;;  %v3134_v8 = vpop.f32.mrf.mxu2  ;;  %v3615_v60 = vor.u32 %v3614_v44, %v3611_v54  ;;  %v4125_v37 = vunpack.c.l.b16 %v4064_v28 }
 0x238   : > { %v3201_v63 = vadd.f32 %v3134_v8, %v2886_v61  ;;  %v4126_v4 = vunpack.c.l.b16 %v4067_v59  ;;  %v3626_v54 = vrot.slane %v3625_v27, 4  ;;  %v3630_v44 = vrot.slane %v3628_v48, 5  ;;  %v5373_v8 = vld [vmem:[%s5733_s23 + $0xc0] sm:$0xe]  ;;  %v7063_v59 = vld [vmem:[%s5733_s23 + $0xd0] sm:$0xf] }
 0x239   : > { %4503 = vst [vmem:[%s6894_s13 + $0x38] sm:$0xff] %v4471_v31  ;;  %v4344_v1 = vadd.f32 %v6866_v39, %v4308_v46  ;;  %v2822_v22 = vpop.f32.mrf.mxu1  ;;  %v3616_v40 = vrot.slane %v3615_v60, 4  ;;  %v7186_v31 = vld [vmem:[#allocation3_spill] sm:$0xff]  ;;  %v2651_v61 = vsel %vm6048_vm5, %v2649_v34, %v2650_v55  ;;  %v5389_v7 = vrot.slane %v5373_v8, 9 }
 0x23a   : > { %v4242_v47 = vpop.f32.mrf.mxu0  ;;  %v2887_v46 = vadd.f32 %v2822_v22, %v7186_v31  ;;  %v4144_v33 = vpack.c.b16 %v4126_v4, %v4125_v37  ;;  %v2705_v28 = vunpack.c.l.b16 %v2651_v61  ;;  %v3631_v62 = vsel %vm5748_vm2, %v3626_v54, %v3630_v44  ;;  %v5568_v54 = vld [vmem:[%s5733_s23 + $0xc0] sm:$0xff] }
 0x23b   : > { %v5447_v52 = vclamps-f32 %v4344_v1, 1.0  ;;  %2861 = vmatmul.bf16.gmra.mxu1 %v2721_v12  ;;  %v4072_v27 = vrot.slane %v4070_v18, 4  ;;  %v4073_v48 = vrot.slane %v7040_v32, 5  ;;  %v3636_v34 = vshll.u32 %v5308_v25, 16 }
 0x23c   : > { %v3816_v11 = vpop.f32.mrf.mxu3  ;;  %3176 = vmatmul.bf16.gmra.mxu2 %v5567_v49 }
 0x23d   : > { %v4440_v5 = vadd.f32 1.0, %v5447_v52  ;;  %v3883_v10 = vadd.f32 %v3816_v11, %v3201_v63  ;;  %v2704_v63 = vunpack.c.l.b16 %v2648_v16  ;;  %v3633_v52 = vshrl.u32 %v5308_v25, 16 }
 0x23e   : > { %v3642_v11 = vshll.u32 %v7063_v59, 16  ;;  %v4074_v44 = vsel %vm6048_vm5, %v4072_v27, %v4073_v48 }
 0x23f   : > { %v4472_v12 = vmul.f32 0.5, %v4440_v5  ;;  %v4309_v19 = vadd.f32 %v4242_v47, %v3883_v10  ;;  %v3137_v42 = vpop.f32.mrf.mxu2  ;;  %v3621_v47 = vsel %vm5748_vm2, %v3616_v40, %v7034_v3  ;;  %v3646_v3 = vshrl.u32 %v7063_v59, 16 }
 0x240   : > { %v3202_v49 = vadd.f32 %v3137_v42, %v2887_v46  ;;  %v3701_v5 = vunpack.c.l.b16 %v3621_v47  ;;  %v3702_v10 = vunpack.c.l.b16 %v3631_v62  ;;  %v4071_v40 = vsel %vm6048_vm5, %v5389_v7, %v4070_v18  ;;  %v5680_v62 = vld [vmem:[%s5733_s23 + $0xc8] sm:$0x1] }
 0x241   : > { %4504 = vst [vmem:[%s6894_s13 + $0x40] sm:$0xff] %v4472_v12  ;;  %v4345_v51 = vadd.f32 %v6866_v39, %v4309_v19  ;;  %3858 = vmatmul.bf16.gmra.mxu3 %v3718_v57  ;;  %v2824_v21 = vpop.f32.mrf.mxu1  ;;  %v2722_v57 = vpack.c.b16 %v2705_v28, %v2704_v63  ;;  %v5679_v12 = vld [vmem:[%s5733_s23 + $0xc4] sm:$0xf]  ;;  %v3635_v31 = vrot.slane %v3633_v52, 4  ;;  %v3638_v46 = vrot.slane %v3636_v34, 5 }
 0x242   : > { %v4245_v1 = vpop.f32.mrf.mxu0  ;;  %v2888_v32 = vadd.f32 %v2824_v21, %v6500_v24  ;;  %v2654_v19 = vrot.slane %v5679_v12, 5  ;;  %v5054_v24 = vld [vmem:[%s5733_s23 + $0xc0] sm:$0xe]  ;;  %v7084_v21 = vld [vmem:[%s5733_s23 + $0xd4] sm:$0x1]  ;;  %v3719_v25 = vpack.c.b16 %v3702_v10, %v3701_v5  ;;  %v4128_v63 = vunpack.c.l.b16 %v4074_v44 }
 0x243   : > { %v5448_v22 = vclamps-f32 %v4345_v51, 1.0  ;;  %v3644_v51 = vrot.slane %v3642_v11, 5  ;;  %v2657_v7 = vrot.slane %v5680_v62, 5  ;;  %v3652_v34 = vshll.u32 %v7084_v21, 16 }
 0x244   : > { %v3819_v60 = vpop.f32.mrf.mxu3  ;;  %v2656_v47 = vrot.slane %v2654_v19, 4 }
 0x245   : > { %v4441_v38 = vadd.f32 1.0, %v5448_v22  ;;  %4284 = vmatmul.bf16.gmra.mxu0 %v4144_v33  ;;  %v3884_v55 = vadd.f32 %v3819_v60, %v3202_v49  ;;  %v3648_v33 = vrot.slane %v3646_v3, 4  ;;  %v5070_v22 = vrot.slane %v5054_v24, 9 }
 0x246   : > { %v3639_v60 = vor.u32 %v3638_v46, %v3635_v31  ;;  %v2658_v10 = vsel %vm6048_vm5, %v2656_v47, %v2657_v7  ;;  %v5569_v47 = vld [vmem:[%s5733_s23 + $0xcc] sm:$0xff] }
 0x247   : > { %v4473_v37 = vmul.f32 0.5, %v4441_v38  ;;  %v4310_v4 = vadd.f32 %v4245_v1, %v3884_v55  ;;  %v3139_v16 = vpop.f32.mrf.mxu2  ;;  %v4127_v1 = vunpack.c.l.b16 %v4071_v40  ;;  %v3649_v52 = vor.u32 %v3648_v33, %v3644_v51 }
 0x248   : > { %v3203_v61 = vadd.f32 %v3139_v16, %v2888_v32  ;;  %v2655_v5 = vsel %vm6048_vm5, %v5070_v22, %v2654_v19  ;;  %v2707_v46 = vunpack.c.l.b16 %v2658_v10  ;;  %v5374_v19 = vld [vmem:[%s5733_s23 + $0xcc] sm:$0xe] }
 0x249   : > { %4505 = vst [vmem:[%s6894_s13 + $0x48] sm:$0xff] %v4473_v37  ;;  %v4346_v42 = vadd.f32 %v6866_v39, %v4310_v4  ;;  %v2827_v8 = vpop.f32.mrf.mxu1  ;;  %v3640_v37 = vrot.slane %v3639_v60, 4  ;;  %v3650_v40 = vrot.slane %v3649_v52, 4  ;;  %v2706_v31 = vunpack.c.l.b16 %v2655_v5 }
 0x24a   : > { %v4247_v49 = vpop.f32.mrf.mxu0  ;;  %v2889_v11 = vadd.f32 %v2827_v8, %v6509_v36  ;;  %v4077_v36 = vrot.slane %v7063_v59, 5  ;;  %v4080_v59 = vrot.slane %v7084_v21, 5 }
 0x24b   : > { %v5449_v18 = vclamps-f32 %v4346_v42, 1.0  ;;  %2866 = vmatmul.bf16.gmra.mxu1 %v2722_v57  ;;  %v4145_v57 = vpack.c.b16 %v4128_v63, %v4127_v1  ;;  %v3645_v24 = vsel %vm5748_vm2, %v3640_v37, %v3644_v51  ;;  %v2723_v22 = vpack.c.b16 %v2707_v46, %v2706_v31 }
 0x24c   : > { %v3821_v28 = vpop.f32.mrf.mxu3  ;;  %3181 = vmatmul.bf16.gmra.mxu2 %v5568_v54  ;;  %v3654_v54 = vrot.slane %v3652_v34, 5  ;;  %v3703_v62 = vunpack.c.l.b16 %v3645_v24 }
 0x24d   : > { %v4442_v27 = vadd.f32 1.0, %v5449_v18  ;;  %v3885_v48 = vadd.f32 %v3821_v28, %v3203_v61  ;;  %v4079_v18 = vrot.slane %v4077_v36, 4 }
 0x24e   : > { %v3655_v33 = vsel %vm5748_vm2, %v3650_v40, %v3654_v54 }
 0x24f   : > { %v4474_v38 = vmul.f32 0.5, %v4442_v27  ;;  %v4311_v55 = vadd.f32 %v4247_v49, %v3885_v48  ;;  %v3142_v3 = vpop.f32.mrf.mxu2  ;;  %v5390_v49 = vrot.slane %v5374_v19, 9  ;;  %v3704_v7 = vunpack.c.l.b16 %v3655_v33 }
 0x250   : > { %v3204_v32 = vadd.f32 %v3142_v3, %v2889_v11  ;;  %v4081_v21 = vsel %vm6048_vm5, %v4079_v18, %v4080_v59 }
 0x251   : > { %4506 = vst [vmem:[%s6894_s13 + $0x50] sm:$0xff] %v4474_v38  ;;  %v4347_v4 = vadd.f32 %v6866_v39, %v4311_v55  ;;  %3863 = vmatmul.bf16.gmra.mxu3 %v3719_v25  ;;  %v2829_v16 = vpop.f32.mrf.mxu1  ;;  %v4078_v48 = vsel %vm6048_vm5, %v5390_v49, %v4077_v36  ;;  %v3720_v34 = vpack.c.b16 %v3704_v7, %v3703_v62  ;;  %v4130_v3 = vunpack.c.l.b16 %v4081_v21 }
 0x252   : > { %v4250_v44 = vpop.f32.mrf.mxu0  ;;  %v2890_v63 = vadd.f32 %v2829_v16, %v6522_v45  ;;  %v4129_v11 = vunpack.c.l.b16 %v4078_v48 }
 0x253   : > { %v5450_v12 = vclamps-f32 %v4347_v4, 1.0 }
 0x254   : > { %v3824_v42 = vpop.f32.mrf.mxu3  ;;  %v4146_v43 = vpack.c.b16 %v4130_v3, %v4129_v11 }
 0x255   : > { %v4443_v61 = vadd.f32 1.0, %v5450_v12  ;;  %4289 = vmatmul.bf16.gmra.mxu0 %v4145_v57  ;;  %v3886_v8 = vadd.f32 %v3824_v42, %v3204_v32 }
 0x257   : > { %v4475_v25 = vmul.f32 0.5, %v4443_v61  ;;  %v4312_v1 = vadd.f32 %v4250_v44, %v3886_v8  ;;  %v3144_v28 = vpop.f32.mrf.mxu2 }
 0x258   : > { %v3205_v51 = vadd.f32 %v3144_v28, %v2890_v63 }
 0x259   : > { %4507 = vst [vmem:[%s6894_s13 + $0x58] sm:$0xff] %v4475_v25  ;;  %v4348_v60 = vadd.f32 %v6866_v39, %v4312_v1  ;;  %v2832_v27 = vpop.f32.mrf.mxu1 }
 0x25a   : > { %v4252_v30 = vpop.f32.mrf.mxu0  ;;  %v2891_v10 = vadd.f32 %v2832_v27, %v6535_v23 }
 0x25b   : > { %v5451_v52 = vclamps-f32 %v4348_v60, 1.0  ;;  %2871 = vmatmul.bf16.gmra.mxu1 %v2723_v22 }
 0x25c   : > { %v3826_v45 = vpop.f32.mrf.mxu3  ;;  %3186 = vmatmul.bf16.gmra.mxu2 %v5569_v47 }
 0x25d   : > { %v4444_v38 = vadd.f32 1.0, %v5451_v52  ;;  %v3887_v55 = vadd.f32 %v3826_v45, %v3205_v51 }
 0x25f   : > { %v4476_v57 = vmul.f32 0.5, %v4444_v38  ;;  %v4313_v5 = vadd.f32 %v4252_v30, %v3887_v55  ;;  %v3147_v37 = vpop.f32.mrf.mxu2 }
 0x260   : > { %v3206_v32 = vadd.f32 %v3147_v37, %v2891_v10 }
 0x261   : > { %4508 = vst [vmem:[%s6894_s13 + $0x60] sm:$0xff] %v4476_v57  ;;  %v4349_v4 = vadd.f32 %v6866_v39, %v4313_v5  ;;  %3868 = vmatmul.bf16.gmra.mxu3 %v3720_v34  ;;  %v2834_v16 = vpop.f32.mrf.mxu1 }
 0x262   : > { %v4255_v40 = vpop.f32.mrf.mxu0  ;;  %v2892_v23 = vadd.f32 %v2834_v16, %v6559_v17 }
 0x263   : > { %v5452_v54 = vclamps-f32 %v4349_v4, 1.0 }
 0x264   : > { %v3829_v44 = vpop.f32.mrf.mxu3 }
 0x265   : > { %v4445_v36 = vadd.f32 1.0, %v5452_v54  ;;  %4294 = vmatmul.bf16.gmra.mxu0 %v4146_v43  ;;  %v3888_v12 = vadd.f32 %v3829_v44, %v3206_v32 }
 0x267   : > { %v4477_v31 = vmul.f32 0.5, %v4445_v36  ;;  %v4314_v46 = vadd.f32 %v4255_v40, %v3888_v12  ;;  %v3149_v19 = vpop.f32.mrf.mxu2 }
 0x268   : > { %v3207_v61 = vadd.f32 %v3149_v19, %v2892_v23 }
 0x269   : > { %4509 = vst [vmem:[%s6894_s13 + $0x68] sm:$0xff] %v4477_v31  ;;  %v4350_v42 = vadd.f32 %v6866_v39, %v4314_v46  ;;  %v2837_v8 = vpop.f32.mrf.mxu1 }
 0x26a   : > { %v4257_v24 = vpop.f32.mrf.mxu0  ;;  %v2893_v63 = vadd.f32 %v2837_v8, %v6574_v20 }
 0x26b   : > { %v5453_v33 = vclamps-f32 %v4350_v42, 1.0 }
 0x26c   : > { %v3831_v49 = vpop.f32.mrf.mxu3 }
 0x26d   : > { %v4446_v18 = vadd.f32 1.0, %v5453_v33  ;;  %v3889_v59 = vadd.f32 %v3831_v49, %v3207_v61 }
 0x26f   : > { %v4478_v25 = vmul.f32 0.5, %v4446_v18  ;;  %v4315_v1 = vadd.f32 %v4257_v24, %v3889_v59  ;;  %v3152_v28 = vpop.f32.mrf.mxu2 }
 0x270   : > { %v3208_v22 = vadd.f32 %v3152_v28, %v2893_v63 }
 0x271   : > { %4510 = vst [vmem:[%s6894_s13 + $0x70] sm:$0xff] %v4478_v25  ;;  %v4351_v17 = vadd.f32 %v6866_v39, %v4315_v1  ;;  %v2839_v47 = vpop.f32.mrf.mxu1 }
 0x272   : > { %v4260_v62 = vpop.f32.mrf.mxu0  ;;  %v2894_v21 = vadd.f32 %v2839_v47, %v6600_v56  ;;  %v7127_v56 = vld [vmem:[%s7177_s2] ss:$0 sm:$0xff] }
 0x273   : > { %v5454_v7 = vclamps-f32 %v4351_v17, 1.0 }
 0x274   : > { %v3834_v60 = vpop.f32.mrf.mxu3 }
 0x275   : > { %v4447_v51 = vadd.f32 1.0, %v5454_v7  ;;  %v3890_v27 = vadd.f32 %v3834_v60, %v3208_v22 }
 0x277   : > { %v4479_v30 = vmul.f32 0.5, %v4447_v51  ;;  %v4316_v48 = vadd.f32 %v4260_v62, %v3890_v27  ;;  %v3154_v52 = vpop.f32.mrf.mxu2 }
 0x278   : > { %v3209_v45 = vadd.f32 %v3154_v52, %v2894_v21 }
 0x279   : > { %4511 = vst [vmem:[%s6894_s13 + $0x78] sm:$0xff] %v4479_v30  ;;  %v4352_v20 = vadd.f32 %v6866_v39, %v4316_v48  ;;  %v2842_v34 = vpop.f32.mrf.mxu1 }
 0x27a   : > { %v4262_v38 = vpop.f32.mrf.mxu0  ;;  %v2895_v37 = vadd.f32 %v2842_v34, %v6614_v29 }
 0x27b   : > { %v5455_v55 = vclamps-f32 %v4352_v20, 1.0 }
 0x27c   : > { %v3836_v11 = vpop.f32.mrf.mxu3 }
 0x27d   : > { %v4448_v3 = vadd.f32 1.0, %v5455_v55  ;;  %v3891_v57 = vadd.f32 %v3836_v11, %v3209_v45 }
 0x27f   : > { %v4480_v5 = vmul.f32 0.5, %v4448_v3  ;;  %v4317_v10 = vadd.f32 %v4262_v38, %v3891_v57  ;;  %v3157_v4 = vpop.f32.mrf.mxu2 }
 0x280   : > { %v3210_v43 = vadd.f32 %v3157_v4, %v2895_v37 }
 0x281   : > { %4512 = vst [vmem:[%s6894_s13 + $0x80] sm:$0xff] %v4480_v5  ;;  %v4353_v39 = vadd.f32 %v7127_v56, %v4317_v10  ;;  %v2844_v32 = vpop.f32.mrf.mxu1 }
 0x282   : > { %v4265_v16 = vpop.f32.mrf.mxu0  ;;  %v2896_v29 = vadd.f32 %v2844_v32, %v6637_v58 }
 0x283   : > { %v5456_v40 = vclamps-f32 %v4353_v39, 1.0 }
 0x284   : > { %v3839_v54 = vpop.f32.mrf.mxu3 }
 0x285   : > { %v4449_v44 = vadd.f32 1.0, %v5456_v40  ;;  %v3892_v36 = vadd.f32 %v3839_v54, %v3210_v43 }
 0x287   : > { %v4481_v12 = vmul.f32 0.5, %v4449_v44  ;;  %v4318_v31 = vadd.f32 %v4265_v16, %v3892_v36  ;;  %v3159_v46 = vpop.f32.mrf.mxu2 }
 0x288   : > { %v3211_v19 = vadd.f32 %v3159_v46, %v2896_v29 }
 0x289   : > { %4513 = vst [vmem:[%s6894_s13 + $0x88] sm:$0xff] %v4481_v12  ;;  %v4354_v23 = vadd.f32 %v7127_v56, %v4318_v31  ;;  %v2847_v42 = vpop.f32.mrf.mxu1 }
 0x28a   : > { %v4267_v61 = vpop.f32.mrf.mxu0  ;;  %v2897_v25 = vadd.f32 %v2847_v42, %v6652_v26 }
 0x28b   : > { %v5457_v8 = vclamps-f32 %v4354_v23, 1.0 }
 0x28c   : > { %v3841_v24 = vpop.f32.mrf.mxu3 }
 0x28d   : > { %v4450_v33 = vadd.f32 1.0, %v5457_v8  ;;  %v3893_v49 = vadd.f32 %v3841_v24, %v3211_v19 }
 0x28f   : > { %v4482_v18 = vmul.f32 0.5, %v4450_v33  ;;  %v4319_v59 = vadd.f32 %v4267_v61, %v3893_v49  ;;  %v3162_v1 = vpop.f32.mrf.mxu2 }
 0x290   : > { %v3212_v63 = vadd.f32 %v3162_v1, %v2897_v25 }
 0x291   : > { %4514 = vst [vmem:[%s6894_s13 + $0x90] sm:$0xff] %v4482_v18  ;;  %v4355_v58 = vadd.f32 %v7127_v56, %v4319_v59  ;;  %v2849_v28 = vpop.f32.mrf.mxu1 }
 0x292   : > { %v4270_v17 = vpop.f32.mrf.mxu0  ;;  %v2898_v27 = vadd.f32 %v2849_v28, %v6678_v53 }
 0x293   : > { %v5458_v22 = vclamps-f32 %v4355_v58, 1.0 }
 0x294   : > { %v3844_v47 = vpop.f32.mrf.mxu3 }
 0x295   : > { %v4451_v62 = vadd.f32 1.0, %v5458_v22  ;;  %v3894_v7 = vadd.f32 %v3844_v47, %v3212_v63 }
 0x297   : > { %v4483_v60 = vmul.f32 0.5, %v4451_v62  ;;  %v4320_v51 = vadd.f32 %v4270_v17, %v3894_v7  ;;  %v3164_v30 = vpop.f32.mrf.mxu2 }
 0x298   : > { %v3213_v48 = vadd.f32 %v3164_v30, %v2898_v27 }
 0x299   : > { %4515 = vst [vmem:[%s6894_s13 + $0x98] sm:$0xff] %v4483_v60  ;;  %v4356_v26 = vadd.f32 %v7127_v56, %v4320_v51  ;;  %v2852_v21 = vpop.f32.mrf.mxu1 }
 0x29a   : > { %v4272_v52 = vpop.f32.mrf.mxu0  ;;  %v2899_v3 = vadd.f32 %v2852_v21, %v6692_v2 }
 0x29b   : > { %v5459_v20 = vclamps-f32 %v4356_v26, 1.0 }
 0x29c   : > { %v3846_v45 = vpop.f32.mrf.mxu3 }
 0x29d   : > { %v4452_v34 = vadd.f32 1.0, %v5459_v20  ;;  %v3895_v38 = vadd.f32 %v3846_v45, %v3213_v48 }
 0x29f   : > { %v4484_v55 = vmul.f32 0.5, %v4452_v34  ;;  %v4321_v11 = vadd.f32 %v4272_v52, %v3895_v38  ;;  %v3167_v57 = vpop.f32.mrf.mxu2 }
 0x2a0   : > { %v3214_v5 = vadd.f32 %v3167_v57, %v2899_v3 }
 0x2a1   : > { %4516 = vst [vmem:[%s6894_s13 + $0xa0] sm:$0xff] %v4484_v55  ;;  %v4357_v53 = vadd.f32 %v7127_v56, %v4321_v11  ;;  %v2854_v10 = vpop.f32.mrf.mxu1 }
 0x2a2   : > { %v4275_v37 = vpop.f32.mrf.mxu0  ;;  %v2900_v54 = vadd.f32 %v2854_v10, %v6715_v50 }
 0x2a3   : > { %v5460_v4 = vclamps-f32 %v4357_v53, 1.0 }
 0x2a4   : > { %v3849_v39 = vpop.f32.mrf.mxu3 }
 0x2a5   : > { %v4453_v43 = vadd.f32 1.0, %v5460_v4  ;;  %v3896_v32 = vadd.f32 %v3849_v39, %v3214_v5 }
 0x2a7   : > { %v4485_v16 = vmul.f32 0.5, %v4453_v43  ;;  %v4322_v40 = vadd.f32 %v4275_v37, %v3896_v32  ;;  %v3169_v44 = vpop.f32.mrf.mxu2 }
 0x2a8   : > { %v3215_v36 = vadd.f32 %v3169_v44, %v2900_v54 }
 0x2a9   : > { %4517 = vst [vmem:[%s6894_s13 + $0xa8] sm:$0xff] %v4485_v16  ;;  %v4358_v2 = vadd.f32 %v7127_v56, %v4322_v40  ;;  %v2857_v12 = vpop.f32.mrf.mxu1 }
 0x2aa   : > { %v4277_v31 = vpop.f32.mrf.mxu0  ;;  %v2901_v8 = vadd.f32 %v2857_v12, %v6730_v35 }
 0x2ab   : > { %v5461_v29 = vclamps-f32 %v4358_v2, 1.0 }
 0x2ac   : > { %v3851_v46 = vpop.f32.mrf.mxu3 }
 0x2ad   : > { %v4454_v23 = vadd.f32 1.0, %v5461_v29  ;;  %v3897_v19 = vadd.f32 %v3851_v46, %v3215_v36 }
 0x2af   : > { %v4486_v42 = vmul.f32 0.5, %v4454_v23  ;;  %v4323_v61 = vadd.f32 %v4277_v31, %v3897_v19  ;;  %v3172_v24 = vpop.f32.mrf.mxu2 }
 0x2b0   : > { %v3216_v33 = vadd.f32 %v3172_v24, %v2901_v8 }
 0x2b1   : > { %4518 = vst [vmem:[%s6894_s13 + $0xb0] sm:$0xff] %v4486_v42  ;;  %v4359_v50 = vadd.f32 %v7127_v56, %v4323_v61  ;;  %v2859_v49 = vpop.f32.mrf.mxu1 }
 0x2b2   : > { %v4280_v18 = vpop.f32.mrf.mxu0  ;;  %v2902_v17 = vadd.f32 %v2859_v49, %v6753_v0 }
 0x2b3   : > { %v5462_v59 = vclamps-f32 %v4359_v50, 1.0 }
 0x2b4   : > { %v3854_v25 = vpop.f32.mrf.mxu3 }
 0x2b5   : > { %v4455_v1 = vadd.f32 1.0, %v5462_v59  ;;  %v3898_v58 = vadd.f32 %v3854_v25, %v3216_v33 }
 0x2b7   : > { %v4487_v63 = vmul.f32 0.5, %v4455_v1  ;;  %v4324_v28 = vadd.f32 %v4280_v18, %v3898_v58  ;;  %v3174_v22 = vpop.f32.mrf.mxu2 }
 0x2b8   : > { %v3217_v47 = vadd.f32 %v3174_v22, %v2902_v17 }
 0x2b9   : > { %4519 = vst [vmem:[%s6894_s13 + $0xb8] sm:$0xff] %v4487_v63  ;;  %v4360_v35 = vadd.f32 %v7127_v56, %v4324_v28  ;;  %v2862_v62 = vpop.f32.mrf.mxu1 }
 0x2ba   : > { %v4282_v7 = vpop.f32.mrf.mxu0  ;;  %v2903_v21 = vadd.f32 %v2862_v62, %v6766_v14 }
 0x2bb   : > { %v5463_v60 = vclamps-f32 %v4360_v35, 1.0 }
 0x2bc   : > { %v3856_v51 = vpop.f32.mrf.mxu3 }
 0x2bd   : > { %v4456_v27 = vadd.f32 1.0, %v5463_v60  ;;  %v3899_v30 = vadd.f32 %v3856_v51, %v3217_v47 }
 0x2bf   : > { %v4488_v26 = vmul.f32 0.5, %v4456_v27  ;;  %v4325_v48 = vadd.f32 %v4282_v7, %v3899_v30  ;;  %v3177_v52 = vpop.f32.mrf.mxu2 }
 0x2c0   : > { %v3218_v20 = vadd.f32 %v3177_v52, %v2903_v21 }
 0x2c1   : > { %4520 = vst [vmem:[%s6894_s13 + $0xc0] sm:$0xff] %v4488_v26  ;;  %v4361_v0 = vadd.f32 %v7127_v56, %v4325_v48  ;;  %v2864_v45 = vpop.f32.mrf.mxu1 }
 0x2c2   : > { %v4285_v34 = vpop.f32.mrf.mxu0  ;;  %v2904_v5 = vadd.f32 %v2864_v45, %v6788_v9 }
 0x2c3   : > { %v5464_v38 = vclamps-f32 %v4361_v0, 1.0 }
 0x2c4   : > { %v3859_v55 = vpop.f32.mrf.mxu3 }
 0x2c5   : > { %v4457_v11 = vadd.f32 1.0, %v5464_v38  ;;  %v3900_v3 = vadd.f32 %v3859_v55, %v3218_v20 }
 0x2c7   : > { %v4489_v57 = vmul.f32 0.5, %v4457_v11  ;;  %v4326_v53 = vadd.f32 %v4285_v34, %v3900_v3  ;;  %v3179_v10 = vpop.f32.mrf.mxu2 }
 0x2c8   : > { %v3219_v37 = vadd.f32 %v3179_v10, %v2904_v5 }
 0x2c9   : > { %4521 = vst [vmem:[%s6894_s13 + $0xc8] sm:$0xff] %v4489_v57  ;;  %v4362_v14 = vadd.f32 %v7127_v56, %v4326_v53  ;;  %v2867_v4 = vpop.f32.mrf.mxu1 }
 0x2ca   : > { %v4287_v39 = vpop.f32.mrf.mxu0  ;;  %v2905_v2 = vadd.f32 %v2867_v4, %v6803_v6 }
 0x2cb   : > { %v5465_v43 = vclamps-f32 %v4362_v14, 1.0 }
 0x2cc   : > { %v3861_v32 = vpop.f32.mrf.mxu3 }
 0x2cd   : > { %v4458_v16 = vadd.f32 1.0, %v5465_v43  ;;  %v3901_v40 = vadd.f32 %v3861_v32, %v3219_v37 }
 0x2cf   : > { %v4490_v54 = vmul.f32 0.5, %v4458_v16  ;;  %v4327_v44 = vadd.f32 %v4287_v39, %v3901_v40  ;;  %v3182_v36 = vpop.f32.mrf.mxu2 }
 0x2d0   : > { %v3220_v12 = vadd.f32 %v3182_v36, %v2905_v2 }
 0x2d1   : > { %4522 = vst [vmem:[%s6894_s13 + $0xd0] sm:$0xff] %v4490_v54  ;;  %v4363_v9 = vadd.f32 %v7127_v56, %v4327_v44  ;;  %v2869_v31 = vpop.f32.mrf.mxu1 }
 0x2d2   : > { %v4290_v29 = vpop.f32.mrf.mxu0  ;;  %v2906_v24 = vadd.f32 %v2869_v31, %v6822_v15 }
 0x2d3   : > { %v5466_v46 = vclamps-f32 %v4363_v9, 1.0 }
 0x2d4   : > { %v3864_v23 = vpop.f32.mrf.mxu3 }
 0x2d5   : > { %v4459_v19 = vadd.f32 1.0, %v5466_v46  ;;  %v3902_v42 = vadd.f32 %v3864_v23, %v3220_v12 }
 0x2d7   : > { %v4491_v61 = vmul.f32 0.5, %v4459_v19  ;;  %v4328_v8 = vadd.f32 %v4290_v29, %v3902_v42  ;;  %v3184_v50 = vpop.f32.mrf.mxu2 }
 0x2d8   : > { %v3221_v33 = vadd.f32 %v3184_v50, %v2906_v24 }
 0x2d9   : > { %4523 = vst [vmem:[%s6894_s13 + $0xd8] sm:$0xff] %v4491_v61  ;;  %v4364_v6 = vadd.f32 %v7127_v56, %v4328_v8  ;;  %v2872_v49 = vpop.f32.mrf.mxu1 }
 0x2da   : > { %v4292_v18 = vpop.f32.mrf.mxu0  ;;  %v2907_v17 = vadd.f32 %v2872_v49, %v6838_v13 }
 0x2db   : > { %v5467_v59 = vclamps-f32 %v4364_v6, 1.0 }
 0x2dc   : > { %v3866_v25 = vpop.f32.mrf.mxu3 }
 0x2dd   : > { %v4460_v1 = vadd.f32 1.0, %v5467_v59  ;;  %v3903_v58 = vadd.f32 %v3866_v25, %v3221_v33 }
 0x2df   : > { %v4492_v63 = vmul.f32 0.5, %v4460_v1  ;;  %v4329_v28 = vadd.f32 %v4292_v18, %v3903_v58  ;;  %v3187_v22 = vpop.f32.mrf.mxu2 }
 0x2e0   : > { %v3222_v35 = vadd.f32 %v3187_v22, %v2907_v17 }
 0x2e1   : > { %4524 = vst [vmem:[%s6894_s13 + $0xe0] sm:$0xff] %v4492_v63  ;;  %v4365_v15 = vadd.f32 %v7127_v56, %v4329_v28  ;;  %v2874_v62 = vpop.f32.mrf.mxu1 }
 0x2e2   : > { %v4295_v7 = vpop.f32.mrf.mxu0  ;;  %v2908_v48 = vadd.f32 %v2874_v62, %v6857_v41 }
 0x2e3   : > { %v5468_v47 = vclamps-f32 %v4365_v15, 1.0 }
 0x2e4   : > { %v3869_v60 = vpop.f32.mrf.mxu3 }
 0x2e5   : > { %v4461_v51 = vadd.f32 1.0, %v5468_v47  ;;  %v3904_v27 = vadd.f32 %v3869_v60, %v3222_v35 }
 0x2e7   : > { %v4493_v30 = vmul.f32 0.5, %v4461_v51  ;;  %v4330_v26 = vadd.f32 %v4295_v7, %v3904_v27  ;;  %v3189_v21 = vpop.f32.mrf.mxu2 }
 0x2e8   : > { %v3223_v52 = vadd.f32 %v3189_v21, %v2908_v48 }
 0x2e9   : > { %4525 = vst [vmem:[%s6894_s13 + $0xe8] sm:$0xff] %v4493_v30  ;;  %v4366_v13 = vadd.f32 %v7127_v56, %v4330_v26 }
 0x2ea   : > { %v4297_v38 = vpop.f32.mrf.mxu0 }
 0x2eb   : > { %v5469_v0 = vclamps-f32 %v4366_v13, 1.0 }
 0x2ec   : > { %v3871_v20 = vpop.f32.mrf.mxu3 }
 0x2ed   : > { %v4462_v45 = vadd.f32 1.0, %v5469_v0  ;;  %v3905_v34 = vadd.f32 %v3871_v20, %v3223_v52 }
 0x2ef   : > { %v4494_v55 = vmul.f32 0.5, %v4462_v45  ;;  %v4331_v11 = vadd.f32 %v4297_v38, %v3905_v34 }
 0x2f1   : > { %4526 = vst [vmem:[%s6894_s13 + $0xf0] sm:$0xff] %v4494_v55  ;;  %v4367_v3 = vadd.f32 %v7127_v56, %v4331_v11 }
 0x2f3   : > { %v5470_v57 = vclamps-f32 %v4367_v3, 1.0 }
 0x2f5   : > { %v4463_v53 = vadd.f32 1.0, %v5470_v57 }
 0x2f7   : > { %v4495_v5 = vmul.f32 0.5, %v4463_v53 }
 0x2f9   : > { %4527 = vst [vmem:[%s6894_s13 + $0xf8] sm:$0xff] %v4495_v5 }
 0x2fa PF: > { %s13_s12 = sadd.s32 1, %s5688_s12  }
 0x2fb   : > { %p10_p4 = scmp.ge.s32.totalorder %s13_s12, 4  }
 0x2fd   :  { %12 = sbr.rel (!%p10_p4) target bundleno = 1 (0x1), region = 72 }

</bundles_post_ra>
